<compile_context>
chip_gen: v7x
topology: tpu7x:2x2x1
jax: 0.10.0
libtpu: 0.0.40
codegen_flags: <defaults>
</compile_context>

<pallas_src>
import jax
import jax.numpy as jnp
from jax.experimental import pallas as pl
from jax.experimental.pallas import tpu as pltpu

EPS = 1e-3


# ----------------------------- Pallas kernel -------------------------------

def _matmul_bn_relu_kernel(p_ref, w_ref, s_ref, b_ref, o_ref):
    # p_ref: (tm, K) bf16 im2col patches; w_ref: (K, OCp) bf16 weights
    # s_ref/b_ref: (1, OCp) f32 folded BN scale/bias; o_ref: (tm, OCp) f32
    acc = jnp.dot(p_ref[...], w_ref[...], preferred_element_type=jnp.float32)
    o_ref[...] = jnp.maximum(acc * s_ref[...] + b_ref[...], 0.0)


def _round_up(x, m):
    return (x + m - 1) // m * m


def matmul_bn_relu(patches, w_mat, scale, bias):
    """relu((patches @ w_mat) * scale + bias) fused on the MXU.

    patches: (M, K) f32; w_mat: (K, OC) f32; scale/bias: (OC,) f32 -> (M, OC) f32.
    """
    M, K = patches.shape
    OC = w_mat.shape[1]

    # Lane-dense output: zero-pad OC up to a multiple of 128, slice afterwards.
    OCp = _round_up(OC, 128)
    if OCp != OC:
        w_mat = jnp.pad(w_mat, ((0, 0), (0, OCp - OC)))
        scale = jnp.pad(scale, (0, OCp - OC))
        bias = jnp.pad(bias, (0, OCp - OC))

    # Fixed, 8-aligned M tiles; >=2 grid steps for small M (v7x has 2 TCs);
    # larger tiles when M is big enough (mem-bound 1x1 conv on v5e/v6e).
    if M >= 2048:
        tm = 256
    elif M >= 256:
        tm = 128
    else:
        tm = max(8, _round_up(M, 16) // 2)
    Mp = _round_up(M, tm)
    if Mp != M:
        patches = jnp.pad(patches, ((0, Mp - M), (0, 0)))

    # bf16 operands for MXU throughput; accumulate + BN/ReLU epilogue stay f32.
    patches = patches.astype(jnp.bfloat16)
    w_mat = w_mat.astype(jnp.bfloat16)
    scale = scale.reshape(1, OCp).astype(jnp.float32)
    bias = bias.reshape(1, OCp).astype(jnp.float32)

    out = pl.pallas_call(
        _matmul_bn_relu_kernel,
        out_shape=jax.ShapeDtypeStruct((Mp, OCp), jnp.float32),
        grid_spec=pltpu.PrefetchScalarGridSpec(
            num_scalar_prefetch=0,
            grid=(Mp // tm,),
            in_specs=[
                pl.BlockSpec((tm, K), lambda i: (i, 0)),
                pl.BlockSpec((K, OCp), lambda i: (0, 0)),
                pl.BlockSpec((1, OCp), lambda i: (0, 0)),
                pl.BlockSpec((1, OCp), lambda i: (0, 0)),
            ],
            out_specs=pl.BlockSpec((tm, OCp), lambda i: (i, 0)),
        ),
        compiler_params=pltpu.CompilerParams(
            dimension_semantics=("parallel",)),
    )(patches, w_mat, scale, bias)
    return out[:M, :OC]


# ------------------------------ JAX glue -----------------------------------

def toric_pad(x, kernel, stride):
    """Circular ('toroidal') padding, matching the PyTorch toric_pad. x: NHWC."""
    kh, kw = kernel
    sh, sw = stride
    H, W = x.shape[1], x.shape[2]
    pad_left = kw // 2
    pad_top = kh // 2
    d_right = (W - 1) % sw
    d_bottom = (H - 1) % sh
    pad_right = kw // 2 - d_right
    pad_bottom = kh // 2 - d_bottom
    assert pad_right >= 0 and pad_bottom >= 0, "unsupported shape/stride combo"
    if pad_top:
        x = jnp.concatenate([x[:, -pad_top:, :, :], x], axis=1)
    if pad_left:
        x = jnp.concatenate([x[:, :, -pad_left:, :], x], axis=2)
    if pad_bottom:
        x = jnp.concatenate([x, x[:, pad_top:pad_top + pad_bottom, :, :]], axis=1)
    if pad_right:
        x = jnp.concatenate([x, x[:, :, pad_left:pad_left + pad_right, :]], axis=2)
    return x


def im2col(x, kh, kw, sh, sw):
    """x: [N, Hp, Wp, C] -> patches [N*OH*OW, kh*kw*C] (ordering: (di, dj, c))."""
    N, Hp, Wp, C = x.shape
    OH = (Hp - kh) // sh + 1
    OW = (Wp - kw) // sw + 1
    cols = []
    for di in range(kh):
        for dj in range(kw):
            cols.append(x[:, di:di + sh * (OH - 1) + 1:sh,
                          dj:dj + sw * (OW - 1) + 1:sw, :])
    p = jnp.concatenate(cols, axis=-1)  # [N, OH, OW, kh*kw*C]
    return p.reshape(N * OH * OW, kh * kw * C), N, OH, OW


def basic_conv2d(x, params, kernel, stride=(1, 1)):
    """toroidal_conv2d (no bias) + BatchNorm2d(eval, eps=1e-3) + ReLU. x: NHWC."""
    if isinstance(kernel, int):
        kernel = (kernel, kernel)
    if isinstance(stride, int):
        stride = (stride, stride)
    w, gamma, beta, mean, var = params          # w: [OC, IC, KH, KW] (PyTorch)
    xp = toric_pad(x, kernel, stride)
    patches, N, OH, OW = im2col(xp, kernel[0], kernel[1], stride[0], stride[1])
    OC, IC, KH, KW = w.shape
    assert (KH, KW) == kernel, ("weight/kernel mismatch", w.shape, kernel)
    w_mat = jnp.transpose(w, (2, 3, 1, 0)).reshape(KH * KW * IC, OC)
    scale = gamma / jnp.sqrt(var + EPS)
    bias = beta - mean * scale
    out = matmul_bn_relu(patches, w_mat, scale, bias)
    return out.reshape(N, OH, OW, OC)


def branch_pool_fn(x):
    """torch: wrap last row/col to top/left, then max_pool2d(k=3, s=2). x: NHWC.

    Per perf review: computed as a fused XLA elementwise-maximum tree over the
    9 shifted stride-2 views (VPU work, no 9x HBM slab materialization, no
    extra tiny pallas_call round-trip)."""
    xp = jnp.concatenate([x[:, -1:, :, :], x], axis=1)
    xp = jnp.concatenate([xp[:, :, -1:, :], xp], axis=2)
    N, Hp, Wp, C = xp.shape
    OH = (Hp - 3) // 2 + 1
    OW = (Wp - 3) // 2 + 1
    out = None
    for di in range(3):
        for dj in range(3):
            v = xp[:, di:di + 2 * (OH - 1) + 1:2,
                   dj:dj + 2 * (OW - 1) + 1:2, :]
            out = v if out is None else jnp.maximum(out, v)
    return out


def inception_d(x_nchw, params):
    # layout: input/output NCHW (PyTorch convention), internal NHWC
    x = jnp.transpose(x_nchw, (0, 2, 3, 1)).astype(jnp.float32)

    # --- fused 1x1 stems of both branches: single matmul, OC = 192+192 = 384 ---
    w1, g1, b1, m1, v1 = params['b3x3_1']
    w2, g2, b2, m2, v2 = params['b7_1']
    fused_stem = (jnp.concatenate([w1, w2], axis=0),
                  jnp.concatenate([g1, g2]),
                  jnp.concatenate([b1, b2]),
                  jnp.concatenate([m1, m2]),
                  jnp.concatenate([v1, v2]))
    stem = basic_conv2d(x, fused_stem, kernel=1)
    oc1 = w1.shape[0]
    b3 = stem[..., :oc1]
    b7 = stem[..., oc1:]

    # --- branch 3x3 ---
    b3 = basic_conv2d(b3, params['b3x3_2'], kernel=3, stride=(2, 2))

    # --- branch 7x7x3 ---
    b7 = basic_conv2d(b7, params['b7_2'], kernel=(1, 7))
    b7 = basic_conv2d(b7, params['b7_3'], kernel=(7, 1))
    b7 = basic_conv2d(b7, params['b7_4'], kernel=3, stride=(2, 2))

    # --- branch pool ---
    bp = branch_pool_fn(x)

    out = jnp.concatenate([b3, b7, bp], axis=-1)   # channel concat (NHWC)
    return jnp.transpose(out, (0, 3, 1, 2))        # back to NCHW


# --------------------------- parameter creation -----------------------------

def init_params(key, in_channels):
    def conv_bn(k, oc, ic, kh, kw):
        k1, k2, k3, k4, k5 = jax.random.split(k, 5)
        w = jax.random.normal(k1, (oc, ic, kh, kw), jnp.float32) * 0.05
        gamma = jax.random.uniform(k2, (oc,), jnp.float32, 0.5, 1.5)
        beta = jax.random.normal(k3, (oc,), jnp.float32) * 0.1
        mean = jax.random.normal(k4, (oc,), jnp.float32) * 0.1
        var = jax.random.uniform(k5, (oc,), jnp.float32, 0.5, 1.5)
        return (w, gamma, beta, mean, var)

    keys = jax.random.split(key, 6)
    return {
        'b3x3_1': conv_bn(keys[0], 192, in_channels, 1, 1),
        'b3x3_2': conv_bn(keys[1], 320, 192, 3, 3),
        'b7_1':   conv_bn(keys[2], 192, in_channels, 1, 1),
        'b7_2':   conv_bn(keys[3], 192, 192, 1, 7),
        'b7_3':   conv_bn(keys[4], 192, 192, 7, 1),
        # fixed: branch7x7x3_4 is a 3x3 conv (was (3,1) -> shape-mismatch NaNs)
        'b7_4':   conv_bn(keys[5], 192, 192, 3, 3),
    }


if __name__ == "__main__":
    key = jax.random.PRNGKey(0)
    k_x, k_p = jax.random.split(key)

    N, C_in, H, W = 2, 4, 16, 16
    x = jax.random.normal(k_x, (N, C_in, H, W), jnp.float32)
    params = init_params(k_p, C_in)

    fwd = jax.jit(inception_d)
    out = fwd(x, params)
    out = jax.block_until_ready(out)

    expected = (N, 320 + 192 + C_in, H // 2, W // 2)
    assert out.shape == expected, (out.shape, expected)
    assert out.dtype == jnp.float32
    assert bool(jnp.all(jnp.isfinite(out)))
    print("KERNEL_OK")
</pallas_src>

<mosaic_0001>
module attributes {stable_mosaic.version = 11 : i64} {
  func.func @_matmul_bn_relu_kernel(%arg0: i32, %arg1: memref<128x4xbf16, #tpu.memory_space<vmem>>, %arg2: memref<4x384xbf16, #tpu.memory_space<vmem>>, %arg3: memref<1x384xf32, #tpu.memory_space<vmem>>, %arg4: memref<1x384xf32, #tpu.memory_space<vmem>>, %arg5: memref<128x384xf32, #tpu.memory_space<vmem>>) attributes {dimension_semantics = [#tpu.dimension_semantics<parallel>], iteration_bounds = array<i64: 4>, scalar_prefetch = 0 : i64, scratch_operands = 0 : i64, tpu.core_type = #tpu.core_type<tc>, window_params = [{transform_indices = @transform_0, window_bounds = array<i64: 128, 4>}, {pipeline_mode = #tpu.pipeline_mode<synchronous>, transform_indices = @transform_1, window_bounds = array<i64: 4, 384>}, {pipeline_mode = #tpu.pipeline_mode<synchronous>, transform_indices = @transform_2, window_bounds = array<i64: 1, 384>}, {pipeline_mode = #tpu.pipeline_mode<synchronous>, transform_indices = @transform_3, window_bounds = array<i64: 1, 384>}, {transform_indices = @transform_4, window_bounds = array<i64: 128, 384>}]} {
    %c0 = arith.constant 0 : index
    %c0_0 = arith.constant 0 : index
    %0 = vector.load %arg1[%c0, %c0_0] : memref<128x4xbf16, #tpu.memory_space<vmem>>, vector<128x4xbf16>
    %c0_1 = arith.constant 0 : index
    %c0_2 = arith.constant 0 : index
    %1 = vector.load %arg2[%c0_1, %c0_2] : memref<4x384xbf16, #tpu.memory_space<vmem>>, vector<4x384xbf16>
    %cst = arith.constant dense<0.000000e+00> : vector<128x384xf32>
    %2 = tpu.matmul %0, %1, %cst {dimension_numbers = #tpu.dot_dimension_numbers<[1], [0], [0], [1], [0, 0, 1, 1], [], []>} : vector<128x4xbf16>, vector<4x384xbf16>, vector<128x384xf32> -> vector<128x384xf32>
    %c0_3 = arith.constant 0 : index
    %c0_4 = arith.constant 0 : index
    %3 = vector.load %arg3[%c0_3, %c0_4] : memref<1x384xf32, #tpu.memory_space<vmem>>, vector<1x384xf32>
    %4 = vector.broadcast %3 : vector<1x384xf32> to vector<128x384xf32>
    %5 = arith.mulf %2, %4 : vector<128x384xf32>
    %c0_5 = arith.constant 0 : index
    %c0_6 = arith.constant 0 : index
    %6 = vector.load %arg4[%c0_5, %c0_6] : memref<1x384xf32, #tpu.memory_space<vmem>>, vector<1x384xf32>
    %7 = vector.broadcast %6 : vector<1x384xf32> to vector<128x384xf32>
    %8 = arith.addf %5, %7 : vector<128x384xf32>
    %cst_7 = arith.constant 0.000000e+00 : f32
    %9 = vector.broadcast %cst_7 : f32 to vector<128x384xf32>
    %10 = arith.maximumf %8, %9 : vector<128x384xf32>
    %c0_8 = arith.constant 0 : index
    %c0_9 = arith.constant 0 : index
    %11 = vector.load %arg5[%c0_8, %c0_9] : memref<128x384xf32, #tpu.memory_space<vmem>>, vector<128x384xf32>
    tpu.vector_store %arg5[%c0_8, %c0_9], %10 {strides = array<i32>} : memref<128x384xf32, #tpu.memory_space<vmem>>, vector<128x384xf32>,
    return
  }
  func.func @transform_0(%arg0: i32) -> (i32, i32) {
    %c0_i32 = arith.constant 0 : i32
    %c0_i32_0 = arith.constant 0 : i32
    return %arg0, %c0_i32 : i32, i32
  }
  func.func @transform_1(%arg0: i32) -> (i32, i32) {
    %c0_i32 = arith.constant 0 : i32
    %c0_i32_0 = arith.constant 0 : i32
    %c0_i32_1 = arith.constant 0 : i32
    return %c0_i32, %c0_i32_0 : i32, i32
  }
  func.func @transform_2(%arg0: i32) -> (i32, i32) {
    %c0_i32 = arith.constant 0 : i32
    %c0_i32_0 = arith.constant 0 : i32
    %c0_i32_1 = arith.constant 0 : i32
    return %c0_i32, %c0_i32_0 : i32, i32
  }
  func.func @transform_3(%arg0: i32) -> (i32, i32) {
    %c0_i32 = arith.constant 0 : i32
    %c0_i32_0 = arith.constant 0 : i32
    %c0_i32_1 = arith.constant 0 : i32
    return %c0_i32, %c0_i32_0 : i32, i32
  }
  func.func @transform_4(%arg0: i32) -> (i32, i32) {
    %c0_i32 = arith.constant 0 : i32
    %c0_i32_0 = arith.constant 0 : i32
    return %arg0, %c0_i32 : i32, i32
  }
}

module attributes {stable_mosaic.version = 11 : i64} {
  func.func @_matmul_bn_relu_kernel(%arg0: i32, %arg1: memref<128x1344xbf16, #tpu.memory_space<vmem>>, %arg2: memref<1344x256xbf16, #tpu.memory_space<vmem>>, %arg3: memref<1x256xf32, #tpu.memory_space<vmem>>, %arg4: memref<1x256xf32, #tpu.memory_space<vmem>>, %arg5: memref<128x256xf32, #tpu.memory_space<vmem>>) attributes {dimension_semantics = [#tpu.dimension_semantics<parallel>], iteration_bounds = array<i64: 4>, scalar_prefetch = 0 : i64, scratch_operands = 0 : i64, tpu.core_type = #tpu.core_type<tc>, window_params = [{transform_indices = @transform_0, window_bounds = array<i64: 128, 1344>}, {pipeline_mode = #tpu.pipeline_mode<synchronous>, transform_indices = @transform_1, window_bounds = array<i64: 1344, 256>}, {pipeline_mode = #tpu.pipeline_mode<synchronous>, transform_indices = @transform_2, window_bounds = array<i64: 1, 256>}, {pipeline_mode = #tpu.pipeline_mode<synchronous>, transform_indices = @transform_3, window_bounds = array<i64: 1, 256>}, {transform_indices = @transform_4, window_bounds = array<i64: 128, 256>}]} {
    %c0 = arith.constant 0 : index
    %c0_0 = arith.constant 0 : index
    %0 = vector.load %arg1[%c0, %c0_0] : memref<128x1344xbf16, #tpu.memory_space<vmem>>, vector<128x1344xbf16>
    %c0_1 = arith.constant 0 : index
    %c0_2 = arith.constant 0 : index
    %1 = vector.load %arg2[%c0_1, %c0_2] : memref<1344x256xbf16, #tpu.memory_space<vmem>>, vector<1344x256xbf16>
    %cst = arith.constant dense<0.000000e+00> : vector<128x256xf32>
    %2 = tpu.matmul %0, %1, %cst {dimension_numbers = #tpu.dot_dimension_numbers<[1], [0], [0], [1], [0, 0, 1, 1], [], []>} : vector<128x1344xbf16>, vector<1344x256xbf16>, vector<128x256xf32> -> vector<128x256xf32>
    %c0_3 = arith.constant 0 : index
    %c0_4 = arith.constant 0 : index
    %3 = vector.load %arg3[%c0_3, %c0_4] : memref<1x256xf32, #tpu.memory_space<vmem>>, vector<1x256xf32>
    %4 = vector.broadcast %3 : vector<1x256xf32> to vector<128x256xf32>
    %5 = arith.mulf %2, %4 : vector<128x256xf32>
    %c0_5 = arith.constant 0 : index
    %c0_6 = arith.constant 0 : index
    %6 = vector.load %arg4[%c0_5, %c0_6] : memref<1x256xf32, #tpu.memory_space<vmem>>, vector<1x256xf32>
    %7 = vector.broadcast %6 : vector<1x256xf32> to vector<128x256xf32>
    %8 = arith.addf %5, %7 : vector<128x256xf32>
    %cst_7 = arith.constant 0.000000e+00 : f32
    %9 = vector.broadcast %cst_7 : f32 to vector<128x256xf32>
    %10 = arith.maximumf %8, %9 : vector<128x256xf32>
    %c0_8 = arith.constant 0 : index
    %c0_9 = arith.constant 0 : index
    %11 = vector.load %arg5[%c0_8, %c0_9] : memref<128x256xf32, #tpu.memory_space<vmem>>, vector<128x256xf32>
    tpu.vector_store %arg5[%c0_8, %c0_9], %10 {strides = array<i32>} : memref<128x256xf32, #tpu.memory_space<vmem>>, vector<128x256xf32>,
    return
  }
  func.func @transform_0(%arg0: i32) -> (i32, i32) {
    %c0_i32 = arith.constant 0 : i32
    %c0_i32_0 = arith.constant 0 : i32
    return %arg0, %c0_i32 : i32, i32
  }
  func.func @transform_1(%arg0: i32) -> (i32, i32) {
    %c0_i32 = arith.constant 0 : i32
    %c0_i32_0 = arith.constant 0 : i32
    %c0_i32_1 = arith.constant 0 : i32
    return %c0_i32, %c0_i32_0 : i32, i32
  }
  func.func @transform_2(%arg0: i32) -> (i32, i32) {
    %c0_i32 = arith.constant 0 : i32
    %c0_i32_0 = arith.constant 0 : i32
    %c0_i32_1 = arith.constant 0 : i32
    return %c0_i32, %c0_i32_0 : i32, i32
  }
  func.func @transform_3(%arg0: i32) -> (i32, i32) {
    %c0_i32 = arith.constant 0 : i32
    %c0_i32_0 = arith.constant 0 : i32
    %c0_i32_1 = arith.constant 0 : i32
    return %c0_i32, %c0_i32_0 : i32, i32
  }
  func.func @transform_4(%arg0: i32) -> (i32, i32) {
    %c0_i32 = arith.constant 0 : i32
    %c0_i32_0 = arith.constant 0 : i32
    return %arg0, %c0_i32 : i32, i32
  }
}

module attributes {stable_mosaic.version = 11 : i64} {
  func.func @_matmul_bn_relu_kernel(%arg0: i32, %arg1: memref<64x1728xbf16, #tpu.memory_space<vmem>>, %arg2: memref<1728x256xbf16, #tpu.memory_space<vmem>>, %arg3: memref<1x256xf32, #tpu.memory_space<vmem>>, %arg4: memref<1x256xf32, #tpu.memory_space<vmem>>, %arg5: memref<64x256xf32, #tpu.memory_space<vmem>>) attributes {dimension_semantics = [#tpu.dimension_semantics<parallel>], iteration_bounds = array<i64: 2>, scalar_prefetch = 0 : i64, scratch_operands = 0 : i64, tpu.core_type = #tpu.core_type<tc>, window_params = [{transform_indices = @transform_0, window_bounds = array<i64: 64, 1728>}, {pipeline_mode = #tpu.pipeline_mode<synchronous>, transform_indices = @transform_1, window_bounds = array<i64: 1728, 256>}, {pipeline_mode = #tpu.pipeline_mode<synchronous>, transform_indices = @transform_2, window_bounds = array<i64: 1, 256>}, {pipeline_mode = #tpu.pipeline_mode<synchronous>, transform_indices = @transform_3, window_bounds = array<i64: 1, 256>}, {transform_indices = @transform_4, window_bounds = array<i64: 64, 256>}]} {
    %c0 = arith.constant 0 : index
    %c0_0 = arith.constant 0 : index
    %0 = vector.load %arg1[%c0, %c0_0] : memref<64x1728xbf16, #tpu.memory_space<vmem>>, vector<64x1728xbf16>
    %c0_1 = arith.constant 0 : index
    %c0_2 = arith.constant 0 : index
    %1 = vector.load %arg2[%c0_1, %c0_2] : memref<1728x256xbf16, #tpu.memory_space<vmem>>, vector<1728x256xbf16>
    %cst = arith.constant dense<0.000000e+00> : vector<64x256xf32>
    %2 = tpu.matmul %0, %1, %cst {dimension_numbers = #tpu.dot_dimension_numbers<[1], [0], [0], [1], [0, 0, 1, 1], [], []>} : vector<64x1728xbf16>, vector<1728x256xbf16>, vector<64x256xf32> -> vector<64x256xf32>
    %c0_3 = arith.constant 0 : index
    %c0_4 = arith.constant 0 : index
    %3 = vector.load %arg3[%c0_3, %c0_4] : memref<1x256xf32, #tpu.memory_space<vmem>>, vector<1x256xf32>
    %4 = vector.broadcast %3 : vector<1x256xf32> to vector<64x256xf32>
    %5 = arith.mulf %2, %4 : vector<64x256xf32>
    %c0_5 = arith.constant 0 : index
    %c0_6 = arith.constant 0 : index
    %6 = vector.load %arg4[%c0_5, %c0_6] : memref<1x256xf32, #tpu.memory_space<vmem>>, vector<1x256xf32>
    %7 = vector.broadcast %6 : vector<1x256xf32> to vector<64x256xf32>
    %8 = arith.addf %5, %7 : vector<64x256xf32>
    %cst_7 = arith.constant 0.000000e+00 : f32
    %9 = vector.broadcast %cst_7 : f32 to vector<64x256xf32>
    %10 = arith.maximumf %8, %9 : vector<64x256xf32>
    %c0_8 = arith.constant 0 : index
    %c0_9 = arith.constant 0 : index
    %11 = vector.load %arg5[%c0_8, %c0_9] : memref<64x256xf32, #tpu.memory_space<vmem>>, vector<64x256xf32>
    tpu.vector_store %arg5[%c0_8, %c0_9], %10 {strides = array<i32>} : memref<64x256xf32, #tpu.memory_space<vmem>>, vector<64x256xf32>,
    return
  }
  func.func @transform_0(%arg0: i32) -> (i32, i32) {
    %c0_i32 = arith.constant 0 : i32
    %c0_i32_0 = arith.constant 0 : i32
    return %arg0, %c0_i32 : i32, i32
  }
  func.func @transform_1(%arg0: i32) -> (i32, i32) {
    %c0_i32 = arith.constant 0 : i32
    %c0_i32_0 = arith.constant 0 : i32
    %c0_i32_1 = arith.constant 0 : i32
    return %c0_i32, %c0_i32_0 : i32, i32
  }
  func.func @transform_2(%arg0: i32) -> (i32, i32) {
    %c0_i32 = arith.constant 0 : i32
    %c0_i32_0 = arith.constant 0 : i32
    %c0_i32_1 = arith.constant 0 : i32
    return %c0_i32, %c0_i32_0 : i32, i32
  }
  func.func @transform_3(%arg0: i32) -> (i32, i32) {
    %c0_i32 = arith.constant 0 : i32
    %c0_i32_0 = arith.constant 0 : i32
    %c0_i32_1 = arith.constant 0 : i32
    return %c0_i32, %c0_i32_0 : i32, i32
  }
  func.func @transform_4(%arg0: i32) -> (i32, i32) {
    %c0_i32 = arith.constant 0 : i32
    %c0_i32_0 = arith.constant 0 : i32
    return %arg0, %c0_i32 : i32, i32
  }
}

module attributes {stable_mosaic.version = 11 : i64} {
  func.func @_matmul_bn_relu_kernel(%arg0: i32, %arg1: memref<64x1728xbf16, #tpu.memory_space<vmem>>, %arg2: memref<1728x384xbf16, #tpu.memory_space<vmem>>, %arg3: memref<1x384xf32, #tpu.memory_space<vmem>>, %arg4: memref<1x384xf32, #tpu.memory_space<vmem>>, %arg5: memref<64x384xf32, #tpu.memory_space<vmem>>) attributes {dimension_semantics = [#tpu.dimension_semantics<parallel>], iteration_bounds = array<i64: 2>, scalar_prefetch = 0 : i64, scratch_operands = 0 : i64, tpu.core_type = #tpu.core_type<tc>, window_params = [{transform_indices = @transform_0, window_bounds = array<i64: 64, 1728>}, {pipeline_mode = #tpu.pipeline_mode<synchronous>, transform_indices = @transform_1, window_bounds = array<i64: 1728, 384>}, {pipeline_mode = #tpu.pipeline_mode<synchronous>, transform_indices = @transform_2, window_bounds = array<i64: 1, 384>}, {pipeline_mode = #tpu.pipeline_mode<synchronous>, transform_indices = @transform_3, window_bounds = array<i64: 1, 384>}, {transform_indices = @transform_4, window_bounds = array<i64: 64, 384>}]} {
    %c0 = arith.constant 0 : index
    %c0_0 = arith.constant 0 : index
    %0 = vector.load %arg1[%c0, %c0_0] : memref<64x1728xbf16, #tpu.memory_space<vmem>>, vector<64x1728xbf16>
    %c0_1 = arith.constant 0 : index
    %c0_2 = arith.constant 0 : index
    %1 = vector.load %arg2[%c0_1, %c0_2] : memref<1728x384xbf16, #tpu.memory_space<vmem>>, vector<1728x384xbf16>
    %cst = arith.constant dense<0.000000e+00> : vector<64x384xf32>
    %2 = tpu.matmul %0, %1, %cst {dimension_numbers = #tpu.dot_dimension_numbers<[1], [0], [0], [1], [0, 0, 1, 1], [], []>} : vector<64x1728xbf16>, vector<1728x384xbf16>, vector<64x384xf32> -> vector<64x384xf32>
    %c0_3 = arith.constant 0 : index
    %c0_4 = arith.constant 0 : index
    %3 = vector.load %arg3[%c0_3, %c0_4] : memref<1x384xf32, #tpu.memory_space<vmem>>, vector<1x384xf32>
    %4 = vector.broadcast %3 : vector<1x384xf32> to vector<64x384xf32>
    %5 = arith.mulf %2, %4 : vector<64x384xf32>
    %c0_5 = arith.constant 0 : index
    %c0_6 = arith.constant 0 : index
    %6 = vector.load %arg4[%c0_5, %c0_6] : memref<1x384xf32, #tpu.memory_space<vmem>>, vector<1x384xf32>
    %7 = vector.broadcast %6 : vector<1x384xf32> to vector<64x384xf32>
    %8 = arith.addf %5, %7 : vector<64x384xf32>
    %cst_7 = arith.constant 0.000000e+00 : f32
    %9 = vector.broadcast %cst_7 : f32 to vector<64x384xf32>
    %10 = arith.maximumf %8, %9 : vector<64x384xf32>
    %c0_8 = arith.constant 0 : index
    %c0_9 = arith.constant 0 : index
    %11 = vector.load %arg5[%c0_8, %c0_9] : memref<64x384xf32, #tpu.memory_space<vmem>>, vector<64x384xf32>
    tpu.vector_store %arg5[%c0_8, %c0_9], %10 {strides = array<i32>} : memref<64x384xf32, #tpu.memory_space<vmem>>, vector<64x384xf32>,
    return
  }
  func.func @transform_0(%arg0: i32) -> (i32, i32) {
    %c0_i32 = arith.constant 0 : i32
    %c0_i32_0 = arith.constant 0 : i32
    return %arg0, %c0_i32 : i32, i32
  }
  func.func @transform_1(%arg0: i32) -> (i32, i32) {
    %c0_i32 = arith.constant 0 : i32
    %c0_i32_0 = arith.constant 0 : i32
    %c0_i32_1 = arith.constant 0 : i32
    return %c0_i32, %c0_i32_0 : i32, i32
  }
  func.func @transform_2(%arg0: i32) -> (i32, i32) {
    %c0_i32 = arith.constant 0 : i32
    %c0_i32_0 = arith.constant 0 : i32
    %c0_i32_1 = arith.constant 0 : i32
    return %c0_i32, %c0_i32_0 : i32, i32
  }
  func.func @transform_3(%arg0: i32) -> (i32, i32) {
    %c0_i32 = arith.constant 0 : i32
    %c0_i32_0 = arith.constant 0 : i32
    %c0_i32_1 = arith.constant 0 : i32
    return %c0_i32, %c0_i32_0 : i32, i32
  }
  func.func @transform_4(%arg0: i32) -> (i32, i32) {
    %c0_i32 = arith.constant 0 : i32
    %c0_i32_0 = arith.constant 0 : i32
    return %arg0, %c0_i32 : i32, i32
  }
}

</mosaic_0001>

<bundles_post_ra>
// kernel: inception_d.5
= control target key start
LH: loop header
LB: loop body
LE: loop exit
PB: predicated region body
PF: predicated region fallthrough
CT: control target
= control target key end

     0   :  { %s928_s15 = smov 0   ;;  %s1157_s0 = inlined_call_operand.vmem [shape: bf16[512,4], index: 0, kind: input, shape index: {}]   ;;  %s1158_s1 = inlined_call_operand.vmem [shape: bf16[4,384], index: 1, kind: input, shape index: {}]   ;;  %s1159_s2 = inlined_call_operand.vmem [shape: f32[1,384], index: 2, kind: input, shape index: {}]   ;;  %s1160_s3 = inlined_call_operand.vmem [shape: f32[1,384], index: 3, kind: input, shape index: {}]   ;;  %s1161_s4 = inlined_call_operand.vmem [shape: f32[512,384], index: 4, kind: output, shape index: {}]  }
   0x1 LB: > { %s807_s16 = sadd.s32 4294967295, %s899_s15   ;;  %p811_p0 = scmp.ge.s32.totalorder %s899_s15, 1  ;;  %s899_s15 = sphi %s928_s15, %s14_s15  }
   0x2   : > { %p163_p1 = scmp.lt.s32.totalorder %s899_s15, 5 }
   0x4   : > { %p164_p2 = pnand %p811_p0, %p163_p1 }
   0x5   : > { %v266_v0 = vlaneseq (!%p164_p2)  ;;  %v901_v1 = vmov (!%p164_p2), 1983009808   ;;  %v902_v3 = vmov (!%p164_p2), 0   ;;  %s812_s17 = sshll.u32 (!%p164_p2), %s807_s16, 4  ;;  %v220_v6 = vld [vmem:[%s1158_s1] sm:$0x3f] (!%p164_p2) }
   0x6   : > { %167 = sbr.rel (%p164_p2) target bundleno = 282 (0x11a), region = 36  ;;  %v264_v2 = vunpack.c.l.s4 (!%p164_p2), %v901_v1  ;;  %345 = vmatprep.mubr.bf16.mxu0 (!%p164_p2), %v902_v3  ;;  %405 = vmatprep.mubr.bf16.mxu1 (!%p164_p2), %v902_v3  ;;  %p191_p3 = scmp.lt.s32.totalorder (!%p164_p2), %s812_s17, 63  ;;  %v262_v7 = vcombine.high (!%p164_p2), %v220_v6, %v220_v6  ;;  %vm303_vm0 = vcmask (!%p164_p2), 1041408   ;;  %vm278_vm1 = vcmask (!%p164_p2), 31744   ;;  %v523_v23 = vld [vmem:[%s1159_s2] sm:$0x7] (!%p164_p2) }
   0x7   : > { %v936_v4 = vshrl.u32 (!%p164_p2), %v266_v0, 7  ;;  %v982_v25 = vld [vmem:[%s1160_s3] sm:$0x7] (!%p164_p2) }
   0x8   : > { %v265_v5 = vunpack.c.0.s8 (!%p164_p2), %v264_v2 }
   0x9   : > { %v527_v22 = vsub.s32 (!%p164_p2), 0, %v936_v4  ;;  %v531_v24 = vsub.s32 (!%p164_p2), 1, %v936_v4  ;;  %v535_v36 = vsub.s32 (!%p164_p2), 2, %v936_v4 }
   0xa   : > { %v268_v8 = vsub.s32 (!%p164_p2), %v265_v5, %v936_v4 }
   0xb   : > { %v984_v26 = vrot.slane (!%p164_p2), %v523_v23, %v527_v22  ;;  %v986_v27 = vrot.slane (!%p164_p2), %v523_v23, %v531_v24  ;;  %v989_v28 = vrot.slane (!%p164_p2), %v982_v25, %v527_v22  ;;  %v992_v29 = vrot.slane (!%p164_p2), %v982_v25, %v531_v24 }
   0xc   : > { %v269_v9 = vrot.slane (!%p164_p2), %v220_v6, %v268_v8  ;;  %v276_v12 = vrot.slane (!%p164_p2), %v262_v7, %v268_v8  ;;  %v1027_v6 = vrot.slane (!%p164_p2), %v523_v23, %v535_v36 }
   0xd   : > { %s1163_s17 = smov (!%p191_p3, %s812_s17), 63 }
   0xe   : > { %s813_s20 = sshll.u32 %s1163_s17, 2  ;;  %v277_v10 = vcombine.high %v269_v9, %v269_v9  ;;  %v305_v11 = vsel %vm303_vm0, %v269_v9, 0  ;;  %v311_v15 = vsel %vm303_vm0, %v276_v12, 0  ;;  %s873_s28 = smul.u32 24, %s1163_s17 }
   0xf   : > { %s948_s23 = scalar_lea.vmem %s1157_s0, %s813_s20 }
  0x10   : > { %v885_v13 = vld [vmem:[%s948_s23] sm:$0xff]   ;;  %824 = vmatprep.subr.msk.bf16.mxu0 %vm303_vm0, %v277_v10  ;;  %870 = vmatprep.subr.msk.bf16.mxu1 %vm303_vm0, %v277_v10  ;;  %v886_v14 = vld [vmem:[%s948_s23 + $0x30] sm:$0xff]   ;;  %v887_v16 = vld [vmem:[%s948_s23 + $0x8] sm:$0xff]   ;;  %s1007_s5 = scalar_lea.vmem %s1161_s4, %s873_s28 }
  0x11   : > { %314 = vmatpush1.bf16.msra.mxu0 %v305_v11  ;;  %871 = vmatpush1.bf16.msra.mxu1 %v305_v11  ;;  %v888_v17 = vld [vmem:[%s948_s23 + $0x38] sm:$0xff]   ;;  %v889_v18 = vld [vmem:[%s948_s23 + $0x10] sm:$0xff]   ;;  %v891_v20 = vld [vmem:[%s948_s23 + $0x20] sm:$0xff]  }
  0x12   : > { %872 = vmatprep.subr.msk.bf16.mxu1 %vm303_vm0, %v276_v12  ;;  %v890_v19 = vld [vmem:[%s948_s23 + $0x18] sm:$0xff]   ;;  %v892_v21 = vld [vmem:[%s948_s23 + $0x28] sm:$0xff]  }
  0x14   : > { %825 = vmatmul.mubr.msk.bf16.vlgmr.msra.gmra.mrb[0].mxu0 %vm278_vm1, %v885_v13  ;;  %831 = vmatmul.mubr.msk.bf16.vlgmr.msra.gmra.mrb[0].mxu1 %vm278_vm1, %v886_v14 }
  0x15   : > { %853 = vmatpush3.bf16.msra.mxu1 %v311_v15  ;;  %355 = vmatprep.mubr.bf16.mxu0 %v902_v3 }
  0x16   : > { %415 = vmatprep.mubr.bf16.mxu1 %v902_v3 }
  0x1c   : > { %826 = vmatmul.mubr.msk.bf16.gmra.mrb[4].mxu0 %vm278_vm1, %v887_v16  ;;  %832 = vmatmul.mubr.msk.bf16.gmra.mrb[4].mxu1 %vm278_vm1, %v888_v17 }
  0x1d   : > { %365 = vmatprep.mubr.bf16.mxu0 %v902_v3  ;;  %854 = vmatprep.mubr.msk.bf16.mxu1 %vm278_vm1, %v885_v13 }
  0x24   : > { %827 = vmatmul.mubr.msk.bf16.gmra.mrb[8].mxu0 %vm278_vm1, %v889_v18  ;;  %855 = vmatmul.mubr.msk.bf16.vlgmr.msra.gmra.mrb[8].mxu1 %vm278_vm1, %v887_v16 }
  0x25   : > { %375 = vmatprep.mubr.bf16.mxu0 %v902_v3  ;;  %858 = vmatprep.mubr.msk.bf16.mxu1 %vm278_vm1, %v889_v18 }
  0x2c   : > { %828 = vmatmul.mubr.msk.bf16.gmra.mrb[12].mxu0 %vm278_vm1, %v890_v19  ;;  %859 = vmatmul.mubr.msk.bf16.gmra.mrb[12].mxu1 %vm278_vm1, %v890_v19 }
  0x2d   : > { %385 = vmatprep.mubr.bf16.mxu0 %v902_v3  ;;  %862 = vmatprep.mubr.msk.bf16.mxu1 %vm278_vm1, %v891_v20 }
  0x34   : > { %829 = vmatmul.mubr.msk.bf16.gmra.mrb[16].mxu0 %vm278_vm1, %v891_v20  ;;  %863 = vmatmul.mubr.msk.bf16.gmra.mrb[16].mxu1 %vm278_vm1, %v892_v21 }
  0x35   : > { %395 = vmatprep.mubr.bf16.mxu0 %v902_v3  ;;  %866 = vmatprep.mubr.msk.bf16.mxu1 %vm278_vm1, %v886_v14 }
  0x3c   : > { %830 = vmatmul.mubr.msk.bf16.gmra.mrb[20].mxu0 %vm278_vm1, %v892_v21  ;;  %867 = vmatmul.mubr.msk.bf16.gmra.mrb[20].mxu1 %vm278_vm1, %v888_v17 }
  0xe7   : > { %v347_v30 = vpop.f32.mrb[0].mxu0  ;;  %v407_v31 = vpop.f32.mrb[0].mxu1 }
  0xe8   : > { %v540_v32 = vmul.f32 %v984_v26, %v347_v30  ;;  %v576_v33 = vmul.f32 %v984_v26, %v407_v31  ;;  %v349_v34 = vpop.f32.mrb[1].mxu0  ;;  %v409_v35 = vpop.f32.mrb[1].mxu1 }
  0xe9   : > { %v541_v37 = vmul.f32 %v986_v27, %v349_v34  ;;  %v577_v38 = vmul.f32 %v986_v27, %v409_v35  ;;  %v351_v39 = vpop.f32.mrb[2].mxu0  ;;  %v411_v40 = vpop.f32.mrb[2].mxu1  ;;  %v1048_v34 = vrot.slane %v982_v25, %v535_v36 }
  0xea   : > { %v605_v41 = vadd.f32 %v989_v28, %v540_v32  ;;  %v641_v42 = vadd.f32 %v989_v28, %v576_v33  ;;  %v543_v43 = vmul.f32 %v984_v26, %v351_v39  ;;  %v579_v44 = vmul.f32 %v984_v26, %v411_v40  ;;  %v353_v45 = vpop.f32.mrb[3].mxu0  ;;  %v413_v46 = vpop.f32.mrb[3].mxu1 }
  0xeb   : > { %v606_v47 = vadd.f32 %v992_v29, %v541_v37  ;;  %v642_v48 = vadd.f32 %v992_v29, %v577_v38  ;;  %v544_v49 = vmul.f32 %v986_v27, %v353_v45  ;;  %v580_v50 = vmul.f32 %v986_v27, %v413_v46 }
  0xec   : > { %v653_v51 = vmax.f32 %v605_v41, 0.0  ;;  %v689_v52 = vmax.f32 %v641_v42, 0.0  ;;  %v608_v53 = vadd.f32 %v989_v28, %v543_v43  ;;  %v644_v54 = vadd.f32 %v989_v28, %v579_v44 }
  0xed   : > { %v654_v55 = vmax.f32 %v606_v47, 0.0  ;;  %v690_v56 = vmax.f32 %v642_v48, 0.0  ;;  %v609_v57 = vadd.f32 %v992_v29, %v544_v49  ;;  %v645_v58 = vadd.f32 %v992_v29, %v580_v50 }
  0xee   : > { %701 = vst [vmem:[%s1007_s5] sm:$0xff] %v653_v51  ;;  %737 = vst [vmem:[%s1007_s5 + $0x120] sm:$0xff] %v689_v52  ;;  %v656_v59 = vmax.f32 %v608_v53, 0.0  ;;  %v692_v60 = vmax.f32 %v644_v54, 0.0 }
  0xef   : > { %702 = vst [vmem:[%s1007_s5 + $0x8] sm:$0xff] %v654_v55  ;;  %738 = vst [vmem:[%s1007_s5 + $0x128] sm:$0xff] %v690_v56  ;;  %v657_v61 = vmax.f32 %v609_v57, 0.0  ;;  %v693_v62 = vmax.f32 %v645_v58, 0.0  ;;  %v357_v63 = vpop.f32.mrb[4].mxu0  ;;  %v417_v0 = vpop.f32.mrb[4].mxu1 }
  0xf0   : > { %704 = vst [vmem:[%s1007_s5 + $0x18] sm:$0xff] %v656_v59  ;;  %740 = vst [vmem:[%s1007_s5 + $0x138] sm:$0xff] %v692_v60  ;;  %v546_v1 = vmul.f32 %v984_v26, %v357_v63  ;;  %v582_v2 = vmul.f32 %v984_v26, %v417_v0  ;;  %v359_v3 = vpop.f32.mrb[5].mxu0  ;;  %v419_v5 = vpop.f32.mrb[5].mxu1 }
  0xf1   : > { %705 = vst [vmem:[%s1007_s5 + $0x20] sm:$0xff] %v657_v61  ;;  %741 = vst [vmem:[%s1007_s5 + $0x140] sm:$0xff] %v693_v62  ;;  %v547_v7 = vmul.f32 %v986_v27, %v359_v3  ;;  %v583_v8 = vmul.f32 %v986_v27, %v419_v5  ;;  %v361_v9 = vpop.f32.mrb[6].mxu0  ;;  %v421_v10 = vpop.f32.mrb[6].mxu1 }
  0xf2   : > { %v611_v11 = vadd.f32 %v989_v28, %v546_v1  ;;  %v647_v12 = vadd.f32 %v989_v28, %v582_v2  ;;  %v549_v13 = vmul.f32 %v984_v26, %v361_v9  ;;  %v585_v14 = vmul.f32 %v984_v26, %v421_v10  ;;  %v363_v15 = vpop.f32.mrb[7].mxu0  ;;  %v423_v16 = vpop.f32.mrb[7].mxu1 }
  0xf3   : > { %v612_v17 = vadd.f32 %v992_v29, %v547_v7  ;;  %v648_v18 = vadd.f32 %v992_v29, %v583_v8  ;;  %v550_v19 = vmul.f32 %v986_v27, %v363_v15  ;;  %v586_v20 = vmul.f32 %v986_v27, %v423_v16 }
  0xf4   : > { %v659_v21 = vmax.f32 %v611_v11, 0.0  ;;  %v695_v22 = vmax.f32 %v647_v12, 0.0  ;;  %v614_v23 = vadd.f32 %v989_v28, %v549_v13  ;;  %v650_v24 = vadd.f32 %v989_v28, %v585_v14 }
  0xf5   : > { %v660_v30 = vmax.f32 %v612_v17, 0.0  ;;  %v696_v31 = vmax.f32 %v648_v18, 0.0  ;;  %v615_v32 = vadd.f32 %v992_v29, %v550_v19  ;;  %v651_v33 = vadd.f32 %v992_v29, %v586_v20 }
  0xf6   : > { %707 = vst [vmem:[%s1007_s5 + $0x30] sm:$0xff] %v659_v21  ;;  %743 = vst [vmem:[%s1007_s5 + $0x150] sm:$0xff] %v695_v22  ;;  %v662_v35 = vmax.f32 %v614_v23, 0.0  ;;  %v698_v37 = vmax.f32 %v650_v24, 0.0 }
  0xf7   : > { %708 = vst [vmem:[%s1007_s5 + $0x38] sm:$0xff] %v660_v30  ;;  %744 = vst [vmem:[%s1007_s5 + $0x158] sm:$0xff] %v696_v31  ;;  %v663_v38 = vmax.f32 %v615_v32, 0.0  ;;  %v699_v39 = vmax.f32 %v651_v33, 0.0  ;;  %v367_v40 = vpop.f32.mrb[8].mxu0  ;;  %v856_v41 = vpop.f32.mrb[8].mxu1 }
  0xf8   : > { %710 = vst [vmem:[%s1007_s5 + $0x48] sm:$0xff] %v662_v35  ;;  %746 = vst [vmem:[%s1007_s5 + $0x168] sm:$0xff] %v698_v37  ;;  %v552_v42 = vmul.f32 %v984_v26, %v367_v40  ;;  %v548_v4 = vmul.f32 %v856_v41, %v1027_v6  ;;  %v369_v25 = vpop.f32.mrb[9].mxu0  ;;  %v460_v36 = vpop.f32.mrb[9].mxu1 }
  0xf9   : > { %711 = vst [vmem:[%s1007_s5 + $0x50] sm:$0xff] %v663_v38  ;;  %747 = vst [vmem:[%s1007_s5 + $0x170] sm:$0xff] %v699_v39  ;;  %v553_v43 = vmul.f32 %v986_v27, %v369_v25  ;;  %v542_v44 = vmul.f32 %v1027_v6, %v460_v36  ;;  %v371_v45 = vpop.f32.mrb[10].mxu0  ;;  %v857_v46 = vpop.f32.mrb[10].mxu1 }
  0xfa   : > { %v617_v47 = vadd.f32 %v989_v28, %v552_v42  ;;  %v613_v48 = vadd.f32 %v1048_v34, %v548_v4  ;;  %v555_v49 = vmul.f32 %v984_v26, %v371_v45  ;;  %v551_v50 = vmul.f32 %v857_v46, %v1027_v6  ;;  %v373_v51 = vpop.f32.mrb[11].mxu0  ;;  %v463_v52 = vpop.f32.mrb[11].mxu1 }
  0xfb   : > { %v618_v53 = vadd.f32 %v992_v29, %v553_v43  ;;  %v607_v54 = vadd.f32 %v1048_v34, %v542_v44  ;;  %v556_v55 = vmul.f32 %v986_v27, %v373_v51  ;;  %v545_v56 = vmul.f32 %v1027_v6, %v463_v52 }
  0xfc   : > { %v665_v57 = vmax.f32 %v617_v47, 0.0  ;;  %v661_v58 = vmax.f32 %v613_v48, 0.0  ;;  %v620_v59 = vadd.f32 %v989_v28, %v555_v49  ;;  %v616_v60 = vadd.f32 %v1048_v34, %v551_v50 }
  0xfd   : > { %v666_v61 = vmax.f32 %v618_v53, 0.0  ;;  %v655_v62 = vmax.f32 %v607_v54, 0.0  ;;  %v621_v63 = vadd.f32 %v992_v29, %v556_v55  ;;  %v610_v0 = vadd.f32 %v1048_v34, %v545_v56 }
  0xfe   : > { %713 = vst [vmem:[%s1007_s5 + $0x60] sm:$0xff] %v665_v57  ;;  %709 = vst [vmem:[%s1007_s5 + $0x40] sm:$0xff] %v661_v58  ;;  %v668_v1 = vmax.f32 %v620_v59, 0.0  ;;  %v664_v2 = vmax.f32 %v616_v60, 0.0 }
  0xff   : > { %714 = vst [vmem:[%s1007_s5 + $0x68] sm:$0xff] %v666_v61  ;;  %703 = vst [vmem:[%s1007_s5 + $0x10] sm:$0xff] %v655_v62  ;;  %v669_v3 = vmax.f32 %v621_v63, 0.0  ;;  %v658_v5 = vmax.f32 %v610_v0, 0.0  ;;  %v377_v7 = vpop.f32.mrb[12].mxu0  ;;  %v860_v8 = vpop.f32.mrb[12].mxu1 }
 0x100   : > { %716 = vst [vmem:[%s1007_s5 + $0x78] sm:$0xff] %v668_v1  ;;  %712 = vst [vmem:[%s1007_s5 + $0x58] sm:$0xff] %v664_v2  ;;  %v558_v9 = vmul.f32 %v984_v26, %v377_v7  ;;  %v560_v10 = vmul.f32 %v860_v8, %v1027_v6  ;;  %v379_v11 = vpop.f32.mrb[13].mxu0  ;;  %v476_v12 = vpop.f32.mrb[13].mxu1 }
 0x101   : > { %717 = vst [vmem:[%s1007_s5 + $0x80] sm:$0xff] %v669_v3  ;;  %706 = vst [vmem:[%s1007_s5 + $0x28] sm:$0xff] %v658_v5  ;;  %v559_v13 = vmul.f32 %v986_v27, %v379_v11  ;;  %v554_v14 = vmul.f32 %v1027_v6, %v476_v12  ;;  %v381_v15 = vpop.f32.mrb[14].mxu0  ;;  %v861_v16 = vpop.f32.mrb[14].mxu1 }
 0x102   : > { %v623_v17 = vadd.f32 %v989_v28, %v558_v9  ;;  %v625_v18 = vadd.f32 %v1048_v34, %v560_v10  ;;  %v561_v19 = vmul.f32 %v984_v26, %v381_v15  ;;  %v563_v20 = vmul.f32 %v861_v16, %v1027_v6  ;;  %v383_v21 = vpop.f32.mrb[15].mxu0  ;;  %v479_v22 = vpop.f32.mrb[15].mxu1 }
 0x103   : > { %v624_v23 = vadd.f32 %v992_v29, %v559_v13  ;;  %v619_v24 = vadd.f32 %v1048_v34, %v554_v14  ;;  %v562_v30 = vmul.f32 %v986_v27, %v383_v21  ;;  %v557_v31 = vmul.f32 %v1027_v6, %v479_v22 }
 0x104   : > { %v671_v32 = vmax.f32 %v623_v17, 0.0  ;;  %v673_v33 = vmax.f32 %v625_v18, 0.0  ;;  %v626_v35 = vadd.f32 %v989_v28, %v561_v19  ;;  %v628_v37 = vadd.f32 %v1048_v34, %v563_v20 }
 0x105   : > { %v672_v38 = vmax.f32 %v624_v23, 0.0  ;;  %v667_v39 = vmax.f32 %v619_v24, 0.0  ;;  %v627_v40 = vadd.f32 %v992_v29, %v562_v30  ;;  %v622_v41 = vadd.f32 %v1048_v34, %v557_v31 }
 0x106   : > { %719 = vst [vmem:[%s1007_s5 + $0x90] sm:$0xff] %v671_v32  ;;  %721 = vst [vmem:[%s1007_s5 + $0xa0] sm:$0xff] %v673_v33  ;;  %v674_v42 = vmax.f32 %v626_v35, 0.0  ;;  %v676_v4 = vmax.f32 %v628_v37, 0.0 }
 0x107   : > { %720 = vst [vmem:[%s1007_s5 + $0x98] sm:$0xff] %v672_v38  ;;  %715 = vst [vmem:[%s1007_s5 + $0x70] sm:$0xff] %v667_v39  ;;  %v675_v25 = vmax.f32 %v627_v40, 0.0  ;;  %v670_v36 = vmax.f32 %v622_v41, 0.0  ;;  %v387_v43 = vpop.f32.mrb[16].mxu0  ;;  %v864_v44 = vpop.f32.mrb[16].mxu1 }
 0x108   : > { %722 = vst [vmem:[%s1007_s5 + $0xa8] sm:$0xff] %v674_v42  ;;  %724 = vst [vmem:[%s1007_s5 + $0xb8] sm:$0xff] %v676_v4  ;;  %v564_v45 = vmul.f32 %v984_v26, %v387_v43  ;;  %v572_v46 = vmul.f32 %v864_v44, %v1027_v6  ;;  %v389_v47 = vpop.f32.mrb[17].mxu0  ;;  %v492_v48 = vpop.f32.mrb[17].mxu1 }
 0x109   : > { %723 = vst [vmem:[%s1007_s5 + $0xb0] sm:$0xff] %v675_v25  ;;  %718 = vst [vmem:[%s1007_s5 + $0x88] sm:$0xff] %v670_v36  ;;  %v565_v49 = vmul.f32 %v986_v27, %v389_v47  ;;  %v566_v50 = vmul.f32 %v1027_v6, %v492_v48  ;;  %v391_v51 = vpop.f32.mrb[18].mxu0  ;;  %v865_v52 = vpop.f32.mrb[18].mxu1 }
 0x10a   : > { %v629_v53 = vadd.f32 %v989_v28, %v564_v45  ;;  %v637_v54 = vadd.f32 %v1048_v34, %v572_v46  ;;  %v567_v55 = vmul.f32 %v984_v26, %v391_v51  ;;  %v575_v56 = vmul.f32 %v865_v52, %v1027_v6  ;;  %v393_v57 = vpop.f32.mrb[19].mxu0  ;;  %v495_v58 = vpop.f32.mrb[19].mxu1 }
 0x10b   : > { %v630_v59 = vadd.f32 %v992_v29, %v565_v49  ;;  %v631_v60 = vadd.f32 %v1048_v34, %v566_v50  ;;  %v568_v61 = vmul.f32 %v986_v27, %v393_v57  ;;  %v569_v62 = vmul.f32 %v1027_v6, %v495_v58 }
 0x10c   : > { %v677_v63 = vmax.f32 %v629_v53, 0.0  ;;  %v685_v0 = vmax.f32 %v637_v54, 0.0  ;;  %v632_v1 = vadd.f32 %v989_v28, %v567_v55  ;;  %v640_v2 = vadd.f32 %v1048_v34, %v575_v56 }
 0x10d   : > { %v678_v3 = vmax.f32 %v630_v59, 0.0  ;;  %v679_v5 = vmax.f32 %v631_v60, 0.0  ;;  %v633_v7 = vadd.f32 %v992_v29, %v568_v61  ;;  %v634_v8 = vadd.f32 %v1048_v34, %v569_v62 }
 0x10e   : > { %725 = vst [vmem:[%s1007_s5 + $0xc0] sm:$0xff] %v677_v63  ;;  %733 = vst [vmem:[%s1007_s5 + $0x100] sm:$0xff] %v685_v0  ;;  %v680_v9 = vmax.f32 %v632_v1, 0.0  ;;  %v688_v10 = vmax.f32 %v640_v2, 0.0 }
 0x10f   : > { %726 = vst [vmem:[%s1007_s5 + $0xc8] sm:$0xff] %v678_v3  ;;  %727 = vst [vmem:[%s1007_s5 + $0xd0] sm:$0xff] %v679_v5  ;;  %v681_v11 = vmax.f32 %v633_v7, 0.0  ;;  %v682_v12 = vmax.f32 %v634_v8, 0.0  ;;  %v397_v13 = vpop.f32.mrb[20].mxu0  ;;  %v868_v14 = vpop.f32.mrb[20].mxu1 }
 0x110   : > { %728 = vst [vmem:[%s1007_s5 + $0xd8] sm:$0xff] %v680_v9  ;;  %736 = vst [vmem:[%s1007_s5 + $0x118] sm:$0xff] %v688_v10  ;;  %v570_v15 = vmul.f32 %v984_v26, %v397_v13  ;;  %v584_v16 = vmul.f32 %v868_v14, %v1027_v6  ;;  %v399_v17 = vpop.f32.mrb[21].mxu0  ;;  %v508_v18 = vpop.f32.mrb[21].mxu1 }
 0x111   : > { %729 = vst [vmem:[%s1007_s5 + $0xe0] sm:$0xff] %v681_v11  ;;  %730 = vst [vmem:[%s1007_s5 + $0xe8] sm:$0xff] %v682_v12  ;;  %v571_v19 = vmul.f32 %v986_v27, %v399_v17  ;;  %v578_v20 = vmul.f32 %v1027_v6, %v508_v18  ;;  %v401_v21 = vpop.f32.mrb[22].mxu0  ;;  %v869_v22 = vpop.f32.mrb[22].mxu1 }
 0x112   : > { %v635_v23 = vadd.f32 %v989_v28, %v570_v15  ;;  %v649_v24 = vadd.f32 %v1048_v34, %v584_v16  ;;  %v573_v30 = vmul.f32 %v984_v26, %v401_v21  ;;  %v587_v31 = vmul.f32 %v869_v22, %v1027_v6  ;;  %v403_v32 = vpop.f32.mrb[23].mxu0  ;;  %v511_v33 = vpop.f32.mrb[23].mxu1 }
 0x113   : > { %v636_v35 = vadd.f32 %v992_v29, %v571_v19  ;;  %v643_v37 = vadd.f32 %v1048_v34, %v578_v20  ;;  %v574_v38 = vmul.f32 %v986_v27, %v403_v32  ;;  %v581_v39 = vmul.f32 %v1027_v6, %v511_v33 }
 0x114   : > { %v683_v40 = vmax.f32 %v635_v23, 0.0  ;;  %v697_v41 = vmax.f32 %v649_v24, 0.0  ;;  %v638_v26 = vadd.f32 %v989_v28, %v573_v30  ;;  %v652_v42 = vadd.f32 %v1048_v34, %v587_v31 }
 0x115   : > { %v684_v4 = vmax.f32 %v636_v35, 0.0  ;;  %v691_v25 = vmax.f32 %v643_v37, 0.0  ;;  %v639_v36 = vadd.f32 %v992_v29, %v574_v38  ;;  %v646_v43 = vadd.f32 %v1048_v34, %v581_v39 }
 0x116   : > { %731 = vst [vmem:[%s1007_s5 + $0xf0] sm:$0xff] %v683_v40  ;;  %745 = vst [vmem:[%s1007_s5 + $0x160] sm:$0xff] %v697_v41  ;;  %v686_v27 = vmax.f32 %v638_v26, 0.0  ;;  %v700_v6 = vmax.f32 %v652_v42, 0.0 }
 0x117   : > { %732 = vst [vmem:[%s1007_s5 + $0xf8] sm:$0xff] %v684_v4  ;;  %739 = vst [vmem:[%s1007_s5 + $0x130] sm:$0xff] %v691_v25  ;;  %v687_v44 = vmax.f32 %v639_v36, 0.0  ;;  %v694_v45 = vmax.f32 %v646_v43, 0.0 }
 0x118   : > { %734 = vst [vmem:[%s1007_s5 + $0x108] sm:$0xff] %v686_v27  ;;  %748 = vst [vmem:[%s1007_s5 + $0x178] sm:$0xff] %v700_v6 }
 0x119   : > { %735 = vst [vmem:[%s1007_s5 + $0x110] sm:$0xff] %v687_v44  ;;  %742 = vst [vmem:[%s1007_s5 + $0x148] sm:$0xff] %v694_v45 }
 0x11a PF: > { %s14_s15 = sadd.s32 1, %s899_s15  }
 0x11b   : > { %p11_p4 = scmp.ge.s32.totalorder %s14_s15, 6  }
 0x11d   :  { %13 = sbr.rel (!%p11_p4) target bundleno = 1 (0x1), region = 66 }

// kernel: inception_d.7
= control target key start
LH: loop header
LB: loop body
LE: loop exit
PB: predicated region body
PF: predicated region fallthrough
CT: control target
= control target key end

     0   :  { %s3525_s15 = smov 0   ;;  %s4262_s0 = inlined_call_operand.vmem [shape: bf16[512,1344], index: 0, kind: input, shape index: {}]   ;;  %s4263_s1 = inlined_call_operand.vmem [shape: bf16[1344,256], index: 1, kind: input, shape index: {}]   ;;  %s4264_s2 = inlined_call_operand.vmem [shape: f32[1,256], index: 2, kind: input, shape index: {}]   ;;  %s4265_s3 = inlined_call_operand.vmem [shape: f32[1,256], index: 3, kind: input, shape index: {}]   ;;  %s4266_s4 = inlined_call_operand.vmem [shape: f32[512,256], index: 4, kind: output, shape index: {}]  }
   0x1 LB: > { %s2664_s16 = sadd.s32 4294967295, %s3497_s15   ;;  %p2668_p0 = scmp.ge.s32.totalorder %s3497_s15, 1  ;;  %s3497_s15 = sphi %s3525_s15, %s14_s15  }
   0x2   : > { %p164_p1 = scmp.lt.s32.totalorder %s3497_s15, 5 }
   0x4   : > { %p165_p2 = pnand %p2668_p0, %p164_p1 }
   0x5   : > { %v3111_v0 = vld [vmem:[%s4263_s1 + $0x4] ss:$8 sps:$4 sm:$0xff] (!%p165_p2)   ;;  %v3115_v2 = vld [vmem:[%s4263_s1] ss:$8 sps:$4 sm:$0xff] (!%p165_p2)   ;;  %v3117_v4 = vld [vmem:[%s4263_s1 + $0x14] ss:$8 sps:$4 sm:$0xff] (!%p165_p2)  }
   0x6   : > { %168 = sbr.rel (%p165_p2) target bundleno = 479 (0x1df), region = 36  ;;  %v3113_v1 = vld [vmem:[%s4263_s1 + $0x304] ss:$8 sps:$4 sm:$0xff] (!%p165_p2)   ;;  %1776 = vmatprep.subr.bf16.mxu1 (!%p165_p2), %v3111_v0  ;;  %v3116_v3 = vld [vmem:[%s4263_s1 + $0x300] ss:$8 sps:$4 sm:$0xff] (!%p165_p2)   ;;  %s2669_s29 = sshll.u32 (!%p165_p2), %s2664_s16, 4 }
   0x7   : > { %2115 = vmatprep.subr.bf16.mxu0 (!%p165_p2), %v3113_v1  ;;  %1777 = vmatpush1.bf16.msra.mxu1 (!%p165_p2), %v3115_v2  ;;  %v3119_v5 = vld [vmem:[%s4263_s1 + $0x314] ss:$8 sps:$4 sm:$0xff] (!%p165_p2)   ;;  %v3121_v6 = vld [vmem:[%s4263_s1 + $0x10] ss:$8 sps:$4 sm:$0xff] (!%p165_p2)   ;;  %v3123_v8 = vld [vmem:[%s4263_s1 + $0x24] ss:$8 sps:$4 sm:$0xff] (!%p165_p2)  }
   0x8   : > { %2116 = vmatpush1.bf16.msra.mxu0 (!%p165_p2), %v3116_v3  ;;  %1778 = vmatprep.subr.bf16.mxu1 (!%p165_p2), %v3117_v4  ;;  %v3122_v7 = vld [vmem:[%s4263_s1 + $0x310] ss:$8 sps:$4 sm:$0xff] (!%p165_p2)   ;;  %v3125_v9 = vld [vmem:[%s4263_s1 + $0x324] ss:$8 sps:$4 sm:$0xff] (!%p165_p2)   ;;  %v3127_v10 = vld [vmem:[%s4263_s1 + $0x20] ss:$8 sps:$4 sm:$0xff] (!%p165_p2)  }
   0x9   : > { %2117 = vmatprep.subr.bf16.mxu0 (!%p165_p2), %v3119_v5  ;;  %v3128_v11 = vld [vmem:[%s4263_s1 + $0x320] ss:$8 sps:$4 sm:$0xff] (!%p165_p2)   ;;  %v3129_v12 = vld [vmem:[%s4263_s1 + $0x34] ss:$8 sps:$4 sm:$0xff] (!%p165_p2)   ;;  %v3133_v14 = vld [vmem:[%s4263_s1 + $0x30] ss:$8 sps:$4 sm:$0xff] (!%p165_p2)  }
   0xa   : > { %v3131_v13 = vld [vmem:[%s4263_s1 + $0x334] ss:$8 sps:$4 sm:$0xff] (!%p165_p2)   ;;  %v3134_v15 = vld [vmem:[%s4263_s1 + $0x330] ss:$8 sps:$4 sm:$0xff] (!%p165_p2)   ;;  %v3135_v16 = vld [vmem:[%s4263_s1 + $0x44] ss:$8 sps:$4 sm:$0xff] (!%p165_p2)  }
   0xb   : > { %1779 = vmatpush1.bf16.msra.mxu1 (!%p165_p2), %v3121_v6  ;;  %v3137_v17 = vld [vmem:[%s4263_s1 + $0x344] ss:$8 sps:$4 sm:$0xff] (!%p165_p2)   ;;  %v3139_v18 = vld [vmem:[%s4263_s1 + $0x40] ss:$8 sps:$4 sm:$0xff] (!%p165_p2)   ;;  %v3141_v20 = vld [vmem:[%s4263_s1 + $0x54] ss:$8 sps:$4 sm:$0xff] (!%p165_p2)  }
   0xc   : > { %2118 = vmatpush1.bf16.msra.mxu0 (!%p165_p2), %v3122_v7  ;;  %1780 = vmatprep.subr.bf16.mxu1 (!%p165_p2), %v3123_v8  ;;  %v3140_v19 = vld [vmem:[%s4263_s1 + $0x340] ss:$8 sps:$4 sm:$0xff] (!%p165_p2)   ;;  %v3143_v21 = vld [vmem:[%s4263_s1 + $0x354] ss:$8 sps:$4 sm:$0xff] (!%p165_p2)   ;;  %v3145_v22 = vld [vmem:[%s4263_s1 + $0x50] ss:$8 sps:$4 sm:$0xff] (!%p165_p2)  }
   0xd   : > { %2119 = vmatprep.subr.bf16.mxu0 %v3125_v9  ;;  %v3146_v23 = vld [vmem:[%s4263_s1 + $0x350] ss:$8 sps:$4 sm:$0xff]   ;;  %v3147_v24 = vld [vmem:[%s4263_s1 + $0x64] ss:$8 sps:$4 sm:$0xff]   ;;  %v3151_v26 = vld [vmem:[%s4263_s1 + $0x60] ss:$8 sps:$4 sm:$0xff]  }
   0xe   : > { %v3149_v25 = vld [vmem:[%s4263_s1 + $0x364] ss:$8 sps:$4 sm:$0xff]   ;;  %v3152_v27 = vld [vmem:[%s4263_s1 + $0x360] ss:$8 sps:$4 sm:$0xff]   ;;  %v3153_v28 = vld [vmem:[%s4263_s1 + $0x74] ss:$8 sps:$4 sm:$0xff]  }
   0xf   : > { %1781 = vmatpush1.bf16.msra.mxu1 %v3127_v10  ;;  %v3155_v29 = vld [vmem:[%s4263_s1 + $0x374] ss:$8 sps:$4 sm:$0xff]   ;;  %v3157_v30 = vld [vmem:[%s4263_s1 + $0x70] ss:$8 sps:$4 sm:$0xff]   ;;  %v3159_v32 = vld [vmem:[%s4263_s1 + $0x84] ss:$8 sps:$4 sm:$0xff]  }
  0x10   : > { %2120 = vmatpush1.bf16.msra.mxu0 %v3128_v11  ;;  %1782 = vmatprep.subr.bf16.mxu1 %v3129_v12  ;;  %v3158_v31 = vld [vmem:[%s4263_s1 + $0x370] ss:$8 sps:$4 sm:$0xff]   ;;  %p193_p3 = scmp.lt.s32.totalorder %s2669_s29, 63  ;;  %v3161_v33 = vld [vmem:[%s4263_s1 + $0x384] ss:$8 sps:$4 sm:$0xff]   ;;  %vm1751_vm0 = vcmask 523264  }
  0x11   : > { %2121 = vmatprep.subr.bf16.mxu0 %v3131_v13  ;;  %v3163_v34 = vld [vmem:[%s4263_s1 + $0x80] ss:$8 sps:$4 sm:$0xff]   ;;  %v3165_v36 = vld [vmem:[%s4263_s1 + $0x94] ss:$8 sps:$4 sm:$0xff]   ;;  %v3169_v38 = vld [vmem:[%s4263_s1 + $0x90] ss:$8 sps:$4 sm:$0xff]  }
  0x12   : > { %v3164_v35 = vld [vmem:[%s4263_s1 + $0x380] ss:$8 sps:$4 sm:$0xff]   ;;  %s4268_s29 = smov (!%p193_p3, %s2669_s29), 63  ;;  %v3167_v37 = vld [vmem:[%s4263_s1 + $0x394] ss:$8 sps:$4 sm:$0xff]  }
  0x13   : > { %1783 = vmatpush1.bf16.msra.mxu1 %v3133_v14  ;;  %v3170_v39 = vld [vmem:[%s4263_s1 + $0x390] ss:$8 sps:$4 sm:$0xff]   ;;  %v3171_v40 = vld [vmem:[%s4263_s1 + $0xa4] ss:$8 sps:$4 sm:$0xff]   ;;  %s3101_s27 = smul.u32 44, %s4268_s29 }
  0x14   : > { %2122 = vmatpush1.bf16.msra.mxu0 %v3134_v15  ;;  %1784 = vmatprep.subr.bf16.mxu1 %v3135_v16  ;;  %v3173_v41 = vld [vmem:[%s4263_s1 + $0x3a4] ss:$8 sps:$4 sm:$0xff]   ;;  %v3175_v42 = vld [vmem:[%s4263_s1 + $0xa0] ss:$8 sps:$4 sm:$0xff]   ;;  %v3177_v44 = vld [vmem:[%s4263_s1 + $0xb4] ss:$8 sps:$4 sm:$0xff]  }
  0x15   : > { %2123 = vmatprep.subr.bf16.mxu0 %v3137_v17  ;;  %v3176_v43 = vld [vmem:[%s4263_s1 + $0x3a0] ss:$8 sps:$4 sm:$0xff]   ;;  %s3676_s12 = scalar_lea.vmem %s4262_s0, %s3101_s27  ;;  %v3179_v45 = vld [vmem:[%s4263_s1 + $0x3b4] ss:$8 sps:$4 sm:$0xff]   ;;  %v3181_v46 = vld [vmem:[%s4263_s1 + $0xb0] ss:$8 sps:$4 sm:$0xff]  }
  0x16   : > { %v3182_v47 = vld [vmem:[%s4263_s1 + $0x3b0] ss:$8 sps:$4 sm:$0xff]   ;;  %v3183_v48 = vld [vmem:[%s4263_s1 + $0xc4] ss:$8 sps:$4 sm:$0xff]   ;;  %v3212_v51 = vld [vmem:[%s3676_s12 + $0x1c] ss:$44 sps:$4 sm:$0xff]  }
  0x17   : > { %1785 = vmatpush1.bf16.msra.mxu1 %v3139_v18  ;;  %v3209_v49 = vld [vmem:[%s3676_s12 + $0x4] ss:$44 sps:$4 sm:$0xff]   ;;  %v3187_v52 = vld [vmem:[%s4263_s1 + $0xc0] ss:$8 sps:$4 sm:$0xff]   ;;  %2147 = vmatprep.mubr.bf16.mxu0 %v3212_v51  ;;  %v3189_v54 = vld [vmem:[%s4263_s1 + $0xd4] ss:$8 sps:$4 sm:$0xff]  }
  0x18   : > { %2124 = vmatpush1.bf16.msra.mxu0 %v3140_v19  ;;  %1786 = vmatprep.subr.bf16.mxu1 %v3141_v20  ;;  %v3185_v50 = vld [vmem:[%s4263_s1 + $0x3c4] ss:$8 sps:$4 sm:$0xff]   ;;  %v3188_v53 = vld [vmem:[%s4263_s1 + $0x3c0] ss:$8 sps:$4 sm:$0xff]   ;;  %v3191_v55 = vld [vmem:[%s4263_s1 + $0x3d4] ss:$8 sps:$4 sm:$0xff]  }
  0x19   : > { %2125 = vmatprep.subr.bf16.mxu0 %v3143_v21  ;;  %1808 = vmatprep.mubr.bf16.mxu1 %v3209_v49  ;;  %v3193_v56 = vld [vmem:[%s4263_s1 + $0xd0] ss:$8 sps:$4 sm:$0xff]   ;;  %v3195_v58 = vld [vmem:[%s4263_s1 + $0xe4] ss:$8 sps:$4 sm:$0xff]   ;;  %v3199_v60 = vld [vmem:[%s4263_s1 + $0xe0] ss:$8 sps:$4 sm:$0xff]  }
  0x1a   : > { %v3194_v57 = vld [vmem:[%s4263_s1 + $0x3d0] ss:$8 sps:$4 sm:$0xff]   ;;  %v3197_v59 = vld [vmem:[%s4263_s1 + $0x3e4] ss:$8 sps:$4 sm:$0xff]   ;;  %v3200_v61 = vld [vmem:[%s4263_s1 + $0x3e0] ss:$8 sps:$4 sm:$0xff]  }
  0x1b   : > { %1787 = vmatpush1.bf16.msra.mxu1 %v3145_v22  ;;  %v3201_v62 = vld [vmem:[%s4263_s1 + $0xf4] ss:$8 sps:$4 sm:$0xff]   ;;  %v3205_v0 = vld [vmem:[%s4263_s1 + $0xf0] ss:$8 sps:$4 sm:$0xff]   ;;  %v3215_v2 = vld [vmem:[%s4263_s1 + $0x104] ss:$8 sps:$4 sm:$0xff]  }
  0x1c   : > { %2126 = vmatpush1.bf16.msra.mxu0 %v3146_v23  ;;  %1788 = vmatprep.subr.bf16.mxu1 %v3147_v24  ;;  %v3203_v63 = vld [vmem:[%s4263_s1 + $0x3f4] ss:$8 sps:$4 sm:$0xff]   ;;  %v3206_v1 = vld [vmem:[%s4263_s1 + $0x3f0] ss:$8 sps:$4 sm:$0xff]   ;;  %v3218_v3 = vld [vmem:[%s4263_s1 + $0x404] ss:$8 sps:$4 sm:$0xff]  }
  0x1d   : > { %2127 = vmatprep.subr.bf16.mxu0 %v3149_v25  ;;  %v3207_v4 = vld [vmem:[%s3676_s12] ss:$44 sps:$4 sm:$0xff]   ;;  %v3210_v5 = vld [vmem:[%s3676_s12 + $0x18] ss:$44 sps:$4 sm:$0xff]   ;;  %v3221_v8 = vld [vmem:[%s4263_s1 + $0x114] ss:$8 sps:$4 sm:$0xff]  }
  0x1e   : > { %v3213_v6 = vld [vmem:[%s4263_s1 + $0x100] ss:$8 sps:$4 sm:$0xff]   ;;  %v3224_v9 = vld [vmem:[%s4263_s1 + $0x414] ss:$8 sps:$4 sm:$0xff]   ;;  %v3219_v12 = vld [vmem:[%s4263_s1 + $0x110] ss:$8 sps:$4 sm:$0xff]  }
  0x1f   : > { %1789 = vmatpush1.bf16.msra.mxu1 %v3151_v26  ;;  %v3216_v7 = vld [vmem:[%s4263_s1 + $0x400] ss:$8 sps:$4 sm:$0xff]   ;;  %v3222_v13 = vld [vmem:[%s4263_s1 + $0x410] ss:$8 sps:$4 sm:$0xff]   ;;  %v3232_v14 = vld [vmem:[%s4263_s1 + $0x124] ss:$8 sps:$4 sm:$0xff]  }
  0x20   : > { %2128 = vmatpush1.bf16.msra.mxu0 %v3152_v27  ;;  %1790 = vmatprep.subr.bf16.mxu1 %v3153_v28  ;;  %v3225_v10 = vld [vmem:[%s3676_s12 + $0x5c] ss:$44 sps:$4 sm:$0xff]   ;;  %v3227_v11 = vld [vmem:[%s3676_s12 + $0x74] ss:$44 sps:$4 sm:$0xff]   ;;  %v3236_v15 = vld [vmem:[%s4263_s1 + $0x424] ss:$8 sps:$4 sm:$0xff]  }
  0x21   : > { %2129 = vmatprep.subr.bf16.mxu0 %v3155_v29  ;;  %v3229_v16 = vld [vmem:[%s3676_s12 + $0x58] ss:$44 sps:$4 sm:$0xff]   ;;  %v3230_v17 = vld [vmem:[%s4263_s1 + $0x120] ss:$8 sps:$4 sm:$0xff]   ;;  %v3233_v18 = vld [vmem:[%s3676_s12 + $0x70] ss:$44 sps:$4 sm:$0xff]  }
  0x22   : > { %v3234_v19 = vld [vmem:[%s4263_s1 + $0x420] ss:$8 sps:$4 sm:$0xff]   ;;  %v3239_v20 = vld [vmem:[%s4263_s1 + $0x134] ss:$8 sps:$4 sm:$0xff]   ;;  %v3245_v23 = vld [vmem:[%s3676_s12 + $0xcc] ss:$44 sps:$4 sm:$0xff]  }
  0x23   : > { %1791 = vmatpush1.bf16.msra.mxu1 %v3157_v30  ;;  %v3242_v21 = vld [vmem:[%s4263_s1 + $0x434] ss:$8 sps:$4 sm:$0xff]   ;;  %v3237_v24 = vld [vmem:[%s4263_s1 + $0x130] ss:$8 sps:$4 sm:$0xff]   ;;  %v3250_v26 = vld [vmem:[%s4263_s1 + $0x144] ss:$8 sps:$4 sm:$0xff]  }
  0x24   : > { %2130 = vmatpush1.bf16.msra.mxu0 %v3158_v31  ;;  %1792 = vmatprep.subr.bf16.mxu1 %v3159_v32  ;;  %v3243_v22 = vld [vmem:[%s3676_s12 + $0xb4] ss:$44 sps:$4 sm:$0xff]   ;;  %v3240_v25 = vld [vmem:[%s4263_s1 + $0x430] ss:$8 sps:$4 sm:$0xff]   ;;  %v3254_v27 = vld [vmem:[%s4263_s1 + $0x444] ss:$8 sps:$4 sm:$0xff]  }
  0x25   : > { %2131 = vmatprep.subr.bf16.mxu0 %v3161_v33  ;;  %v3247_v28 = vld [vmem:[%s3676_s12 + $0xb0] ss:$44 sps:$4 sm:$0xff]   ;;  %v3248_v29 = vld [vmem:[%s4263_s1 + $0x140] ss:$8 sps:$4 sm:$0xff]   ;;  %v3290_v51 = vld [vmem:[%s4263_s1 + $0x484] ss:$8 sps:$4 sm:$0xff]  }
  0x26   : > { %v3251_v30 = vld [vmem:[%s3676_s12 + $0xc8] ss:$44 sps:$4 sm:$0xff]   ;;  %v3276_v49 = vld [vmem:[%s4263_s1 + $0x470] ss:$8 sps:$4 sm:$0xff]  }
  0x27   : > { %1793 = vmatpush1.bf16.msra.mxu1 %v3163_v34  ;;  %v3252_v31 = vld [vmem:[%s4263_s1 + $0x440] ss:$8 sps:$4 sm:$0xff]   ;;  %v3257_v32 = vld [vmem:[%s4263_s1 + $0x154] ss:$8 sps:$4 sm:$0xff]   ;;  %v3261_v34 = vld [vmem:[%s3676_s12 + $0x10c] ss:$44 sps:$4 sm:$0xff]  }
  0x28   : > { %2132 = vmatpush1.bf16.msra.mxu0 %v3164_v35  ;;  %1794 = vmatprep.subr.bf16.mxu1 %v3165_v36  ;;  %v3260_v33 = vld [vmem:[%s4263_s1 + $0x454] ss:$8 sps:$4 sm:$0xff]   ;;  %v3263_v35 = vld [vmem:[%s3676_s12 + $0x124] ss:$44 sps:$4 sm:$0xff]  }
  0x29   : > { %2133 = vmatprep.subr.bf16.mxu0 %v3167_v37  ;;  %v3255_v36 = vld [vmem:[%s4263_s1 + $0x150] ss:$8 sps:$4 sm:$0xff]  }
  0x2a   : > { %v3258_v37 = vld [vmem:[%s4263_s1 + $0x450] ss:$8 sps:$4 sm:$0xff]  }
  0x2b   : > { %1795 = vmatpush1.bf16.msra.mxu1 %v3169_v38  ;;  %v3268_v38 = vld [vmem:[%s4263_s1 + $0x164] ss:$8 sps:$4 sm:$0xff]  }
  0x2c   : > { %2134 = vmatpush1.bf16.msra.mxu0 %v3170_v39  ;;  %1796 = vmatprep.subr.bf16.mxu1 %v3171_v40  ;;  %v3272_v39 = vld [vmem:[%s4263_s1 + $0x464] ss:$8 sps:$4 sm:$0xff]   ;;  %v3265_v40 = vld [vmem:[%s3676_s12 + $0x108] ss:$44 sps:$4 sm:$0xff]  }
  0x2d   : > { %2135 = vmatprep.subr.bf16.mxu0 %v3173_v41  ;;  %v3266_v41 = vld [vmem:[%s4263_s1 + $0x160] ss:$8 sps:$4 sm:$0xff]  }
  0x2f   : > { %1797 = vmatpush1.bf16.msra.mxu1 %v3175_v42  ;;  %v3269_v42 = vld [vmem:[%s3676_s12 + $0x120] ss:$44 sps:$4 sm:$0xff]  }
  0x30   : > { %2136 = vmatpush1.bf16.msra.mxu0 %v3176_v43  ;;  %1798 = vmatprep.subr.bf16.mxu1 %v3177_v44  ;;  %v3270_v43 = vld [vmem:[%s4263_s1 + $0x460] ss:$8 sps:$4 sm:$0xff]   ;;  %v3275_v44 = vld [vmem:[%s4263_s1 + $0x174] ss:$8 sps:$4 sm:$0xff]  }
  0x31   : > { %2137 = vmatprep.subr.bf16.mxu0 %v3179_v45  ;;  %v3278_v45 = vld [vmem:[%s4263_s1 + $0x474] ss:$8 sps:$4 sm:$0xff]  }
  0x33   : > { %1799 = vmatpush1.bf16.msra.mxu1 %v3181_v46  ;;  %v3279_v46 = vld [vmem:[%s3676_s12 + $0x164] ss:$44 sps:$4 sm:$0xff]  }
  0x34   : > { %2138 = vmatpush1.bf16.msra.mxu0 %v3182_v47  ;;  %1800 = vmatprep.subr.bf16.mxu1 %v3183_v48  ;;  %v3281_v47 = vld [vmem:[%s3676_s12 + $0x17c] ss:$44 sps:$4 sm:$0xff]   ;;  %v3273_v48 = vld [vmem:[%s4263_s1 + $0x170] ss:$8 sps:$4 sm:$0xff]  }
  0x35   : > { %2139 = vmatprep.subr.bf16.mxu0 %v3185_v50  ;;  %v3286_v50 = vld [vmem:[%s4263_s1 + $0x184] ss:$8 sps:$4 sm:$0xff]  }
  0x37   : > { %1801 = vmatpush1.bf16.msra.mxu1 %v3187_v52  ;;  %v3283_v52 = vld [vmem:[%s3676_s12 + $0x160] ss:$44 sps:$4 sm:$0xff]  }
  0x38   : > { %2140 = vmatpush1.bf16.msra.mxu0 %v3188_v53  ;;  %1802 = vmatprep.subr.bf16.mxu1 %v3189_v54  ;;  %v3284_v53 = vld [vmem:[%s4263_s1 + $0x180] ss:$8 sps:$4 sm:$0xff]   ;;  %v3287_v54 = vld [vmem:[%s3676_s12 + $0x178] ss:$44 sps:$4 sm:$0xff]  }
  0x39   : > { %2141 = vmatprep.subr.bf16.mxu0 %v3191_v55  ;;  %v3288_v55 = vld [vmem:[%s4263_s1 + $0x480] ss:$8 sps:$4 sm:$0xff]  }
  0x3b   : > { %1803 = vmatpush1.bf16.msra.mxu1 %v3193_v56  ;;  %v3293_v56 = vld [vmem:[%s4263_s1 + $0x194] ss:$8 sps:$4 sm:$0xff]  }
  0x3c   : > { %2142 = vmatpush1.bf16.msra.mxu0 %v3194_v57  ;;  %1804 = vmatprep.subr.bf16.mxu1 %v3195_v58  ;;  %v3296_v57 = vld [vmem:[%s4263_s1 + $0x494] ss:$8 sps:$4 sm:$0xff]  }
  0x3d   : > { %2143 = vmatprep.subr.bf16.mxu0 %v3197_v59  ;;  %v3297_v58 = vld [vmem:[%s3676_s12 + $0x1bc] ss:$44 sps:$4 sm:$0xff]   ;;  %v3299_v59 = vld [vmem:[%s3676_s12 + $0x1d4] ss:$44 sps:$4 sm:$0xff]  }
  0x3f   : > { %1805 = vmatpush1.bf16.msra.mxu1 %v3199_v60  ;;  %v3291_v60 = vld [vmem:[%s4263_s1 + $0x190] ss:$8 sps:$4 sm:$0xff]  }
  0x40   : > { %2144 = vmatpush1.bf16.msra.mxu0 %v3200_v61  ;;  %1806 = vmatprep.subr.bf16.mxu1 %v3201_v62  ;;  %v3294_v61 = vld [vmem:[%s4263_s1 + $0x490] ss:$8 sps:$4 sm:$0xff]   ;;  %v3304_v62 = vld [vmem:[%s4263_s1 + $0x1a4] ss:$8 sps:$4 sm:$0xff]  }
  0x41   : > { %2145 = vmatprep.subr.bf16.mxu0 %v3203_v63  ;;  %v3308_v63 = vld [vmem:[%s4263_s1 + $0x4a4] ss:$8 sps:$4 sm:$0xff]  }
  0x43   : > { %1807 = vmatpush1.bf16.msra.mxu1 %v3205_v0  ;;  %v3301_v0 = vld [vmem:[%s3676_s12 + $0x1b8] ss:$44 sps:$4 sm:$0xff]  }
  0x44   : > { %2146 = vmatpush1.bf16.msra.mxu0 %v3206_v1  ;;  %1889 = vmatprep.subr.bf16.mxu1 %v3215_v2  ;;  %v3302_v1 = vld [vmem:[%s4263_s1 + $0x1a0] ss:$8 sps:$4 sm:$0xff]   ;;  %v3305_v2 = vld [vmem:[%s3676_s12 + $0x1d0] ss:$44 sps:$4 sm:$0xff]  }
  0x45   : > { %2228 = vmatprep.subr.bf16.mxu0 %v3218_v3  ;;  %v3306_v3 = vld [vmem:[%s4263_s1 + $0x4a0] ss:$8 sps:$4 sm:$0xff]  }
  0x46   : > { %1809 = vmatmul.mubr.bf16.vlgmr.msra.gmra.mrb[0].mxu1 %v3207_v4  ;;  %v3311_v4 = vld [vmem:[%s4263_s1 + $0x1b4] ss:$8 sps:$4 sm:$0xff]  }
  0x47   : > { %2148 = vmatmul.mubr.bf16.vlgmr.msra.gmra.mrb[0].mxu0 %v3210_v5  ;;  %1890 = vmatpush1.bf16.msra.mxu1 %v3213_v6  ;;  %v3314_v5 = vld [vmem:[%s4263_s1 + $0x4b4] ss:$8 sps:$4 sm:$0xff]  }
  0x48   : > { %2229 = vmatpush1.bf16.msra.mxu0 %v3216_v7  ;;  %1891 = vmatprep.subr.bf16.mxu1 %v3221_v8  ;;  %v3315_v6 = vld [vmem:[%s3676_s12 + $0x214] ss:$44 sps:$4 sm:$0xff]   ;;  %v3317_v7 = vld [vmem:[%s3676_s12 + $0x22c] ss:$44 sps:$4 sm:$0xff]  }
  0x49   : > { %2230 = vmatprep.subr.bf16.mxu0 %v3224_v9  ;;  %1818 = vmatprep.mubr.bf16.mxu1 %v3225_v10  ;;  %v3309_v8 = vld [vmem:[%s4263_s1 + $0x1b0] ss:$8 sps:$4 sm:$0xff]   ;;  %v3322_v10 = vld [vmem:[%s4263_s1 + $0x1c4] ss:$8 sps:$4 sm:$0xff]  }
  0x4a   : > { %2157 = vmatprep.mubr.bf16.mxu0 %v3227_v11  ;;  %v3312_v9 = vld [vmem:[%s4263_s1 + $0x4b0] ss:$8 sps:$4 sm:$0xff]  }
  0x4b   : > { %1892 = vmatpush1.bf16.msra.mxu1 %v3219_v12  ;;  %v3319_v11 = vld [vmem:[%s3676_s12 + $0x210] ss:$44 sps:$4 sm:$0xff]   ;;  %v3326_v12 = vld [vmem:[%s4263_s1 + $0x4c4] ss:$8 sps:$4 sm:$0xff]  }
  0x4c   : > { %2231 = vmatpush1.bf16.msra.mxu0 %v3222_v13  ;;  %1893 = vmatprep.subr.bf16.mxu1 %v3232_v14  ;;  %v3320_v13 = vld [vmem:[%s4263_s1 + $0x1c0] ss:$8 sps:$4 sm:$0xff]  }
  0x4d   : > { %2232 = vmatprep.subr.bf16.mxu0 %v3236_v15  ;;  %v3323_v14 = vld [vmem:[%s3676_s12 + $0x228] ss:$44 sps:$4 sm:$0xff]  }
  0x4e   : > { %1819 = vmatmul.mubr.bf16.gmra.mrb[4].mxu1 %v3229_v16  ;;  %v3324_v15 = vld [vmem:[%s4263_s1 + $0x4c0] ss:$8 sps:$4 sm:$0xff]   ;;  %v3329_v16 = vld [vmem:[%s4263_s1 + $0x1d4] ss:$8 sps:$4 sm:$0xff]  }
  0x4f   : > { %2158 = vmatmul.mubr.bf16.gmra.mrb[4].mxu0 %v3233_v18  ;;  %1894 = vmatpush1.bf16.msra.mxu1 %v3230_v17  ;;  %v3332_v17 = vld [vmem:[%s4263_s1 + $0x4d4] ss:$8 sps:$4 sm:$0xff]   ;;  %v3333_v18 = vld [vmem:[%s3676_s12 + $0x26c] ss:$44 sps:$4 sm:$0xff]  }
  0x50   : > { %2233 = vmatpush1.bf16.msra.mxu0 %v3234_v19  ;;  %1895 = vmatprep.subr.bf16.mxu1 %v3239_v20  ;;  %v3335_v19 = vld [vmem:[%s3676_s12 + $0x284] ss:$44 sps:$4 sm:$0xff]  }
  0x51   : > { %2234 = vmatprep.subr.bf16.mxu0 %v3242_v21  ;;  %1828 = vmatprep.mubr.bf16.mxu1 %v3243_v22  ;;  %v3327_v20 = vld [vmem:[%s4263_s1 + $0x1d0] ss:$8 sps:$4 sm:$0xff]   ;;  %v3340_v22 = vld [vmem:[%s4263_s1 + $0x1e4] ss:$8 sps:$4 sm:$0xff]  }
  0x52   : > { %2167 = vmatprep.mubr.bf16.mxu0 %v3245_v23  ;;  %v3330_v21 = vld [vmem:[%s4263_s1 + $0x4d0] ss:$8 sps:$4 sm:$0xff]   ;;  %v3344_v23 = vld [vmem:[%s4263_s1 + $0x4e4] ss:$8 sps:$4 sm:$0xff]  }
  0x53   : > { %1896 = vmatpush1.bf16.msra.mxu1 %v3237_v24  ;;  %v3337_v24 = vld [vmem:[%s3676_s12 + $0x268] ss:$44 sps:$4 sm:$0xff]  }
  0x54   : > { %2235 = vmatpush1.bf16.msra.mxu0 %v3240_v25  ;;  %1897 = vmatprep.subr.bf16.mxu1 %v3250_v26  ;;  %v3338_v25 = vld [vmem:[%s4263_s1 + $0x1e0] ss:$8 sps:$4 sm:$0xff]  }
  0x55   : > { %2236 = vmatprep.subr.bf16.mxu0 %v3254_v27  ;;  %v3341_v26 = vld [vmem:[%s3676_s12 + $0x280] ss:$44 sps:$4 sm:$0xff]  }
  0x56   : > { %1829 = vmatmul.mubr.bf16.gmra.mrb[8].mxu1 %v3247_v28  ;;  %v3342_v27 = vld [vmem:[%s4263_s1 + $0x4e0] ss:$8 sps:$4 sm:$0xff]   ;;  %v3347_v28 = vld [vmem:[%s4263_s1 + $0x1f4] ss:$8 sps:$4 sm:$0xff]  }
  0x57   : > { %2168 = vmatmul.mubr.bf16.gmra.mrb[8].mxu0 %v3251_v30  ;;  %1898 = vmatpush1.bf16.msra.mxu1 %v3248_v29  ;;  %v3350_v29 = vld [vmem:[%s4263_s1 + $0x4f4] ss:$8 sps:$4 sm:$0xff]   ;;  %v3353_v30 = vld [vmem:[%s3676_s12 + $0xc] ss:$44 sps:$4 sm:$0xff]  }
  0x58   : > { %2237 = vmatpush1.bf16.msra.mxu0 %v3252_v31  ;;  %1899 = vmatprep.subr.bf16.mxu1 %v3257_v32  ;;  %v3356_v31 = vld [vmem:[%s3676_s12 + $0x24] ss:$44 sps:$4 sm:$0xff]  }
  0x59   : > { %2238 = vmatprep.subr.bf16.mxu0 %v3260_v33  ;;  %1838 = vmatprep.mubr.bf16.mxu1 %v3261_v34  ;;  %v3345_v32 = vld [vmem:[%s4263_s1 + $0x1f0] ss:$8 sps:$4 sm:$0xff]   ;;  %v3359_v34 = vld [vmem:[%s4263_s1 + $0x204] ss:$8 sps:$4 sm:$0xff]  }
  0x5a   : > { %2177 = vmatprep.mubr.bf16.mxu0 %v3263_v35  ;;  %v3348_v33 = vld [vmem:[%s4263_s1 + $0x4f0] ss:$8 sps:$4 sm:$0xff]   ;;  %v3362_v35 = vld [vmem:[%s4263_s1 + $0x504] ss:$8 sps:$4 sm:$0xff]  }
  0x5b   : > { %1900 = vmatpush1.bf16.msra.mxu1 %v3255_v36  ;;  %v3351_v36 = vld [vmem:[%s3676_s12 + $0x8] ss:$44 sps:$4 sm:$0xff]  }
  0x5c   : > { %2239 = vmatpush1.bf16.msra.mxu0 %v3258_v37  ;;  %1901 = vmatprep.subr.bf16.mxu1 %v3268_v38  ;;  %v3354_v37 = vld [vmem:[%s3676_s12 + $0x20] ss:$44 sps:$4 sm:$0xff]  }
  0x5d   : > { %2240 = vmatprep.subr.bf16.mxu0 %v3272_v39  ;;  %v3357_v38 = vld [vmem:[%s4263_s1 + $0x200] ss:$8 sps:$4 sm:$0xff]  }
  0x5e   : > { %1839 = vmatmul.mubr.bf16.gmra.mrb[12].mxu1 %v3265_v40  ;;  %v3360_v39 = vld [vmem:[%s4263_s1 + $0x500] ss:$8 sps:$4 sm:$0xff]   ;;  %v3365_v40 = vld [vmem:[%s4263_s1 + $0x214] ss:$8 sps:$4 sm:$0xff]  }
  0x5f   : > { %2178 = vmatmul.mubr.bf16.gmra.mrb[12].mxu0 %v3269_v42  ;;  %1902 = vmatpush1.bf16.msra.mxu1 %v3266_v41  ;;  %v3366_v41 = vld [vmem:[%s3676_s12 + $0x64] ss:$44 sps:$4 sm:$0xff]   ;;  %v3368_v42 = vld [vmem:[%s3676_s12 + $0x7c] ss:$44 sps:$4 sm:$0xff]  }
  0x60   : > { %2241 = vmatpush1.bf16.msra.mxu0 %v3270_v43  ;;  %1903 = vmatprep.subr.bf16.mxu1 %v3275_v44  ;;  %v3389_v43 = vld [vmem:[%s4263_s1 + $0x514] ss:$8 sps:$4 sm:$0xff]   ;;  %v3363_v44 = vld [vmem:[%s4263_s1 + $0x210] ss:$8 sps:$4 sm:$0xff]  }
  0x61   : > { %2242 = vmatprep.subr.bf16.mxu0 %v3278_v45  ;;  %1848 = vmatprep.mubr.bf16.mxu1 %v3279_v46  ;;  %v3387_v45 = vld [vmem:[%s4263_s1 + $0x510] ss:$8 sps:$4 sm:$0xff]   ;;  %v3370_v46 = vld [vmem:[%s3676_s12 + $0x60] ss:$44 sps:$4 sm:$0xff]  }
  0x62   : > { %2187 = vmatprep.mubr.bf16.mxu0 %v3281_v47  ;;  %v3373_v47 = vld [vmem:[%s4263_s1 + $0x224] ss:$8 sps:$4 sm:$0xff]  }
  0x63   : > { %1904 = vmatpush1.bf16.msra.mxu1 %v3273_v48  ;;  %v3371_v48 = vld [vmem:[%s4263_s1 + $0x220] ss:$8 sps:$4 sm:$0xff]  }
  0x64   : > { %2243 = vmatpush1.bf16.msra.mxu0 %v3276_v49  ;;  %1905 = vmatprep.subr.bf16.mxu1 %v3286_v50  ;;  %v3374_v49 = vld [vmem:[%s3676_s12 + $0x78] ss:$44 sps:$4 sm:$0xff]   ;;  %v3377_v50 = vld [vmem:[%s4263_s1 + $0x234] ss:$8 sps:$4 sm:$0xff]  }
  0x65   : > { %2244 = vmatprep.subr.bf16.mxu0 %v3290_v51  ;;  %v3416_v51 = vld [vmem:[%s4263_s1 + $0x524] ss:$8 sps:$4 sm:$0xff]  }
  0x66   : > { %1849 = vmatmul.mubr.bf16.gmra.mrb[16].mxu1 %v3283_v52  ;;  %v3378_v52 = vld [vmem:[%s3676_s12 + $0xbc] ss:$44 sps:$4 sm:$0xff]  }
  0x67   : > { %2188 = vmatmul.mubr.bf16.gmra.mrb[16].mxu0 %v3287_v54  ;;  %1906 = vmatpush1.bf16.msra.mxu1 %v3284_v53  ;;  %v3380_v53 = vld [vmem:[%s3676_s12 + $0xd4] ss:$44 sps:$4 sm:$0xff]  }
  0x68   : > { %2245 = vmatpush1.bf16.msra.mxu0 %v3288_v55  ;;  %1907 = vmatprep.subr.bf16.mxu1 %v3293_v56  ;;  %v3414_v54 = vld [vmem:[%s4263_s1 + $0x520] ss:$8 sps:$4 sm:$0xff]   ;;  %v3375_v55 = vld [vmem:[%s4263_s1 + $0x230] ss:$8 sps:$4 sm:$0xff]   ;;  %v3385_v56 = vld [vmem:[%s4263_s1 + $0x244] ss:$8 sps:$4 sm:$0xff]  }
  0x69   : > { %2246 = vmatprep.subr.bf16.mxu0 %v3296_v57  ;;  %1858 = vmatprep.mubr.bf16.mxu1 %v3297_v58  ;;  %v3382_v57 = vld [vmem:[%s3676_s12 + $0xb8] ss:$44 sps:$4 sm:$0xff]   ;;  %v3383_v58 = vld [vmem:[%s4263_s1 + $0x240] ss:$8 sps:$4 sm:$0xff]  }
  0x6a   : > { %2197 = vmatprep.mubr.bf16.mxu0 %v3299_v59  ;;  %v3386_v59 = vld [vmem:[%s3676_s12 + $0xd0] ss:$44 sps:$4 sm:$0xff]  }
  0x6b   : > { %1908 = vmatpush1.bf16.msra.mxu1 %v3291_v60  ;;  %v3392_v60 = vld [vmem:[%s4263_s1 + $0x254] ss:$8 sps:$4 sm:$0xff]  }
  0x6c   : > { %2247 = vmatpush1.bf16.msra.mxu0 %v3294_v61  ;;  %1909 = vmatprep.subr.bf16.mxu1 %v3304_v62  ;;  %v3393_v61 = vld [vmem:[%s3676_s12 + $0x114] ss:$44 sps:$4 sm:$0xff]   ;;  %v3395_v62 = vld [vmem:[%s3676_s12 + $0x12c] ss:$44 sps:$4 sm:$0xff]  }
  0x6d   : > { %2248 = vmatprep.subr.bf16.mxu0 %v3308_v63  ;;  %v3441_v63 = vld [vmem:[%s4263_s1 + $0x530] ss:$8 sps:$4 sm:$0xff]  }
  0x6e   : > { %1859 = vmatmul.mubr.bf16.gmra.mrb[20].mxu1 %v3301_v0  ;;  %v3443_v0 = vld [vmem:[%s4263_s1 + $0x534] ss:$8 sps:$4 sm:$0xff]  }
  0x6f   : > { %2198 = vmatmul.mubr.bf16.gmra.mrb[20].mxu0 %v3305_v2  ;;  %1910 = vmatpush1.bf16.msra.mxu1 %v3302_v1  ;;  %v3390_v1 = vld [vmem:[%s4263_s1 + $0x250] ss:$8 sps:$4 sm:$0xff]   ;;  %v3400_v2 = vld [vmem:[%s4263_s1 + $0x264] ss:$8 sps:$4 sm:$0xff]  }
  0x70   : > { %2249 = vmatpush1.bf16.msra.mxu0 %v3306_v3  ;;  %1911 = vmatprep.subr.bf16.mxu1 %v3311_v4  ;;  %v3397_v3 = vld [vmem:[%s3676_s12 + $0x110] ss:$44 sps:$4 sm:$0xff]   ;;  %v3398_v4 = vld [vmem:[%s4263_s1 + $0x260] ss:$8 sps:$4 sm:$0xff]  }
  0x71   : > { %2250 = vmatprep.subr.bf16.mxu0 %v3314_v5  ;;  %1868 = vmatprep.mubr.bf16.mxu1 %v3315_v6  ;;  %v3401_v5 = vld [vmem:[%s3676_s12 + $0x128] ss:$44 sps:$4 sm:$0xff]  }
  0x72   : > { %2207 = vmatprep.mubr.bf16.mxu0 %v3317_v7  ;;  %v3404_v6 = vld [vmem:[%s4263_s1 + $0x274] ss:$8 sps:$4 sm:$0xff]   ;;  %v3405_v7 = vld [vmem:[%s3676_s12 + $0x16c] ss:$44 sps:$4 sm:$0xff]  }
  0x73   : > { %1912 = vmatpush1.bf16.msra.mxu1 %v3309_v8  ;;  %v3407_v8 = vld [vmem:[%s3676_s12 + $0x184] ss:$44 sps:$4 sm:$0xff]  }
  0x74   : > { %2251 = vmatpush1.bf16.msra.mxu0 %v3312_v9  ;;  %1913 = vmatprep.subr.bf16.mxu1 %v3322_v10  ;;  %v3402_v9 = vld [vmem:[%s4263_s1 + $0x270] ss:$8 sps:$4 sm:$0xff]   ;;  %v3409_v10 = vld [vmem:[%s3676_s12 + $0x168] ss:$44 sps:$4 sm:$0xff]  }
  0x75   : > { %2252 = vmatprep.subr.bf16.mxu0 %v3326_v12  ;;  %v3410_v12 = vld [vmem:[%s4263_s1 + $0x280] ss:$8 sps:$4 sm:$0xff]  }
  0x76   : > { %1869 = vmatmul.mubr.bf16.gmra.mrb[24].mxu1 %v3319_v11  ;;  %v3412_v11 = vld [vmem:[%s4263_s1 + $0x284] ss:$8 sps:$4 sm:$0xff]  }
  0x77   : > { %2208 = vmatmul.mubr.bf16.gmra.mrb[24].mxu0 %v3323_v14  ;;  %1914 = vmatpush1.bf16.msra.mxu1 %v3320_v13  ;;  %v3413_v13 = vld [vmem:[%s3676_s12 + $0x180] ss:$44 sps:$4 sm:$0xff]   ;;  %v3419_v14 = vld [vmem:[%s4263_s1 + $0x294] ss:$8 sps:$4 sm:$0xff]  }
  0x78   : > { %2253 = vmatpush1.bf16.msra.mxu0 %v3324_v15  ;;  %1915 = vmatprep.subr.bf16.mxu1 %v3329_v16  ;;  %v3420_v15 = vld [vmem:[%s3676_s12 + $0x1c4] ss:$44 sps:$4 sm:$0xff]   ;;  %v3422_v16 = vld [vmem:[%s3676_s12 + $0x1dc] ss:$44 sps:$4 sm:$0xff]  }
  0x79   : > { %2254 = vmatprep.subr.bf16.mxu0 %v3332_v17  ;;  %1878 = vmatprep.mubr.bf16.mxu1 %v3333_v18  ;;  %v3417_v17 = vld [vmem:[%s4263_s1 + $0x290] ss:$8 sps:$4 sm:$0xff]   ;;  %v3427_v18 = vld [vmem:[%s4263_s1 + $0x2a4] ss:$8 sps:$4 sm:$0xff]  }
  0x7a   : > { %2217 = vmatprep.mubr.bf16.mxu0 %v3335_v19  ;;  %v3424_v19 = vld [vmem:[%s3676_s12 + $0x1c0] ss:$44 sps:$4 sm:$0xff]  }
  0x7b   : > { %1916 = vmatpush1.bf16.msra.mxu1 %v3327_v20  ;;  %v3425_v20 = vld [vmem:[%s4263_s1 + $0x2a0] ss:$8 sps:$4 sm:$0xff]  }
  0x7c   : > { %2255 = vmatpush1.bf16.msra.mxu0 %v3330_v21  ;;  %1917 = vmatprep.subr.bf16.mxu1 %v3340_v22  ;;  %v3428_v21 = vld [vmem:[%s3676_s12 + $0x1d8] ss:$44 sps:$4 sm:$0xff]   ;;  %v3432_v22 = vld [vmem:[%s3676_s12 + $0x21c] ss:$44 sps:$4 sm:$0xff]  }
  0x7d   : > { %2256 = vmatprep.subr.bf16.mxu0 %v3344_v23  ;;  %v3431_v23 = vld [vmem:[%s4263_s1 + $0x2b4] ss:$8 sps:$4 sm:$0xff]  }
  0x7e   : > { %1879 = vmatmul.mubr.bf16.gmra.mrb[28].mxu1 %v3337_v24  ;;  %v3434_v24 = vld [vmem:[%s3676_s12 + $0x234] ss:$44 sps:$4 sm:$0xff]  }
  0x7f   : > { %2218 = vmatmul.mubr.bf16.gmra.mrb[28].mxu0 %v3341_v26  ;;  %1918 = vmatpush1.bf16.msra.mxu1 %v3338_v25  ;;  %v3429_v25 = vld [vmem:[%s4263_s1 + $0x2b0] ss:$8 sps:$4 sm:$0xff]   ;;  %v3439_v26 = vld [vmem:[%s4263_s1 + $0x2c4] ss:$8 sps:$4 sm:$0xff]  }
  0x80   : > { %2257 = vmatpush1.bf16.msra.mxu0 %v3342_v27  ;;  %1919 = vmatprep.subr.bf16.mxu1 %v3347_v28  ;;  %v3436_v27 = vld [vmem:[%s3676_s12 + $0x218] ss:$44 sps:$4 sm:$0xff]   ;;  %v3440_v28 = vld [vmem:[%s3676_s12 + $0x230] ss:$44 sps:$4 sm:$0xff]  }
  0x81   : > { %2258 = vmatprep.subr.bf16.mxu0 %v3350_v29  ;;  %1921 = vmatprep.mubr.bf16.mxu1 %v3353_v30  ;;  %v3437_v29 = vld [vmem:[%s4263_s1 + $0x2c0] ss:$8 sps:$4 sm:$0xff]  }
  0x82   : > { %2260 = vmatprep.mubr.bf16.mxu0 %v3356_v31  ;;  %v3447_v30 = vld [vmem:[%s3676_s12 + $0x274] ss:$44 sps:$4 sm:$0xff]  }
  0x83   : > { %1920 = vmatpush1.bf16.msra.mxu1 %v3345_v32  ;;  %v3446_v31 = vld [vmem:[%s4263_s1 + $0x2d4] ss:$8 sps:$4 sm:$0xff]   ;;  %v3449_v32 = vld [vmem:[%s3676_s12 + $0x28c] ss:$44 sps:$4 sm:$0xff]  }
  0x84   : > { %2259 = vmatpush1.bf16.msra.mxu0 %v3348_v33  ;;  %2002 = vmatprep.subr.bf16.mxu1 %v3359_v34  ;;  %v3444_v33 = vld [vmem:[%s4263_s1 + $0x2d0] ss:$8 sps:$4 sm:$0xff]   ;;  %v3454_v34 = vld [vmem:[%s4263_s1 + $0x2e4] ss:$8 sps:$4 sm:$0xff]  }
  0x85   : > { %2341 = vmatprep.subr.bf16.mxu0 %v3362_v35  ;;  %v3451_v35 = vld [vmem:[%s3676_s12 + $0x270] ss:$44 sps:$4 sm:$0xff]  }
  0x86   : > { %1922 = vmatmul.mubr.bf16.vlgmr.msra.gmra.mrb[0].mxu1 %v3351_v36  ;;  %v3455_v36 = vld [vmem:[%s3676_s12 + $0x288] ss:$44 sps:$4 sm:$0xff]  }
  0x87   : > { %2261 = vmatmul.mubr.bf16.vlgmr.msra.gmra.mrb[0].mxu0 %v3354_v37  ;;  %2003 = vmatpush1.bf16.msra.mxu1 %v3357_v38  ;;  %v3452_v37 = vld [vmem:[%s4263_s1 + $0x2e0] ss:$8 sps:$4 sm:$0xff]  }
  0x88   : > { %2342 = vmatpush1.bf16.msra.mxu0 %v3360_v39  ;;  %2004 = vmatprep.subr.bf16.mxu1 %v3365_v40  ;;  %v3461_v38 = vld [vmem:[%s3676_s12 + $0x14] ss:$44 sps:$4 sm:$0xff]   ;;  %v3456_v40 = vld [vmem:[%s4263_s1 + $0x2f0] ss:$8 sps:$4 sm:$0xff]  }
  0x89   : > { %1931 = vmatprep.mubr.bf16.mxu1 %v3366_v41  ;;  %2270 = vmatprep.mubr.bf16.mxu0 %v3368_v42  ;;  %v3458_v39 = vld [vmem:[%s4263_s1 + $0x2f4] ss:$8 sps:$4 sm:$0xff]   ;;  %v3499_v41 = vmov 0  }
  0x8a   : > { %2343 = vmatprep.subr.bf16.mxu0 %v3389_v43  ;;  %v3459_v42 = vld [vmem:[%s3676_s12 + $0x10] ss:$44 sps:$4 sm:$0xff]   ;;  %v3462_v43 = vld [vmem:[%s3676_s12 + $0x28] ss:$44 sps:$4 sm:$0xff]  }
  0x8b   : > { %2005 = vmatpush1.bf16.msra.mxu1 %v3363_v44  ;;  %v3463_v44 = vld [vmem:[%s3676_s12 + $0x6c] ss:$44 sps:$4 sm:$0xff]  }
  0x8c   : > { %2344 = vmatpush1.bf16.msra.mxu0 %v3387_v45  ;;  %2006 = vmatprep.subr.bf16.mxu1 %v3373_v47  ;;  %v3465_v45 = vld [vmem:[%s3676_s12 + $0x68] ss:$44 sps:$4 sm:$0xff]   ;;  %v3467_v47 = vld [vmem:[%s3676_s12 + $0xc4] ss:$44 sps:$4 sm:$0xff]  }
  0x8d   : > { %2345 = vmatprep.subr.bf16.mxu0 %v3416_v51  ;;  %v3473_v51 = vld [vmem:[%s3676_s12 + $0x118] ss:$44 sps:$4 sm:$0xff]  }
  0x8e   : > { %1932 = vmatmul.mubr.bf16.gmra.mrb[4].mxu1 %v3370_v46  ;;  %v3466_v46 = vld [vmem:[%s3676_s12 + $0x80] ss:$44 sps:$4 sm:$0xff]  }
  0x8f   : > { %2271 = vmatmul.mubr.bf16.gmra.mrb[4].mxu0 %v3374_v49  ;;  %2007 = vmatpush1.bf16.msra.mxu1 %v3371_v48  ;;  %v3469_v48 = vld [vmem:[%s3676_s12 + $0xc0] ss:$44 sps:$4 sm:$0xff]   ;;  %v3470_v49 = vld [vmem:[%s3676_s12 + $0xd8] ss:$44 sps:$4 sm:$0xff]  }
  0x90   : > { %1941 = vmatprep.mubr.bf16.mxu1 %v3378_v52  ;;  %2008 = vmatprep.subr.bf16.mxu1 %v3377_v50  ;;  %v3471_v50 = vld [vmem:[%s3676_s12 + $0x11c] ss:$44 sps:$4 sm:$0xff]  }
  0x91   : > { %2280 = vmatprep.mubr.bf16.mxu0 %v3380_v53  ;;  %2346 = vmatpush1.bf16.msra.mxu0 %v3414_v54  ;;  %v3474_v52 = vld [vmem:[%s3676_s12 + $0x130] ss:$44 sps:$4 sm:$0xff]   ;;  %v3475_v53 = vld [vmem:[%s3676_s12 + $0x174] ss:$44 sps:$4 sm:$0xff]  }
  0x92   : > { %2347 = vmatprep.subr.bf16.mxu0 %v3443_v0  ;;  %v3477_v54 = vld [vmem:[%s3676_s12 + $0x170] ss:$44 sps:$4 sm:$0xff]  }
  0x93   : > { %2009 = vmatpush1.bf16.msra.mxu1 %v3375_v55  ;;  %v3478_v55 = vld [vmem:[%s3676_s12 + $0x188] ss:$44 sps:$4 sm:$0xff]   ;;  %v3490_v0 = vld [vmem:[%s3676_s12 + $0x290] ss:$44 sps:$4 sm:$0xff]  }
  0x94   : > { %2010 = vmatprep.subr.bf16.mxu1 %v3385_v56  ;;  %v3479_v56 = vld [vmem:[%s3676_s12 + $0x1cc] ss:$44 sps:$4 sm:$0xff]  }
  0x95   : > { %2348 = vmatpush1.bf16.msra.mxu0 %v3441_v63  ;;  %v3489_v63 = vld [vmem:[%s3676_s12 + $0x278] ss:$44 sps:$4 sm:$0xff]  }
  0x96   : > { %1942 = vmatmul.mubr.bf16.gmra.mrb[8].mxu1 %v3382_v57  ;;  %v3481_v57 = vld [vmem:[%s3676_s12 + $0x1c8] ss:$44 sps:$4 sm:$0xff]  }
  0x97   : > { %2281 = vmatmul.mubr.bf16.gmra.mrb[8].mxu0 %v3386_v59  ;;  %2011 = vmatpush1.bf16.msra.mxu1 %v3383_v58  ;;  %v3482_v58 = vld [vmem:[%s3676_s12 + $0x1e0] ss:$44 sps:$4 sm:$0xff]   ;;  %v3483_v59 = vld [vmem:[%s3676_s12 + $0x224] ss:$44 sps:$4 sm:$0xff]  }
  0x98   : > { %1951 = vmatprep.mubr.bf16.mxu1 %v3393_v61  ;;  %2012 = vmatprep.subr.bf16.mxu1 %v3392_v60  ;;  %v3485_v60 = vld [vmem:[%s3676_s12 + $0x220] ss:$44 sps:$4 sm:$0xff]   ;;  %v3486_v61 = vld [vmem:[%s3676_s12 + $0x238] ss:$44 sps:$4 sm:$0xff]  }
  0x99   : > { %2290 = vmatprep.mubr.bf16.mxu0 %v3395_v62  ;;  %v3487_v62 = vld [vmem:[%s3676_s12 + $0x27c] ss:$44 sps:$4 sm:$0xff]   ;;  %s2940_s12 = sshll.u32 %s4268_s29, 4 }
  0x9a   : > { %s4165_s16 = scalar_lea.vmem %s4266_s4, %s2940_s12 }
  0x9b   : > { %2013 = vmatpush1.bf16.msra.mxu1 %v3390_v1  ;;  %v2456_v1 = vlaneseq }
  0x9c   : > { %2014 = vmatprep.subr.bf16.mxu1 %v3400_v2 }
  0x9d   : > { %v2457_v2 = vshrl.u32 %v2456_v1, 7 }
  0x9e   : > { %1952 = vmatmul.mubr.bf16.gmra.mrb[12].mxu1 %v3397_v3 }
  0x9f   : > { %2291 = vmatmul.mubr.bf16.gmra.mrb[12].mxu0 %v3401_v5  ;;  %2015 = vmatpush1.bf16.msra.mxu1 %v3398_v4  ;;  %v2458_v3 = vsub.s32 0, %v2457_v2  ;;  %v2454_v4 = vld [vmem:[%s4264_s2] sm:$0x3]  ;;  %v2462_v5 = vsub.s32 1, %v2457_v2 }
  0xa0   : > { %1961 = vmatprep.mubr.bf16.mxu1 %v3405_v7  ;;  %2016 = vmatprep.subr.bf16.mxu1 %v3404_v6  ;;  %v2498_v6 = vld [vmem:[%s4265_s3] sm:$0x3] }
  0xa1   : > { %2300 = vmatprep.mubr.bf16.mxu0 %v3407_v8  ;;  %v4149_v7 = vrot.slane %v2454_v4, %v2458_v3 }
  0xa3   : > { %2017 = vmatpush1.bf16.msra.mxu1 %v3402_v9 }
  0xa4   : > { %2018 = vmatprep.subr.bf16.mxu1 %v3412_v11 }
  0xa6   : > { %1962 = vmatmul.mubr.bf16.gmra.mrb[16].mxu1 %v3409_v10  ;;  %v4151_v10 = vrot.slane %v2454_v4, %v2462_v5 }
  0xa7   : > { %2301 = vmatmul.mubr.bf16.gmra.mrb[16].mxu0 %v3413_v13  ;;  %2019 = vmatpush1.bf16.msra.mxu1 %v3410_v12  ;;  %v4153_v12 = vrot.slane %v2498_v6, %v2458_v3 }
  0xa8   : > { %1971 = vmatprep.mubr.bf16.mxu1 %v3420_v15  ;;  %2020 = vmatprep.subr.bf16.mxu1 %v3419_v14 }
  0xa9   : > { %2310 = vmatprep.mubr.bf16.mxu0 %v3422_v16  ;;  %v4155_v16 = vrot.slane %v2498_v6, %v2462_v5 }
  0xab   : > { %2021 = vmatpush1.bf16.msra.mxu1 %v3417_v17 }
  0xac   : > { %2022 = vmatprep.subr.bf16.mxu1 %v3427_v18 }
  0xae   : > { %1972 = vmatmul.mubr.bf16.gmra.mrb[20].mxu1 %v3424_v19 }
  0xaf   : > { %2311 = vmatmul.mubr.bf16.gmra.mrb[20].mxu0 %v3428_v21  ;;  %2023 = vmatpush1.bf16.msra.mxu1 %v3425_v20 }
  0xb0   : > { %1981 = vmatprep.mubr.bf16.mxu1 %v3432_v22  ;;  %2024 = vmatprep.subr.bf16.mxu1 %v3431_v23 }
  0xb1   : > { %2320 = vmatprep.mubr.bf16.mxu0 %v3434_v24 }
  0xb3   : > { %2025 = vmatpush1.bf16.msra.mxu1 %v3429_v25 }
  0xb4   : > { %2026 = vmatprep.subr.bf16.mxu1 %v3439_v26 }
  0xb6   : > { %1982 = vmatmul.mubr.bf16.gmra.mrb[24].mxu1 %v3436_v27 }
  0xb7   : > { %2321 = vmatmul.mubr.bf16.gmra.mrb[24].mxu0 %v3440_v28  ;;  %2027 = vmatpush1.bf16.msra.mxu1 %v3437_v29 }
  0xb8   : > { %1991 = vmatprep.mubr.bf16.mxu1 %v3447_v30  ;;  %2028 = vmatprep.subr.bf16.mxu1 %v3446_v31 }
  0xb9   : > { %2330 = vmatprep.mubr.bf16.mxu0 %v3449_v32 }
  0xbb   : > { %2029 = vmatpush1.bf16.msra.mxu1 %v3444_v33 }
  0xbc   : > { %2030 = vmatprep.subr.bf16.mxu1 %v3454_v34 }
  0xbe   : > { %1992 = vmatmul.mubr.bf16.gmra.mrb[28].mxu1 %v3451_v35 }
  0xbf   : > { %2331 = vmatmul.mubr.bf16.gmra.mrb[28].mxu0 %v3455_v36  ;;  %2031 = vmatpush1.bf16.msra.mxu1 %v3452_v37 }
  0xc0   : > { %2034 = vmatprep.mubr.bf16.mxu1 %v3461_v38  ;;  %2032 = vmatprep.subr.bf16.mxu1 %v3458_v39 }
  0xc1   : > { %2373 = vmatprep.mubr.bf16.mxu0 %v3499_v41 }
  0xc3   : > { %2033 = vmatpush1.bf16.msra.mxu1 %v3456_v40 }
  0xc6   : > { %2035 = vmatmul.mubr.bf16.vlgmr.msra.gmra.mrb[0].mxu1 %v3459_v42 }
  0xc7   : > { %2930 = vmatmul.mubr.msk.bf16.vlgmr.msra.gmra.mrb[0].mxu0 %vm1751_vm0, %v3462_v43  ;;  %2044 = vmatprep.mubr.bf16.mxu1 %v3463_v44 }
  0xc8   : > { %2383 = vmatprep.mubr.bf16.mxu0 %v3499_v41 }
  0xce   : > { %2045 = vmatmul.mubr.bf16.gmra.mrb[4].mxu1 %v3465_v45 }
  0xcf   : > { %2931 = vmatmul.mubr.msk.bf16.gmra.mrb[4].mxu0 %vm1751_vm0, %v3466_v46  ;;  %2054 = vmatprep.mubr.bf16.mxu1 %v3467_v47 }
  0xd0   : > { %2393 = vmatprep.mubr.bf16.mxu0 %v3499_v41 }
  0xd6   : > { %2055 = vmatmul.mubr.bf16.gmra.mrb[8].mxu1 %v3469_v48 }
  0xd7   : > { %2932 = vmatmul.mubr.msk.bf16.gmra.mrb[8].mxu0 %vm1751_vm0, %v3470_v49  ;;  %2064 = vmatprep.mubr.bf16.mxu1 %v3471_v50 }
  0xd8   : > { %2403 = vmatprep.mubr.bf16.mxu0 %v3499_v41 }
  0xde   : > { %2065 = vmatmul.mubr.bf16.gmra.mrb[12].mxu1 %v3473_v51 }
  0xdf   : > { %2933 = vmatmul.mubr.msk.bf16.gmra.mrb[12].mxu0 %vm1751_vm0, %v3474_v52  ;;  %2074 = vmatprep.mubr.bf16.mxu1 %v3475_v53 }
  0xe0   : > { %2413 = vmatprep.mubr.bf16.mxu0 %v3499_v41 }
  0xe6   : > { %2075 = vmatmul.mubr.bf16.gmra.mrb[16].mxu1 %v3477_v54 }
  0xe7   : > { %2934 = vmatmul.mubr.msk.bf16.gmra.mrb[16].mxu0 %vm1751_vm0, %v3478_v55  ;;  %2084 = vmatprep.mubr.bf16.mxu1 %v3479_v56 }
  0xe8   : > { %2423 = vmatprep.mubr.bf16.mxu0 %v3499_v41 }
  0xee   : > { %2085 = vmatmul.mubr.bf16.gmra.mrb[20].mxu1 %v3481_v57 }
  0xef   : > { %2935 = vmatmul.mubr.msk.bf16.gmra.mrb[20].mxu0 %vm1751_vm0, %v3482_v58  ;;  %2094 = vmatprep.mubr.bf16.mxu1 %v3483_v59 }
  0xf0   : > { %2433 = vmatprep.mubr.bf16.mxu0 %v3499_v41 }
  0xf6   : > { %2095 = vmatmul.mubr.bf16.gmra.mrb[24].mxu1 %v3485_v60 }
  0xf7   : > { %2936 = vmatmul.mubr.msk.bf16.gmra.mrb[24].mxu0 %vm1751_vm0, %v3486_v61  ;;  %2104 = vmatprep.mubr.bf16.mxu1 %v3487_v62 }
  0xf8   : > { %2443 = vmatprep.mubr.bf16.mxu0 %v3499_v41 }
  0xfe   : > { %2105 = vmatmul.mubr.bf16.gmra.mrb[28].mxu1 %v3489_v63 }
  0xff   : > { %2937 = vmatmul.mubr.msk.bf16.gmra.mrb[28].mxu0 %vm1751_vm0, %v3490_v0 }
 0x199   : > { %v2036_v8 = vpop.f32.mrb[0].mxu1 }
 0x19a   : > { %v2375_v9 = vpop.f32.mrb[0].mxu0  ;;  %v2038_v13 = vpop.f32.mrb[1].mxu1 }
 0x19b   : > { %v2941_v11 = vadd.f32 %v2375_v9, %v2036_v8  ;;  %v2377_v14 = vpop.f32.mrb[1].mxu0  ;;  %v2040_v17 = vpop.f32.mrb[2].mxu1 }
 0x19c   : > { %v2942_v15 = vadd.f32 %v2377_v14, %v2038_v13  ;;  %v2379_v18 = vpop.f32.mrb[2].mxu0  ;;  %v2042_v21 = vpop.f32.mrb[3].mxu1 }
 0x19d   : > { %v2466_v19 = vmul.f32 %v2941_v11, %v4149_v7  ;;  %v2943_v20 = vadd.f32 %v2379_v18, %v2040_v17  ;;  %v2381_v22 = vpop.f32.mrb[3].mxu0 }
 0x19e   : > { %v2467_v23 = vmul.f32 %v2942_v15, %v4151_v10  ;;  %v2944_v24 = vadd.f32 %v2381_v22, %v2042_v21 }
 0x19f   : > { %v2510_v25 = vadd.f32 %v4153_v12, %v2466_v19  ;;  %v2468_v26 = vmul.f32 %v2943_v20, %v4149_v7 }
 0x1a0   : > { %v2511_v27 = vadd.f32 %v4155_v16, %v2467_v23  ;;  %v2469_v28 = vmul.f32 %v2944_v24, %v4151_v10 }
 0x1a1   : > { %v2542_v29 = vmax.f32 %v2510_v25, 0.0  ;;  %v2512_v30 = vadd.f32 %v4153_v12, %v2468_v26  ;;  %v2046_v33 = vpop.f32.mrb[4].mxu1 }
 0x1a2   : > { %v2543_v31 = vmax.f32 %v2511_v27, 0.0  ;;  %v2513_v32 = vadd.f32 %v4155_v16, %v2469_v28  ;;  %v2385_v34 = vpop.f32.mrb[4].mxu0  ;;  %v2048_v37 = vpop.f32.mrb[5].mxu1 }
 0x1a3   : > { %2574 = vst [vmem:[%s4165_s16] sm:$0xff] %v2542_v29  ;;  %v2544_v35 = vmax.f32 %v2512_v30, 0.0  ;;  %v2945_v36 = vadd.f32 %v2385_v34, %v2046_v33  ;;  %v2387_v38 = vpop.f32.mrb[5].mxu0  ;;  %v2050_v41 = vpop.f32.mrb[6].mxu1 }
 0x1a4   : > { %2575 = vst [vmem:[%s4165_s16 + $0x8] sm:$0xff] %v2543_v31  ;;  %v2545_v39 = vmax.f32 %v2513_v32, 0.0  ;;  %v2946_v40 = vadd.f32 %v2387_v38, %v2048_v37  ;;  %v2389_v42 = vpop.f32.mrb[6].mxu0  ;;  %v2052_v45 = vpop.f32.mrb[7].mxu1 }
 0x1a5   : > { %2576 = vst [vmem:[%s4165_s16 + $0x10] sm:$0xff] %v2544_v35  ;;  %v2470_v43 = vmul.f32 %v2945_v36, %v4149_v7  ;;  %v2947_v44 = vadd.f32 %v2389_v42, %v2050_v41  ;;  %v2391_v46 = vpop.f32.mrb[7].mxu0 }
 0x1a6   : > { %2577 = vst [vmem:[%s4165_s16 + $0x18] sm:$0xff] %v2545_v39  ;;  %v2471_v47 = vmul.f32 %v2946_v40, %v4151_v10  ;;  %v2948_v48 = vadd.f32 %v2391_v46, %v2052_v45 }
 0x1a7   : > { %v2514_v49 = vadd.f32 %v4153_v12, %v2470_v43  ;;  %v2472_v50 = vmul.f32 %v2947_v44, %v4149_v7 }
 0x1a8   : > { %v2515_v51 = vadd.f32 %v4155_v16, %v2471_v47  ;;  %v2473_v52 = vmul.f32 %v2948_v48, %v4151_v10 }
 0x1a9   : > { %v2546_v53 = vmax.f32 %v2514_v49, 0.0  ;;  %v2516_v54 = vadd.f32 %v4153_v12, %v2472_v50  ;;  %v2056_v57 = vpop.f32.mrb[8].mxu1 }
 0x1aa   : > { %v2547_v55 = vmax.f32 %v2515_v51, 0.0  ;;  %v2517_v56 = vadd.f32 %v4155_v16, %v2473_v52  ;;  %v2395_v58 = vpop.f32.mrb[8].mxu0  ;;  %v2058_v61 = vpop.f32.mrb[9].mxu1 }
 0x1ab   : > { %2578 = vst [vmem:[%s4165_s16 + $0x20] sm:$0xff] %v2546_v53  ;;  %v2548_v59 = vmax.f32 %v2516_v54, 0.0  ;;  %v2949_v60 = vadd.f32 %v2395_v58, %v2056_v57  ;;  %v2397_v62 = vpop.f32.mrb[9].mxu0  ;;  %v2060_v1 = vpop.f32.mrb[10].mxu1 }
 0x1ac   : > { %2579 = vst [vmem:[%s4165_s16 + $0x28] sm:$0xff] %v2547_v55  ;;  %v2549_v63 = vmax.f32 %v2517_v56, 0.0  ;;  %v2950_v0 = vadd.f32 %v2397_v62, %v2058_v61  ;;  %v2399_v2 = vpop.f32.mrb[10].mxu0  ;;  %v2062_v5 = vpop.f32.mrb[11].mxu1 }
 0x1ad   : > { %2580 = vst [vmem:[%s4165_s16 + $0x30] sm:$0xff] %v2548_v59  ;;  %v2474_v3 = vmul.f32 %v2949_v60, %v4149_v7  ;;  %v2951_v4 = vadd.f32 %v2399_v2, %v2060_v1  ;;  %v2401_v6 = vpop.f32.mrb[11].mxu0 }
 0x1ae   : > { %2581 = vst [vmem:[%s4165_s16 + $0x38] sm:$0xff] %v2549_v63  ;;  %v2475_v8 = vmul.f32 %v2950_v0, %v4151_v10  ;;  %v2952_v9 = vadd.f32 %v2401_v6, %v2062_v5 }
 0x1af   : > { %v2518_v11 = vadd.f32 %v4153_v12, %v2474_v3  ;;  %v2476_v13 = vmul.f32 %v2951_v4, %v4149_v7 }
 0x1b0   : > { %v2519_v14 = vadd.f32 %v4155_v16, %v2475_v8  ;;  %v2477_v15 = vmul.f32 %v2952_v9, %v4151_v10 }
 0x1b1   : > { %v2550_v17 = vmax.f32 %v2518_v11, 0.0  ;;  %v2520_v18 = vadd.f32 %v4153_v12, %v2476_v13  ;;  %v2066_v21 = vpop.f32.mrb[12].mxu1 }
 0x1b2   : > { %v2551_v19 = vmax.f32 %v2519_v14, 0.0  ;;  %v2521_v20 = vadd.f32 %v4155_v16, %v2477_v15  ;;  %v2405_v22 = vpop.f32.mrb[12].mxu0  ;;  %v2068_v25 = vpop.f32.mrb[13].mxu1 }
 0x1b3   : > { %2582 = vst [vmem:[%s4165_s16 + $0x40] sm:$0xff] %v2550_v17  ;;  %v2552_v23 = vmax.f32 %v2520_v18, 0.0  ;;  %v2953_v24 = vadd.f32 %v2405_v22, %v2066_v21  ;;  %v2407_v26 = vpop.f32.mrb[13].mxu0  ;;  %v2070_v29 = vpop.f32.mrb[14].mxu1 }
 0x1b4   : > { %2583 = vst [vmem:[%s4165_s16 + $0x48] sm:$0xff] %v2551_v19  ;;  %v2553_v27 = vmax.f32 %v2521_v20, 0.0  ;;  %v2954_v28 = vadd.f32 %v2407_v26, %v2068_v25  ;;  %v2409_v30 = vpop.f32.mrb[14].mxu0  ;;  %v2072_v33 = vpop.f32.mrb[15].mxu1 }
 0x1b5   : > { %2584 = vst [vmem:[%s4165_s16 + $0x50] sm:$0xff] %v2552_v23  ;;  %v2478_v31 = vmul.f32 %v2953_v24, %v4149_v7  ;;  %v2955_v32 = vadd.f32 %v2409_v30, %v2070_v29  ;;  %v2411_v34 = vpop.f32.mrb[15].mxu0 }
 0x1b6   : > { %2585 = vst [vmem:[%s4165_s16 + $0x58] sm:$0xff] %v2553_v27  ;;  %v2479_v35 = vmul.f32 %v2954_v28, %v4151_v10  ;;  %v2956_v36 = vadd.f32 %v2411_v34, %v2072_v33 }
 0x1b7   : > { %v2522_v37 = vadd.f32 %v4153_v12, %v2478_v31  ;;  %v2480_v38 = vmul.f32 %v2955_v32, %v4149_v7 }
 0x1b8   : > { %v2523_v39 = vadd.f32 %v4155_v16, %v2479_v35  ;;  %v2481_v40 = vmul.f32 %v2956_v36, %v4151_v10 }
 0x1b9   : > { %v2554_v41 = vmax.f32 %v2522_v37, 0.0  ;;  %v2524_v42 = vadd.f32 %v4153_v12, %v2480_v38  ;;  %v2076_v45 = vpop.f32.mrb[16].mxu1 }
 0x1ba   : > { %v2555_v43 = vmax.f32 %v2523_v39, 0.0  ;;  %v2525_v44 = vadd.f32 %v4155_v16, %v2481_v40  ;;  %v2415_v46 = vpop.f32.mrb[16].mxu0  ;;  %v2078_v49 = vpop.f32.mrb[17].mxu1 }
 0x1bb   : > { %2586 = vst [vmem:[%s4165_s16 + $0x60] sm:$0xff] %v2554_v41  ;;  %v2556_v47 = vmax.f32 %v2524_v42, 0.0  ;;  %v2957_v48 = vadd.f32 %v2415_v46, %v2076_v45  ;;  %v2417_v50 = vpop.f32.mrb[17].mxu0  ;;  %v2080_v53 = vpop.f32.mrb[18].mxu1 }
 0x1bc   : > { %2587 = vst [vmem:[%s4165_s16 + $0x68] sm:$0xff] %v2555_v43  ;;  %v2557_v51 = vmax.f32 %v2525_v44, 0.0  ;;  %v2958_v52 = vadd.f32 %v2417_v50, %v2078_v49  ;;  %v2419_v54 = vpop.f32.mrb[18].mxu0  ;;  %v2082_v57 = vpop.f32.mrb[19].mxu1 }
 0x1bd   : > { %2588 = vst [vmem:[%s4165_s16 + $0x70] sm:$0xff] %v2556_v47  ;;  %v2482_v55 = vmul.f32 %v2957_v48, %v4149_v7  ;;  %v2959_v56 = vadd.f32 %v2419_v54, %v2080_v53  ;;  %v2421_v58 = vpop.f32.mrb[19].mxu0 }
 0x1be   : > { %2589 = vst [vmem:[%s4165_s16 + $0x78] sm:$0xff] %v2557_v51  ;;  %v2483_v59 = vmul.f32 %v2958_v52, %v4151_v10  ;;  %v2960_v60 = vadd.f32 %v2421_v58, %v2082_v57 }
 0x1bf   : > { %v2526_v61 = vadd.f32 %v4153_v12, %v2482_v55  ;;  %v2484_v62 = vmul.f32 %v2959_v56, %v4149_v7 }
 0x1c0   : > { %v2527_v63 = vadd.f32 %v4155_v16, %v2483_v59  ;;  %v2485_v0 = vmul.f32 %v2960_v60, %v4151_v10 }
 0x1c1   : > { %v2558_v1 = vmax.f32 %v2526_v61, 0.0  ;;  %v2528_v2 = vadd.f32 %v4153_v12, %v2484_v62  ;;  %v2086_v5 = vpop.f32.mrb[20].mxu1 }
 0x1c2   : > { %v2559_v3 = vmax.f32 %v2527_v63, 0.0  ;;  %v2529_v4 = vadd.f32 %v4155_v16, %v2485_v0  ;;  %v2425_v6 = vpop.f32.mrb[20].mxu0  ;;  %v2088_v11 = vpop.f32.mrb[21].mxu1 }
 0x1c3   : > { %2590 = vst [vmem:[%s4165_s16 + $0x80] sm:$0xff] %v2558_v1  ;;  %v2560_v8 = vmax.f32 %v2528_v2, 0.0  ;;  %v2961_v9 = vadd.f32 %v2425_v6, %v2086_v5  ;;  %v2427_v13 = vpop.f32.mrb[21].mxu0  ;;  %v2090_v17 = vpop.f32.mrb[22].mxu1 }
 0x1c4   : > { %2591 = vst [vmem:[%s4165_s16 + $0x88] sm:$0xff] %v2559_v3  ;;  %v2561_v14 = vmax.f32 %v2529_v4, 0.0  ;;  %v2962_v15 = vadd.f32 %v2427_v13, %v2088_v11  ;;  %v2429_v18 = vpop.f32.mrb[22].mxu0  ;;  %v2092_v21 = vpop.f32.mrb[23].mxu1 }
 0x1c5   : > { %2592 = vst [vmem:[%s4165_s16 + $0x90] sm:$0xff] %v2560_v8  ;;  %v2486_v19 = vmul.f32 %v2961_v9, %v4149_v7  ;;  %v2963_v20 = vadd.f32 %v2429_v18, %v2090_v17  ;;  %v2431_v22 = vpop.f32.mrb[23].mxu0 }
 0x1c6   : > { %2593 = vst [vmem:[%s4165_s16 + $0x98] sm:$0xff] %v2561_v14  ;;  %v2487_v23 = vmul.f32 %v2962_v15, %v4151_v10  ;;  %v2964_v24 = vadd.f32 %v2431_v22, %v2092_v21 }
 0x1c7   : > { %v2530_v25 = vadd.f32 %v4153_v12, %v2486_v19  ;;  %v2488_v26 = vmul.f32 %v2963_v20, %v4149_v7 }
 0x1c8   : > { %v2531_v27 = vadd.f32 %v4155_v16, %v2487_v23  ;;  %v2489_v28 = vmul.f32 %v2964_v24, %v4151_v10 }
 0x1c9   : > { %v2562_v29 = vmax.f32 %v2530_v25, 0.0  ;;  %v2532_v30 = vadd.f32 %v4153_v12, %v2488_v26  ;;  %v2096_v33 = vpop.f32.mrb[24].mxu1 }
 0x1ca   : > { %v2563_v31 = vmax.f32 %v2531_v27, 0.0  ;;  %v2533_v32 = vadd.f32 %v4155_v16, %v2489_v28  ;;  %v2435_v34 = vpop.f32.mrb[24].mxu0  ;;  %v2098_v37 = vpop.f32.mrb[25].mxu1 }
 0x1cb   : > { %2594 = vst [vmem:[%s4165_s16 + $0xa0] sm:$0xff] %v2562_v29  ;;  %v2564_v35 = vmax.f32 %v2532_v30, 0.0  ;;  %v2965_v36 = vadd.f32 %v2435_v34, %v2096_v33  ;;  %v2437_v38 = vpop.f32.mrb[25].mxu0  ;;  %v2100_v41 = vpop.f32.mrb[26].mxu1 }
 0x1cc   : > { %2595 = vst [vmem:[%s4165_s16 + $0xa8] sm:$0xff] %v2563_v31  ;;  %v2565_v39 = vmax.f32 %v2533_v32, 0.0  ;;  %v2966_v40 = vadd.f32 %v2437_v38, %v2098_v37  ;;  %v2439_v42 = vpop.f32.mrb[26].mxu0  ;;  %v2102_v45 = vpop.f32.mrb[27].mxu1 }
 0x1cd   : > { %2596 = vst [vmem:[%s4165_s16 + $0xb0] sm:$0xff] %v2564_v35  ;;  %v2490_v43 = vmul.f32 %v2965_v36, %v4149_v7  ;;  %v2967_v44 = vadd.f32 %v2439_v42, %v2100_v41  ;;  %v2441_v46 = vpop.f32.mrb[27].mxu0 }
 0x1ce   : > { %2597 = vst [vmem:[%s4165_s16 + $0xb8] sm:$0xff] %v2565_v39  ;;  %v2491_v47 = vmul.f32 %v2966_v40, %v4151_v10  ;;  %v2968_v48 = vadd.f32 %v2441_v46, %v2102_v45 }
 0x1cf   : > { %v2534_v49 = vadd.f32 %v4153_v12, %v2490_v43  ;;  %v2492_v50 = vmul.f32 %v2967_v44, %v4149_v7 }
 0x1d0   : > { %v2535_v51 = vadd.f32 %v4155_v16, %v2491_v47  ;;  %v2493_v52 = vmul.f32 %v2968_v48, %v4151_v10 }
 0x1d1   : > { %v2566_v53 = vmax.f32 %v2534_v49, 0.0  ;;  %v2536_v54 = vadd.f32 %v4153_v12, %v2492_v50  ;;  %v2106_v57 = vpop.f32.mrb[28].mxu1 }
 0x1d2   : > { %v2567_v55 = vmax.f32 %v2535_v51, 0.0  ;;  %v2537_v56 = vadd.f32 %v4155_v16, %v2493_v52  ;;  %v2445_v58 = vpop.f32.mrb[28].mxu0  ;;  %v2108_v61 = vpop.f32.mrb[29].mxu1 }
 0x1d3   : > { %2598 = vst [vmem:[%s4165_s16 + $0xc0] sm:$0xff] %v2566_v53  ;;  %v2568_v59 = vmax.f32 %v2536_v54, 0.0  ;;  %v2969_v60 = vadd.f32 %v2445_v58, %v2106_v57  ;;  %v2447_v62 = vpop.f32.mrb[29].mxu0  ;;  %v2110_v1 = vpop.f32.mrb[30].mxu1 }
 0x1d4   : > { %2599 = vst [vmem:[%s4165_s16 + $0xc8] sm:$0xff] %v2567_v55  ;;  %v2569_v63 = vmax.f32 %v2537_v56, 0.0  ;;  %v2970_v0 = vadd.f32 %v2447_v62, %v2108_v61  ;;  %v2449_v2 = vpop.f32.mrb[30].mxu0  ;;  %v2112_v5 = vpop.f32.mrb[31].mxu1 }
 0x1d5   : > { %2600 = vst [vmem:[%s4165_s16 + $0xd0] sm:$0xff] %v2568_v59  ;;  %v2494_v3 = vmul.f32 %v2969_v60, %v4149_v7  ;;  %v2971_v4 = vadd.f32 %v2449_v2, %v2110_v1  ;;  %v2451_v6 = vpop.f32.mrb[31].mxu0 }
 0x1d6   : > { %2601 = vst [vmem:[%s4165_s16 + $0xd8] sm:$0xff] %v2569_v63  ;;  %v2495_v8 = vmul.f32 %v2970_v0, %v4151_v10  ;;  %v2972_v9 = vadd.f32 %v2451_v6, %v2112_v5 }
 0x1d7   : > { %v2538_v11 = vadd.f32 %v4153_v12, %v2494_v3  ;;  %v2496_v13 = vmul.f32 %v2971_v4, %v4149_v7 }
 0x1d8   : > { %v2539_v14 = vadd.f32 %v4155_v16, %v2495_v8  ;;  %v2497_v15 = vmul.f32 %v2972_v9, %v4151_v10 }
 0x1d9   : > { %v2570_v17 = vmax.f32 %v2538_v11, 0.0  ;;  %v2540_v18 = vadd.f32 %v4153_v12, %v2496_v13 }
 0x1da   : > { %v2571_v19 = vmax.f32 %v2539_v14, 0.0  ;;  %v2541_v20 = vadd.f32 %v4155_v16, %v2497_v15 }
 0x1db   : > { %2602 = vst [vmem:[%s4165_s16 + $0xe0] sm:$0xff] %v2570_v17  ;;  %v2572_v21 = vmax.f32 %v2540_v18, 0.0 }
 0x1dc   : > { %2603 = vst [vmem:[%s4165_s16 + $0xe8] sm:$0xff] %v2571_v19  ;;  %v2573_v22 = vmax.f32 %v2541_v20, 0.0 }
 0x1dd   : > { %2604 = vst [vmem:[%s4165_s16 + $0xf0] sm:$0xff] %v2572_v21 }
 0x1de   : > { %2605 = vst [vmem:[%s4165_s16 + $0xf8] sm:$0xff] %v2573_v22 }
 0x1df PF: > { %s14_s15 = sadd.s32 1, %s3497_s15  }
 0x1e0   : > { %p11_p4 = scmp.ge.s32.totalorder %s14_s15, 6  }
 0x1e2   :  { %13 = sbr.rel (!%p11_p4) target bundleno = 1 (0x1), region = 66 }

// kernel: inception_d.9
= control target key start
LH: loop header
LB: loop body
LE: loop exit
PB: predicated region body
PF: predicated region fallthrough
CT: control target
= control target key end

     0   :  { %s3364_s15 = smov 0   ;;  %s4185_s0 = inlined_call_operand.vmem [shape: bf16[128,1728], index: 0, kind: input, shape index: {}]   ;;  %s4186_s1 = inlined_call_operand.vmem [shape: bf16[1728,256], index: 1, kind: input, shape index: {}]   ;;  %s4187_s2 = inlined_call_operand.vmem [shape: f32[1,256], index: 2, kind: input, shape index: {}]   ;;  %s4188_s3 = inlined_call_operand.vmem [shape: f32[1,256], index: 3, kind: input, shape index: {}]   ;;  %s4189_s4 = inlined_call_operand.vmem [shape: f32[128,256], index: 4, kind: output, shape index: {}]  }
   0x1 LB: > { %s2505_s16 = sadd.s32 4294967295, %s3337_s15   ;;  %p2509_p0 = scmp.ge.s32.totalorder %s3337_s15, 1  ;;  %s3337_s15 = sphi %s3364_s15, %s14_s15  }
   0x2   : > { %p164_p1 = scmp.lt.s32.totalorder %s3337_s15, 3 }
   0x4   : > { %p165_p2 = pnand %p2509_p0, %p164_p1 }
   0x5   : > { %v2923_v0 = vld [vmem:[%s4186_s1 + $0x4] ss:$8 sps:$4 sm:$0xff] (!%p165_p2)   ;;  %v2927_v2 = vld [vmem:[%s4186_s1] ss:$8 sps:$4 sm:$0xff] (!%p165_p2)   ;;  %v2929_v4 = vld [vmem:[%s4186_s1 + $0x14] ss:$8 sps:$4 sm:$0xff] (!%p165_p2)  }
   0x6   : > { %168 = sbr.rel (%p165_p2) target bundleno = 479 (0x1df), region = 36  ;;  %v2925_v1 = vld [vmem:[%s4186_s1 + $0x304] ss:$8 sps:$4 sm:$0xff] (!%p165_p2)   ;;  %1848 = vmatprep.subr.bf16.mxu1 (!%p165_p2), %v2923_v0  ;;  %v2928_v3 = vld [vmem:[%s4186_s1 + $0x300] ss:$8 sps:$4 sm:$0xff] (!%p165_p2)   ;;  %s2510_s29 = sshll.u32 (!%p165_p2), %s2505_s16, 3 }
   0x7   : > { %2067 = vmatprep.subr.bf16.mxu0 (!%p165_p2), %v2925_v1  ;;  %1849 = vmatpush1.bf16.msra.mxu1 (!%p165_p2), %v2927_v2  ;;  %v2931_v5 = vld [vmem:[%s4186_s1 + $0x314] ss:$8 sps:$4 sm:$0xff] (!%p165_p2)   ;;  %v2933_v6 = vld [vmem:[%s4186_s1 + $0x10] ss:$8 sps:$4 sm:$0xff] (!%p165_p2)   ;;  %v2935_v8 = vld [vmem:[%s4186_s1 + $0x24] ss:$8 sps:$4 sm:$0xff] (!%p165_p2)  }
   0x8   : > { %2068 = vmatpush1.bf16.msra.mxu0 (!%p165_p2), %v2928_v3  ;;  %1850 = vmatprep.subr.bf16.mxu1 (!%p165_p2), %v2929_v4  ;;  %v2934_v7 = vld [vmem:[%s4186_s1 + $0x310] ss:$8 sps:$4 sm:$0xff] (!%p165_p2)   ;;  %v2937_v9 = vld [vmem:[%s4186_s1 + $0x324] ss:$8 sps:$4 sm:$0xff] (!%p165_p2)   ;;  %v2939_v10 = vld [vmem:[%s4186_s1 + $0x20] ss:$8 sps:$4 sm:$0xff] (!%p165_p2)  }
   0x9   : > { %2069 = vmatprep.subr.bf16.mxu0 (!%p165_p2), %v2931_v5  ;;  %v2940_v11 = vld [vmem:[%s4186_s1 + $0x320] ss:$8 sps:$4 sm:$0xff] (!%p165_p2)   ;;  %v2941_v12 = vld [vmem:[%s4186_s1 + $0x34] ss:$8 sps:$4 sm:$0xff] (!%p165_p2)   ;;  %v2945_v14 = vld [vmem:[%s4186_s1 + $0x30] ss:$8 sps:$4 sm:$0xff] (!%p165_p2)  }
   0xa   : > { %v2943_v13 = vld [vmem:[%s4186_s1 + $0x334] ss:$8 sps:$4 sm:$0xff] (!%p165_p2)   ;;  %v2946_v15 = vld [vmem:[%s4186_s1 + $0x330] ss:$8 sps:$4 sm:$0xff] (!%p165_p2)   ;;  %v2947_v16 = vld [vmem:[%s4186_s1 + $0x44] ss:$8 sps:$4 sm:$0xff] (!%p165_p2)  }
   0xb   : > { %1851 = vmatpush1.bf16.msra.mxu1 (!%p165_p2), %v2933_v6  ;;  %v2949_v17 = vld [vmem:[%s4186_s1 + $0x344] ss:$8 sps:$4 sm:$0xff] (!%p165_p2)   ;;  %v2951_v18 = vld [vmem:[%s4186_s1 + $0x40] ss:$8 sps:$4 sm:$0xff] (!%p165_p2)   ;;  %v2953_v20 = vld [vmem:[%s4186_s1 + $0x54] ss:$8 sps:$4 sm:$0xff] (!%p165_p2)  }
   0xc   : > { %2070 = vmatpush1.bf16.msra.mxu0 (!%p165_p2), %v2934_v7  ;;  %1852 = vmatprep.subr.bf16.mxu1 (!%p165_p2), %v2935_v8  ;;  %v2952_v19 = vld [vmem:[%s4186_s1 + $0x340] ss:$8 sps:$4 sm:$0xff] (!%p165_p2)   ;;  %v2955_v21 = vld [vmem:[%s4186_s1 + $0x354] ss:$8 sps:$4 sm:$0xff] (!%p165_p2)   ;;  %v2957_v22 = vld [vmem:[%s4186_s1 + $0x50] ss:$8 sps:$4 sm:$0xff] (!%p165_p2)  }
   0xd   : > { %2071 = vmatprep.subr.bf16.mxu0 %v2937_v9  ;;  %v2958_v23 = vld [vmem:[%s4186_s1 + $0x350] ss:$8 sps:$4 sm:$0xff]   ;;  %v2959_v24 = vld [vmem:[%s4186_s1 + $0x64] ss:$8 sps:$4 sm:$0xff]   ;;  %v2963_v26 = vld [vmem:[%s4186_s1 + $0x60] ss:$8 sps:$4 sm:$0xff]  }
   0xe   : > { %v2961_v25 = vld [vmem:[%s4186_s1 + $0x364] ss:$8 sps:$4 sm:$0xff]   ;;  %v2964_v27 = vld [vmem:[%s4186_s1 + $0x360] ss:$8 sps:$4 sm:$0xff]   ;;  %v2965_v28 = vld [vmem:[%s4186_s1 + $0x74] ss:$8 sps:$4 sm:$0xff]  }
   0xf   : > { %1853 = vmatpush1.bf16.msra.mxu1 %v2939_v10  ;;  %v2967_v29 = vld [vmem:[%s4186_s1 + $0x374] ss:$8 sps:$4 sm:$0xff]   ;;  %v2969_v30 = vld [vmem:[%s4186_s1 + $0x70] ss:$8 sps:$4 sm:$0xff]   ;;  %v2971_v32 = vld [vmem:[%s4186_s1 + $0x84] ss:$8 sps:$4 sm:$0xff]  }
  0x10   : > { %2072 = vmatpush1.bf16.msra.mxu0 %v2940_v11  ;;  %1854 = vmatprep.subr.bf16.mxu1 %v2941_v12  ;;  %v2970_v31 = vld [vmem:[%s4186_s1 + $0x370] ss:$8 sps:$4 sm:$0xff]   ;;  %p193_p3 = scmp.lt.s32.totalorder %s2510_s29, 15  ;;  %v2973_v33 = vld [vmem:[%s4186_s1 + $0x384] ss:$8 sps:$4 sm:$0xff]   ;;  %vm1835_vm0 = vcmask 523264  }
  0x11   : > { %2073 = vmatprep.subr.bf16.mxu0 %v2943_v13  ;;  %v2975_v34 = vld [vmem:[%s4186_s1 + $0x80] ss:$8 sps:$4 sm:$0xff]   ;;  %v2977_v36 = vld [vmem:[%s4186_s1 + $0x94] ss:$8 sps:$4 sm:$0xff]   ;;  %v2981_v38 = vld [vmem:[%s4186_s1 + $0x90] ss:$8 sps:$4 sm:$0xff]  }
  0x12   : > { %v2976_v35 = vld [vmem:[%s4186_s1 + $0x380] ss:$8 sps:$4 sm:$0xff]   ;;  %s4191_s29 = smov (!%p193_p3, %s2510_s29), 15  ;;  %v2979_v37 = vld [vmem:[%s4186_s1 + $0x394] ss:$8 sps:$4 sm:$0xff]  }
  0x13   : > { %1855 = vmatpush1.bf16.msra.mxu1 %v2945_v14  ;;  %v2982_v39 = vld [vmem:[%s4186_s1 + $0x390] ss:$8 sps:$4 sm:$0xff]   ;;  %v2983_v40 = vld [vmem:[%s4186_s1 + $0xa4] ss:$8 sps:$4 sm:$0xff]   ;;  %s2914_s27 = smul.u32 56, %s4191_s29  ;;  %s2793_s13 = sshll.u32 %s4191_s29, 4 }
  0x14   : > { %2074 = vmatpush1.bf16.msra.mxu0 %v2946_v15  ;;  %1856 = vmatprep.subr.bf16.mxu1 %v2947_v16  ;;  %v2985_v41 = vld [vmem:[%s4186_s1 + $0x3a4] ss:$8 sps:$4 sm:$0xff]   ;;  %v2987_v42 = vld [vmem:[%s4186_s1 + $0xa0] ss:$8 sps:$4 sm:$0xff]   ;;  %v2989_v44 = vld [vmem:[%s4186_s1 + $0xb4] ss:$8 sps:$4 sm:$0xff]   ;;  %s4132_s17 = scalar_lea.vmem %s4189_s4, %s2793_s13 }
  0x15   : > { %2075 = vmatprep.subr.bf16.mxu0 %v2949_v17  ;;  %v2988_v43 = vld [vmem:[%s4186_s1 + $0x3a0] ss:$8 sps:$4 sm:$0xff]   ;;  %s3515_s12 = scalar_lea.vmem %s4185_s0, %s2914_s27  ;;  %v2991_v45 = vld [vmem:[%s4186_s1 + $0x3b4] ss:$8 sps:$4 sm:$0xff]   ;;  %v2993_v46 = vld [vmem:[%s4186_s1 + $0xb0] ss:$8 sps:$4 sm:$0xff]  }
  0x16   : > { %v2994_v47 = vld [vmem:[%s4186_s1 + $0x3b0] ss:$8 sps:$4 sm:$0xff]   ;;  %v3021_v48 = vld [vmem:[%s3515_s12 + $0x4] ss:$56 sps:$4 sm:$0xff]   ;;  %v2999_v52 = vld [vmem:[%s4186_s1 + $0xc0] ss:$8 sps:$4 sm:$0xff]  }
  0x17   : > { %1857 = vmatpush1.bf16.msra.mxu1 %v2951_v18  ;;  %v2995_v49 = vld [vmem:[%s4186_s1 + $0xc4] ss:$8 sps:$4 sm:$0xff]   ;;  %1880 = vmatprep.mubr.bf16.mxu1 %v3021_v48  ;;  %v3027_v51 = vld [vmem:[%s3515_s12 + $0x1c] ss:$56 sps:$4 sm:$0xff]   ;;  %v3000_v53 = vld [vmem:[%s4186_s1 + $0x3c0] ss:$8 sps:$4 sm:$0xff]  }
  0x18   : > { %2076 = vmatpush1.bf16.msra.mxu0 %v2952_v19  ;;  %1858 = vmatprep.subr.bf16.mxu1 %v2953_v20  ;;  %v2997_v50 = vld [vmem:[%s4186_s1 + $0x3c4] ss:$8 sps:$4 sm:$0xff]   ;;  %v3001_v54 = vld [vmem:[%s4186_s1 + $0xd4] ss:$8 sps:$4 sm:$0xff]   ;;  %v3005_v56 = vld [vmem:[%s4186_s1 + $0xd0] ss:$8 sps:$4 sm:$0xff]  }
  0x19   : > { %2077 = vmatprep.subr.bf16.mxu0 %v2955_v21  ;;  %v3003_v55 = vld [vmem:[%s4186_s1 + $0x3d4] ss:$8 sps:$4 sm:$0xff]   ;;  %2099 = vmatprep.mubr.bf16.mxu0 %v3027_v51  ;;  %v3006_v57 = vld [vmem:[%s4186_s1 + $0x3d0] ss:$8 sps:$4 sm:$0xff]   ;;  %v3007_v58 = vld [vmem:[%s4186_s1 + $0xe4] ss:$8 sps:$4 sm:$0xff]  }
  0x1a   : > { %v3009_v59 = vld [vmem:[%s4186_s1 + $0x3e4] ss:$8 sps:$4 sm:$0xff]   ;;  %v3011_v60 = vld [vmem:[%s4186_s1 + $0xe0] ss:$8 sps:$4 sm:$0xff]   ;;  %v3013_v62 = vld [vmem:[%s4186_s1 + $0xf4] ss:$8 sps:$4 sm:$0xff]  }
  0x1b   : > { %1859 = vmatpush1.bf16.msra.mxu1 %v2957_v22  ;;  %v3012_v61 = vld [vmem:[%s4186_s1 + $0x3e0] ss:$8 sps:$4 sm:$0xff]   ;;  %v3015_v63 = vld [vmem:[%s4186_s1 + $0x3f4] ss:$8 sps:$4 sm:$0xff]   ;;  %v3017_v0 = vld [vmem:[%s4186_s1 + $0xf0] ss:$8 sps:$4 sm:$0xff]  }
  0x1c   : > { %2078 = vmatpush1.bf16.msra.mxu0 %v2958_v23  ;;  %1860 = vmatprep.subr.bf16.mxu1 %v2959_v24  ;;  %v3018_v1 = vld [vmem:[%s4186_s1 + $0x3f0] ss:$8 sps:$4 sm:$0xff]   ;;  %v3024_v2 = vld [vmem:[%s4186_s1 + $0x104] ss:$8 sps:$4 sm:$0xff]   ;;  %v3022_v5 = vld [vmem:[%s4186_s1 + $0x100] ss:$8 sps:$4 sm:$0xff]  }
  0x1d   : > { %2079 = vmatprep.subr.bf16.mxu0 %v2961_v25  ;;  %v3030_v3 = vld [vmem:[%s4186_s1 + $0x404] ss:$8 sps:$4 sm:$0xff]   ;;  %v3019_v4 = vld [vmem:[%s3515_s12] ss:$56 sps:$4 sm:$0xff]   ;;  %v3033_v8 = vld [vmem:[%s4186_s1 + $0x114] ss:$8 sps:$4 sm:$0xff]  }
  0x1e   : > { %v3025_v6 = vld [vmem:[%s3515_s12 + $0x18] ss:$56 sps:$4 sm:$0xff]   ;;  %v3028_v7 = vld [vmem:[%s4186_s1 + $0x400] ss:$8 sps:$4 sm:$0xff]   ;;  %v3036_v9 = vld [vmem:[%s4186_s1 + $0x414] ss:$8 sps:$4 sm:$0xff]  }
  0x1f   : > { %1861 = vmatpush1.bf16.msra.mxu1 %v2963_v26  ;;  %v3031_v10 = vld [vmem:[%s4186_s1 + $0x110] ss:$8 sps:$4 sm:$0xff]   ;;  %v3039_v12 = vld [vmem:[%s4186_s1 + $0x124] ss:$8 sps:$4 sm:$0xff]   ;;  %v3037_v14 = vld [vmem:[%s4186_s1 + $0x120] ss:$8 sps:$4 sm:$0xff]  }
  0x20   : > { %2080 = vmatpush1.bf16.msra.mxu0 %v2964_v27  ;;  %1862 = vmatprep.subr.bf16.mxu1 %v2965_v28  ;;  %v3034_v11 = vld [vmem:[%s4186_s1 + $0x410] ss:$8 sps:$4 sm:$0xff]   ;;  %v3042_v13 = vld [vmem:[%s4186_s1 + $0x424] ss:$8 sps:$4 sm:$0xff]   ;;  %v3040_v15 = vld [vmem:[%s4186_s1 + $0x420] ss:$8 sps:$4 sm:$0xff]  }
  0x21   : > { %2081 = vmatprep.subr.bf16.mxu0 %v2967_v29  ;;  %v3045_v16 = vld [vmem:[%s4186_s1 + $0x134] ss:$8 sps:$4 sm:$0xff]   ;;  %v3043_v19 = vld [vmem:[%s4186_s1 + $0x130] ss:$8 sps:$4 sm:$0xff]   ;;  %v3090_v21 = vld [vmem:[%s3515_s12 + $0x8c] ss:$56 sps:$4 sm:$0xff]  }
  0x22   : > { %v3085_v17 = vld [vmem:[%s3515_s12 + $0x74] ss:$56 sps:$4 sm:$0xff]   ;;  %v3046_v20 = vld [vmem:[%s4186_s1 + $0x430] ss:$8 sps:$4 sm:$0xff]   ;;  %v3096_v25 = vld [vmem:[%s3515_s12 + $0x88] ss:$56 sps:$4 sm:$0xff]  }
  0x23   : > { %1863 = vmatpush1.bf16.msra.mxu1 %v2969_v30  ;;  %v3048_v18 = vld [vmem:[%s4186_s1 + $0x434] ss:$8 sps:$4 sm:$0xff]   ;;  %v3051_v22 = vld [vmem:[%s4186_s1 + $0x144] ss:$8 sps:$4 sm:$0xff]   ;;  %v3095_v24 = vld [vmem:[%s3515_s12 + $0x70] ss:$56 sps:$4 sm:$0xff]  }
  0x24   : > { %2082 = vmatpush1.bf16.msra.mxu0 %v2970_v31  ;;  %1864 = vmatprep.subr.bf16.mxu1 %v2971_v32  ;;  %v3054_v23 = vld [vmem:[%s4186_s1 + $0x444] ss:$8 sps:$4 sm:$0xff]   ;;  %v3049_v26 = vld [vmem:[%s4186_s1 + $0x140] ss:$8 sps:$4 sm:$0xff]   ;;  %v3057_v28 = vld [vmem:[%s4186_s1 + $0x154] ss:$8 sps:$4 sm:$0xff]  }
  0x25   : > { %2083 = vmatprep.subr.bf16.mxu0 %v2973_v33  ;;  %v3052_v27 = vld [vmem:[%s4186_s1 + $0x440] ss:$8 sps:$4 sm:$0xff]   ;;  %v3103_v29 = vld [vmem:[%s3515_s12 + $0xe4] ss:$56 sps:$4 sm:$0xff]   ;;  %v3055_v31 = vld [vmem:[%s4186_s1 + $0x150] ss:$8 sps:$4 sm:$0xff]  }
  0x26   : > { %v3060_v30 = vld [vmem:[%s4186_s1 + $0x454] ss:$8 sps:$4 sm:$0xff]   ;;  %v3058_v32 = vld [vmem:[%s4186_s1 + $0x450] ss:$8 sps:$4 sm:$0xff]   ;;  %v3076_v51 = vld [vmem:[%s4186_s1 + $0x480] ss:$8 sps:$4 sm:$0xff]  }
  0x27   : > { %1865 = vmatpush1.bf16.msra.mxu1 %v2975_v34  ;;  %v3108_v33 = vld [vmem:[%s3515_s12 + $0xfc] ss:$56 sps:$4 sm:$0xff]   ;;  %v3063_v34 = vld [vmem:[%s4186_s1 + $0x164] ss:$8 sps:$4 sm:$0xff]   ;;  %v3131_v48 = vld [vmem:[%s3515_s12 + $0x150] ss:$56 sps:$4 sm:$0xff]  }
  0x28   : > { %2084 = vmatpush1.bf16.msra.mxu0 %v2976_v35  ;;  %1866 = vmatprep.subr.bf16.mxu1 %v2977_v36  ;;  %v3066_v35 = vld [vmem:[%s4186_s1 + $0x464] ss:$8 sps:$4 sm:$0xff]   ;;  %v3113_v36 = vld [vmem:[%s3515_s12 + $0xe0] ss:$56 sps:$4 sm:$0xff]  }
  0x29   : > { %2085 = vmatprep.subr.bf16.mxu0 %v2979_v37  ;;  %v3114_v37 = vld [vmem:[%s3515_s12 + $0xf8] ss:$56 sps:$4 sm:$0xff]  }
  0x2b   : > { %1867 = vmatpush1.bf16.msra.mxu1 %v2981_v38  ;;  %v3061_v38 = vld [vmem:[%s4186_s1 + $0x160] ss:$8 sps:$4 sm:$0xff]  }
  0x2c   : > { %2086 = vmatpush1.bf16.msra.mxu0 %v2982_v39  ;;  %1868 = vmatprep.subr.bf16.mxu1 %v2983_v40  ;;  %v3064_v39 = vld [vmem:[%s4186_s1 + $0x460] ss:$8 sps:$4 sm:$0xff]   ;;  %v3069_v40 = vld [vmem:[%s4186_s1 + $0x174] ss:$8 sps:$4 sm:$0xff]  }
  0x2d   : > { %2087 = vmatprep.subr.bf16.mxu0 %v2985_v41  ;;  %v3121_v41 = vld [vmem:[%s3515_s12 + $0x154] ss:$56 sps:$4 sm:$0xff]  }
  0x2f   : > { %1869 = vmatpush1.bf16.msra.mxu1 %v2987_v42  ;;  %v3072_v42 = vld [vmem:[%s4186_s1 + $0x474] ss:$8 sps:$4 sm:$0xff]  }
  0x30   : > { %2088 = vmatpush1.bf16.msra.mxu0 %v2988_v43  ;;  %1870 = vmatprep.subr.bf16.mxu1 %v2989_v44  ;;  %v3067_v43 = vld [vmem:[%s4186_s1 + $0x170] ss:$8 sps:$4 sm:$0xff]  }
  0x31   : > { %2089 = vmatprep.subr.bf16.mxu0 %v2991_v45  ;;  %v3070_v44 = vld [vmem:[%s4186_s1 + $0x470] ss:$8 sps:$4 sm:$0xff]   ;;  %v3126_v45 = vld [vmem:[%s3515_s12 + $0x16c] ss:$56 sps:$4 sm:$0xff]  }
  0x33   : > { %1871 = vmatpush1.bf16.msra.mxu1 %v2993_v46  ;;  %v3075_v46 = vld [vmem:[%s4186_s1 + $0x184] ss:$8 sps:$4 sm:$0xff]  }
  0x34   : > { %2090 = vmatpush1.bf16.msra.mxu0 %v2994_v47  ;;  %1872 = vmatprep.subr.bf16.mxu1 %v2995_v49  ;;  %v3078_v47 = vld [vmem:[%s4186_s1 + $0x484] ss:$8 sps:$4 sm:$0xff]   ;;  %v3132_v49 = vld [vmem:[%s3515_s12 + $0x168] ss:$56 sps:$4 sm:$0xff]  }
  0x35   : > { %2091 = vmatprep.subr.bf16.mxu0 %v2997_v50  ;;  %v3073_v50 = vld [vmem:[%s4186_s1 + $0x180] ss:$8 sps:$4 sm:$0xff]  }
  0x37   : > { %1873 = vmatpush1.bf16.msra.mxu1 %v2999_v52  ;;  %v3081_v52 = vld [vmem:[%s4186_s1 + $0x194] ss:$8 sps:$4 sm:$0xff]  }
  0x38   : > { %2092 = vmatpush1.bf16.msra.mxu0 %v3000_v53  ;;  %1874 = vmatprep.subr.bf16.mxu1 %v3001_v54  ;;  %v3084_v53 = vld [vmem:[%s4186_s1 + $0x494] ss:$8 sps:$4 sm:$0xff]   ;;  %v3141_v54 = vld [vmem:[%s3515_s12 + $0xc] ss:$56 sps:$4 sm:$0xff]  }
  0x39   : > { %2093 = vmatprep.subr.bf16.mxu0 %v3003_v55  ;;  %v3079_v55 = vld [vmem:[%s4186_s1 + $0x190] ss:$8 sps:$4 sm:$0xff]  }
  0x3b   : > { %1875 = vmatpush1.bf16.msra.mxu1 %v3005_v56  ;;  %v3082_v56 = vld [vmem:[%s4186_s1 + $0x490] ss:$8 sps:$4 sm:$0xff]  }
  0x3c   : > { %2094 = vmatpush1.bf16.msra.mxu0 %v3006_v57  ;;  %1876 = vmatprep.subr.bf16.mxu1 %v3007_v58  ;;  %v3147_v57 = vld [vmem:[%s3515_s12 + $0x24] ss:$56 sps:$4 sm:$0xff]  }
  0x3d   : > { %2095 = vmatprep.subr.bf16.mxu0 %v3009_v59  ;;  %v3089_v58 = vld [vmem:[%s4186_s1 + $0x1a4] ss:$8 sps:$4 sm:$0xff]  }
  0x3e   : > { %v3094_v59 = vld [vmem:[%s4186_s1 + $0x4a4] ss:$8 sps:$4 sm:$0xff]  }
  0x3f   : > { %1877 = vmatpush1.bf16.msra.mxu1 %v3011_v60  ;;  %v3087_v60 = vld [vmem:[%s4186_s1 + $0x1a0] ss:$8 sps:$4 sm:$0xff]  }
  0x40   : > { %2096 = vmatpush1.bf16.msra.mxu0 %v3012_v61  ;;  %1878 = vmatprep.subr.bf16.mxu1 %v3013_v62  ;;  %v3092_v61 = vld [vmem:[%s4186_s1 + $0x4a0] ss:$8 sps:$4 sm:$0xff]   ;;  %v3099_v62 = vld [vmem:[%s4186_s1 + $0x1b4] ss:$8 sps:$4 sm:$0xff]  }
  0x41   : > { %2097 = vmatprep.subr.bf16.mxu0 %v3015_v63  ;;  %v3102_v63 = vld [vmem:[%s4186_s1 + $0x4b4] ss:$8 sps:$4 sm:$0xff]  }
  0x43   : > { %1879 = vmatpush1.bf16.msra.mxu1 %v3017_v0  ;;  %v3097_v0 = vld [vmem:[%s4186_s1 + $0x1b0] ss:$8 sps:$4 sm:$0xff]  }
  0x44   : > { %2098 = vmatpush1.bf16.msra.mxu0 %v3018_v1  ;;  %1921 = vmatprep.subr.bf16.mxu1 %v3024_v2  ;;  %v3100_v1 = vld [vmem:[%s4186_s1 + $0x4b0] ss:$8 sps:$4 sm:$0xff]   ;;  %v3107_v2 = vld [vmem:[%s4186_s1 + $0x1c4] ss:$8 sps:$4 sm:$0xff]  }
  0x45   : > { %2140 = vmatprep.subr.bf16.mxu0 %v3030_v3  ;;  %v3112_v3 = vld [vmem:[%s4186_s1 + $0x4c4] ss:$8 sps:$4 sm:$0xff]  }
  0x46   : > { %1881 = vmatmul.mubr.bf16.vlgmr.msra.gmra.mrb[0].mxu1 %v3019_v4  ;;  %v3105_v4 = vld [vmem:[%s4186_s1 + $0x1c0] ss:$8 sps:$4 sm:$0xff]  }
  0x47   : > { %2100 = vmatmul.mubr.bf16.vlgmr.msra.gmra.mrb[0].mxu0 %v3025_v6  ;;  %1922 = vmatpush1.bf16.msra.mxu1 %v3022_v5  ;;  %v3110_v5 = vld [vmem:[%s4186_s1 + $0x4c0] ss:$8 sps:$4 sm:$0xff]   ;;  %v3117_v6 = vld [vmem:[%s4186_s1 + $0x1d4] ss:$8 sps:$4 sm:$0xff]  }
  0x48   : > { %2141 = vmatpush1.bf16.msra.mxu0 %v3028_v7  ;;  %1923 = vmatprep.subr.bf16.mxu1 %v3033_v8  ;;  %v3120_v7 = vld [vmem:[%s4186_s1 + $0x4d4] ss:$8 sps:$4 sm:$0xff]   ;;  %v3115_v8 = vld [vmem:[%s4186_s1 + $0x1d0] ss:$8 sps:$4 sm:$0xff]  }
  0x49   : > { %2142 = vmatprep.subr.bf16.mxu0 %v3036_v9  ;;  %1890 = vmatprep.mubr.bf16.mxu1 %v3085_v17  ;;  %v3118_v9 = vld [vmem:[%s4186_s1 + $0x4d0] ss:$8 sps:$4 sm:$0xff]  }
  0x4a   : > { %2109 = vmatprep.mubr.bf16.mxu0 %v3090_v21  ;;  %v3136_v17 = vld [vmem:[%s4186_s1 + $0x4f0] ss:$8 sps:$4 sm:$0xff]   ;;  %v3142_v21 = vld [vmem:[%s4186_s1 + $0x200] ss:$8 sps:$4 sm:$0xff]  }
  0x4b   : > { %1924 = vmatpush1.bf16.msra.mxu1 %v3031_v10  ;;  %v3125_v10 = vld [vmem:[%s4186_s1 + $0x1e4] ss:$8 sps:$4 sm:$0xff]  }
  0x4c   : > { %2143 = vmatpush1.bf16.msra.mxu0 %v3034_v11  ;;  %1925 = vmatprep.subr.bf16.mxu1 %v3039_v12  ;;  %v3130_v11 = vld [vmem:[%s4186_s1 + $0x4e4] ss:$8 sps:$4 sm:$0xff]   ;;  %v3123_v12 = vld [vmem:[%s4186_s1 + $0x1e0] ss:$8 sps:$4 sm:$0xff]  }
  0x4d   : > { %2144 = vmatprep.subr.bf16.mxu0 %v3042_v13  ;;  %v3128_v13 = vld [vmem:[%s4186_s1 + $0x4e0] ss:$8 sps:$4 sm:$0xff]  }
  0x4e   : > { %1891 = vmatmul.mubr.bf16.gmra.mrb[4].mxu1 %v3095_v24  ;;  %v3153_v24 = vld [vmem:[%s4186_s1 + $0x214] ss:$8 sps:$4 sm:$0xff]  }
  0x4f   : > { %1926 = vmatpush1.bf16.msra.mxu1 %v3037_v14  ;;  %2110 = vmatmul.mubr.bf16.gmra.mrb[4].mxu0 %v3096_v25  ;;  %v3135_v14 = vld [vmem:[%s4186_s1 + $0x1f4] ss:$8 sps:$4 sm:$0xff]  }
  0x50   : > { %2145 = vmatpush1.bf16.msra.mxu0 %v3040_v15  ;;  %1927 = vmatprep.subr.bf16.mxu1 %v3045_v16  ;;  %v3138_v15 = vld [vmem:[%s4186_s1 + $0x4f4] ss:$8 sps:$4 sm:$0xff]   ;;  %v3133_v16 = vld [vmem:[%s4186_s1 + $0x1f0] ss:$8 sps:$4 sm:$0xff]  }
  0x51   : > { %2146 = vmatprep.subr.bf16.mxu0 %v3048_v18  ;;  %1900 = vmatprep.mubr.bf16.mxu1 %v3103_v29  ;;  %v3144_v18 = vld [vmem:[%s4186_s1 + $0x204] ss:$8 sps:$4 sm:$0xff]   ;;  %v3156_v25 = vld [vmem:[%s4186_s1 + $0x514] ss:$8 sps:$4 sm:$0xff]   ;;  %v3154_v29 = vld [vmem:[%s4186_s1 + $0x510] ss:$8 sps:$4 sm:$0xff]  }
  0x52   : > { %2119 = vmatprep.mubr.bf16.mxu0 %v3108_v33  ;;  %v3209_v33 = vld [vmem:[%s3515_s12 + $0x78] ss:$56 sps:$4 sm:$0xff]  }
  0x53   : > { %1928 = vmatpush1.bf16.msra.mxu1 %v3043_v19  ;;  %v3150_v19 = vld [vmem:[%s4186_s1 + $0x504] ss:$8 sps:$4 sm:$0xff]  }
  0x54   : > { %2147 = vmatpush1.bf16.msra.mxu0 %v3046_v20  ;;  %1929 = vmatprep.subr.bf16.mxu1 %v3051_v22  ;;  %v3139_v20 = vld [vmem:[%s3515_s12 + $0x8] ss:$56 sps:$4 sm:$0xff]  }
  0x55   : > { %2148 = vmatprep.subr.bf16.mxu0 %v3054_v23  ;;  %v3145_v22 = vld [vmem:[%s3515_s12 + $0x20] ss:$56 sps:$4 sm:$0xff]  }
  0x56   : > { %1901 = vmatmul.mubr.bf16.gmra.mrb[8].mxu1 %v3113_v36  ;;  %v3148_v23 = vld [vmem:[%s4186_s1 + $0x500] ss:$8 sps:$4 sm:$0xff]   ;;  %v3165_v36 = vld [vmem:[%s4186_s1 + $0x234] ss:$8 sps:$4 sm:$0xff]  }
  0x57   : > { %1930 = vmatpush1.bf16.msra.mxu1 %v3049_v26  ;;  %2120 = vmatmul.mubr.bf16.gmra.mrb[8].mxu0 %v3114_v37  ;;  %v3205_v26 = vld [vmem:[%s3515_s12 + $0x7c] ss:$56 sps:$4 sm:$0xff]  }
  0x58   : > { %2149 = vmatpush1.bf16.msra.mxu0 %v3052_v27  ;;  %1931 = vmatprep.subr.bf16.mxu1 %v3057_v28  ;;  %v3207_v27 = vld [vmem:[%s3515_s12 + $0x94] ss:$56 sps:$4 sm:$0xff]   ;;  %v3151_v28 = vld [vmem:[%s4186_s1 + $0x210] ss:$8 sps:$4 sm:$0xff]  }
  0x59   : > { %2150 = vmatprep.subr.bf16.mxu0 %v3060_v30  ;;  %1910 = vmatprep.mubr.bf16.mxu1 %v3121_v41  ;;  %v3159_v30 = vld [vmem:[%s4186_s1 + $0x224] ss:$8 sps:$4 sm:$0xff]   ;;  %v3168_v37 = vld [vmem:[%s4186_s1 + $0x534] ss:$8 sps:$4 sm:$0xff]   ;;  %v3166_v41 = vld [vmem:[%s4186_s1 + $0x530] ss:$8 sps:$4 sm:$0xff]  }
  0x5a   : > { %2129 = vmatprep.mubr.bf16.mxu0 %v3126_v45  ;;  %v3227_v45 = vld [vmem:[%s3515_s12 + $0xe8] ss:$56 sps:$4 sm:$0xff]  }
  0x5b   : > { %1932 = vmatpush1.bf16.msra.mxu1 %v3055_v31  ;;  %v3162_v31 = vld [vmem:[%s4186_s1 + $0x524] ss:$8 sps:$4 sm:$0xff]  }
  0x5c   : > { %2151 = vmatpush1.bf16.msra.mxu0 %v3058_v32  ;;  %1933 = vmatprep.subr.bf16.mxu1 %v3063_v34  ;;  %v3157_v32 = vld [vmem:[%s4186_s1 + $0x220] ss:$8 sps:$4 sm:$0xff]  }
  0x5d   : > { %2152 = vmatprep.subr.bf16.mxu0 %v3066_v35  ;;  %v3213_v34 = vld [vmem:[%s3515_s12 + $0x90] ss:$56 sps:$4 sm:$0xff]  }
  0x5e   : > { %1911 = vmatmul.mubr.bf16.gmra.mrb[12].mxu1 %v3131_v48  ;;  %v3160_v35 = vld [vmem:[%s4186_s1 + $0x520] ss:$8 sps:$4 sm:$0xff]   ;;  %v3177_v48 = vld [vmem:[%s4186_s1 + $0x254] ss:$8 sps:$4 sm:$0xff]  }
  0x5f   : > { %1934 = vmatpush1.bf16.msra.mxu1 %v3061_v38  ;;  %2130 = vmatmul.mubr.bf16.gmra.mrb[12].mxu0 %v3132_v49  ;;  %v3223_v38 = vld [vmem:[%s3515_s12 + $0xec] ss:$56 sps:$4 sm:$0xff]   ;;  %v3180_v49 = vld [vmem:[%s4186_s1 + $0x554] ss:$8 sps:$4 sm:$0xff]  }
  0x60   : > { %2153 = vmatpush1.bf16.msra.mxu0 %v3064_v39  ;;  %1935 = vmatprep.subr.bf16.mxu1 %v3069_v40  ;;  %v3225_v39 = vld [vmem:[%s3515_s12 + $0x104] ss:$56 sps:$4 sm:$0xff]   ;;  %v3163_v40 = vld [vmem:[%s4186_s1 + $0x230] ss:$8 sps:$4 sm:$0xff]  }
  0x61   : > { %2154 = vmatprep.subr.bf16.mxu0 %v3072_v42  ;;  %1953 = vmatprep.mubr.bf16.mxu1 %v3141_v54  ;;  %v3171_v42 = vld [vmem:[%s4186_s1 + $0x244] ss:$8 sps:$4 sm:$0xff]  }
  0x62   : > { %2172 = vmatprep.mubr.bf16.mxu0 %v3147_v57  ;;  %v3183_v54 = vld [vmem:[%s4186_s1 + $0x264] ss:$8 sps:$4 sm:$0xff]   ;;  %v3184_v57 = vld [vmem:[%s4186_s1 + $0x560] ss:$8 sps:$4 sm:$0xff]  }
  0x63   : > { %1936 = vmatpush1.bf16.msra.mxu1 %v3067_v43  ;;  %v3174_v43 = vld [vmem:[%s4186_s1 + $0x544] ss:$8 sps:$4 sm:$0xff]  }
  0x64   : > { %2155 = vmatpush1.bf16.msra.mxu0 %v3070_v44  ;;  %1937 = vmatprep.subr.bf16.mxu1 %v3075_v46  ;;  %v3169_v44 = vld [vmem:[%s4186_s1 + $0x240] ss:$8 sps:$4 sm:$0xff]  }
  0x65   : > { %2156 = vmatprep.subr.bf16.mxu0 %v3078_v47  ;;  %v3231_v46 = vld [vmem:[%s3515_s12 + $0x100] ss:$56 sps:$4 sm:$0xff]  }
  0x66   : > { %v3172_v47 = vld [vmem:[%s4186_s1 + $0x540] ss:$8 sps:$4 sm:$0xff]  }
  0x67   : > { %1938 = vmatpush1.bf16.msra.mxu1 %v3073_v50  ;;  %v3241_v50 = vld [vmem:[%s3515_s12 + $0x15c] ss:$56 sps:$4 sm:$0xff]  }
  0x68   : > { %2157 = vmatpush1.bf16.msra.mxu0 %v3076_v51  ;;  %1939 = vmatprep.subr.bf16.mxu1 %v3081_v52  ;;  %v3243_v51 = vld [vmem:[%s3515_s12 + $0x174] ss:$56 sps:$4 sm:$0xff]   ;;  %v3175_v52 = vld [vmem:[%s4186_s1 + $0x250] ss:$8 sps:$4 sm:$0xff]  }
  0x69   : > { %2158 = vmatprep.subr.bf16.mxu0 %v3084_v53  ;;  %v3178_v53 = vld [vmem:[%s4186_s1 + $0x550] ss:$8 sps:$4 sm:$0xff]  }
  0x6b   : > { %1940 = vmatpush1.bf16.msra.mxu1 %v3079_v55  ;;  %v3186_v55 = vld [vmem:[%s4186_s1 + $0x564] ss:$8 sps:$4 sm:$0xff]  }
  0x6c   : > { %2159 = vmatpush1.bf16.msra.mxu0 %v3082_v56  ;;  %1941 = vmatprep.subr.bf16.mxu1 %v3089_v58  ;;  %v3181_v56 = vld [vmem:[%s4186_s1 + $0x260] ss:$8 sps:$4 sm:$0xff]   ;;  %v3245_v58 = vld [vmem:[%s3515_s12 + $0x158] ss:$56 sps:$4 sm:$0xff]  }
  0x6d   : > { %2160 = vmatprep.subr.bf16.mxu0 %v3094_v59  ;;  %v3249_v59 = vld [vmem:[%s3515_s12 + $0x170] ss:$56 sps:$4 sm:$0xff]  }
  0x6f   : > { %1942 = vmatpush1.bf16.msra.mxu1 %v3087_v60  ;;  %v3189_v60 = vld [vmem:[%s4186_s1 + $0x274] ss:$8 sps:$4 sm:$0xff]  }
  0x70   : > { %2161 = vmatpush1.bf16.msra.mxu0 %v3092_v61  ;;  %1943 = vmatprep.subr.bf16.mxu1 %v3099_v62  ;;  %v3192_v61 = vld [vmem:[%s4186_s1 + $0x574] ss:$8 sps:$4 sm:$0xff]  }
  0x71   : > { %2162 = vmatprep.subr.bf16.mxu0 %v3102_v63  ;;  %v3261_v62 = vld [vmem:[%s3515_s12 + $0x14] ss:$56 sps:$4 sm:$0xff]  }
  0x72   : > { %v3264_v63 = vld [vmem:[%s3515_s12 + $0x2c] ss:$56 sps:$4 sm:$0xff]  }
  0x73   : > { %1944 = vmatpush1.bf16.msra.mxu1 %v3097_v0  ;;  %v3187_v0 = vld [vmem:[%s4186_s1 + $0x270] ss:$8 sps:$4 sm:$0xff]  }
  0x74   : > { %2163 = vmatpush1.bf16.msra.mxu0 %v3100_v1  ;;  %1945 = vmatprep.subr.bf16.mxu1 %v3107_v2  ;;  %v3190_v1 = vld [vmem:[%s4186_s1 + $0x570] ss:$8 sps:$4 sm:$0xff]   ;;  %v3195_v2 = vld [vmem:[%s4186_s1 + $0x284] ss:$8 sps:$4 sm:$0xff]  }
  0x75   : > { %2164 = vmatprep.subr.bf16.mxu0 %v3112_v3  ;;  %v3198_v3 = vld [vmem:[%s4186_s1 + $0x584] ss:$8 sps:$4 sm:$0xff]  }
  0x77   : > { %1946 = vmatpush1.bf16.msra.mxu1 %v3105_v4  ;;  %v3193_v4 = vld [vmem:[%s4186_s1 + $0x280] ss:$8 sps:$4 sm:$0xff]  }
  0x78   : > { %2165 = vmatpush1.bf16.msra.mxu0 %v3110_v5  ;;  %1947 = vmatprep.subr.bf16.mxu1 %v3117_v6  ;;  %v3196_v5 = vld [vmem:[%s4186_s1 + $0x580] ss:$8 sps:$4 sm:$0xff]   ;;  %v3201_v6 = vld [vmem:[%s4186_s1 + $0x294] ss:$8 sps:$4 sm:$0xff]  }
  0x79   : > { %2166 = vmatprep.subr.bf16.mxu0 %v3120_v7  ;;  %v3204_v7 = vld [vmem:[%s4186_s1 + $0x594] ss:$8 sps:$4 sm:$0xff]  }
  0x7b   : > { %1948 = vmatpush1.bf16.msra.mxu1 %v3115_v8  ;;  %v3199_v8 = vld [vmem:[%s4186_s1 + $0x290] ss:$8 sps:$4 sm:$0xff]  }
  0x7c   : > { %2167 = vmatpush1.bf16.msra.mxu0 %v3118_v9  ;;  %1949 = vmatprep.subr.bf16.mxu1 %v3125_v10  ;;  %v3202_v9 = vld [vmem:[%s4186_s1 + $0x590] ss:$8 sps:$4 sm:$0xff]   ;;  %v3212_v10 = vld [vmem:[%s4186_s1 + $0x2a4] ss:$8 sps:$4 sm:$0xff]  }
  0x7d   : > { %2168 = vmatprep.subr.bf16.mxu0 %v3130_v11  ;;  %v3216_v11 = vld [vmem:[%s4186_s1 + $0x5a4] ss:$8 sps:$4 sm:$0xff]  }
  0x7f   : > { %1950 = vmatpush1.bf16.msra.mxu1 %v3123_v12  ;;  %v3210_v12 = vld [vmem:[%s4186_s1 + $0x2a0] ss:$8 sps:$4 sm:$0xff]  }
  0x80   : > { %2169 = vmatpush1.bf16.msra.mxu0 %v3128_v13  ;;  %1951 = vmatprep.subr.bf16.mxu1 %v3135_v14  ;;  %v3214_v13 = vld [vmem:[%s4186_s1 + $0x5a0] ss:$8 sps:$4 sm:$0xff]   ;;  %v3219_v14 = vld [vmem:[%s4186_s1 + $0x2b4] ss:$8 sps:$4 sm:$0xff]  }
  0x81   : > { %2170 = vmatprep.subr.bf16.mxu0 %v3138_v15  ;;  %v3222_v15 = vld [vmem:[%s4186_s1 + $0x5b4] ss:$8 sps:$4 sm:$0xff]  }
  0x83   : > { %1952 = vmatpush1.bf16.msra.mxu1 %v3133_v16  ;;  %v3217_v16 = vld [vmem:[%s4186_s1 + $0x2b0] ss:$8 sps:$4 sm:$0xff]  }
  0x84   : > { %2171 = vmatpush1.bf16.msra.mxu0 %v3136_v17  ;;  %1994 = vmatprep.subr.bf16.mxu1 %v3144_v18  ;;  %v3220_v17 = vld [vmem:[%s4186_s1 + $0x5b0] ss:$8 sps:$4 sm:$0xff]   ;;  %v3230_v18 = vld [vmem:[%s4186_s1 + $0x2c4] ss:$8 sps:$4 sm:$0xff]  }
  0x85   : > { %2213 = vmatprep.subr.bf16.mxu0 %v3150_v19  ;;  %v3234_v19 = vld [vmem:[%s4186_s1 + $0x5c4] ss:$8 sps:$4 sm:$0xff]  }
  0x86   : > { %1954 = vmatmul.mubr.bf16.vlgmr.msra.gmra.mrb[0].mxu1 %v3139_v20  ;;  %v3228_v20 = vld [vmem:[%s4186_s1 + $0x2c0] ss:$8 sps:$4 sm:$0xff]  }
  0x87   : > { %2173 = vmatmul.mubr.bf16.vlgmr.msra.gmra.mrb[0].mxu0 %v3145_v22  ;;  %1995 = vmatpush1.bf16.msra.mxu1 %v3142_v21  ;;  %v3232_v21 = vld [vmem:[%s4186_s1 + $0x5c0] ss:$8 sps:$4 sm:$0xff]   ;;  %v3237_v22 = vld [vmem:[%s4186_s1 + $0x2d4] ss:$8 sps:$4 sm:$0xff]  }
  0x88   : > { %2214 = vmatpush1.bf16.msra.mxu0 %v3148_v23  ;;  %1996 = vmatprep.subr.bf16.mxu1 %v3153_v24  ;;  %v3240_v23 = vld [vmem:[%s4186_s1 + $0x5d4] ss:$8 sps:$4 sm:$0xff]   ;;  %v3235_v24 = vld [vmem:[%s4186_s1 + $0x2d0] ss:$8 sps:$4 sm:$0xff]  }
  0x89   : > { %2215 = vmatprep.subr.bf16.mxu0 %v3156_v25  ;;  %1963 = vmatprep.mubr.bf16.mxu1 %v3205_v26  ;;  %v3238_v25 = vld [vmem:[%s4186_s1 + $0x5d0] ss:$8 sps:$4 sm:$0xff]   ;;  %v3248_v26 = vld [vmem:[%s4186_s1 + $0x2e4] ss:$8 sps:$4 sm:$0xff]  }
  0x8a   : > { %2182 = vmatprep.mubr.bf16.mxu0 %v3207_v27  ;;  %v3252_v27 = vld [vmem:[%s4186_s1 + $0x5e4] ss:$8 sps:$4 sm:$0xff]  }
  0x8b   : > { %1997 = vmatpush1.bf16.msra.mxu1 %v3151_v28  ;;  %v3246_v28 = vld [vmem:[%s4186_s1 + $0x2e0] ss:$8 sps:$4 sm:$0xff]  }
  0x8c   : > { %2216 = vmatpush1.bf16.msra.mxu0 %v3154_v29  ;;  %1998 = vmatprep.subr.bf16.mxu1 %v3159_v30  ;;  %v3250_v29 = vld [vmem:[%s4186_s1 + $0x5e0] ss:$8 sps:$4 sm:$0xff]   ;;  %v3255_v30 = vld [vmem:[%s4186_s1 + $0x2f4] ss:$8 sps:$4 sm:$0xff]  }
  0x8d   : > { %2217 = vmatprep.subr.bf16.mxu0 %v3162_v31  ;;  %v3258_v31 = vld [vmem:[%s4186_s1 + $0x5f4] ss:$8 sps:$4 sm:$0xff]  }
  0x8e   : > { %1964 = vmatmul.mubr.bf16.gmra.mrb[4].mxu1 %v3209_v33  ;;  %v3256_v33 = vld [vmem:[%s4186_s1 + $0x5f0] ss:$8 sps:$4 sm:$0xff]  }
  0x8f   : > { %2183 = vmatmul.mubr.bf16.gmra.mrb[4].mxu0 %v3213_v34  ;;  %1999 = vmatpush1.bf16.msra.mxu1 %v3157_v32  ;;  %v3253_v32 = vld [vmem:[%s4186_s1 + $0x2f0] ss:$8 sps:$4 sm:$0xff]   ;;  %v3267_v34 = vld [vmem:[%s4186_s1 + $0x604] ss:$8 sps:$4 sm:$0xff]  }
  0x90   : > { %2218 = vmatpush1.bf16.msra.mxu0 %v3160_v35  ;;  %2000 = vmatprep.subr.bf16.mxu1 %v3165_v36  ;;  %v3259_v35 = vld [vmem:[%s3515_s12 + $0x10] ss:$56 sps:$4 sm:$0xff]  }
  0x91   : > { %2219 = vmatprep.subr.bf16.mxu0 %v3168_v37  ;;  %1973 = vmatprep.mubr.bf16.mxu1 %v3223_v38  ;;  %v3262_v36 = vld [vmem:[%s3515_s12 + $0x28] ss:$56 sps:$4 sm:$0xff]   ;;  %v3270_v38 = vld [vmem:[%s4186_s1 + $0x614] ss:$8 sps:$4 sm:$0xff]  }
  0x92   : > { %2192 = vmatprep.mubr.bf16.mxu0 %v3225_v39  ;;  %v3265_v37 = vld [vmem:[%s4186_s1 + $0x600] ss:$8 sps:$4 sm:$0xff]   ;;  %v3271_v39 = vld [vmem:[%s3515_s12 + $0x84] ss:$56 sps:$4 sm:$0xff]  }
  0x93   : > { %2001 = vmatpush1.bf16.msra.mxu1 %v3163_v40  ;;  %v3273_v40 = vld [vmem:[%s3515_s12 + $0x9c] ss:$56 sps:$4 sm:$0xff]  }
  0x94   : > { %2220 = vmatpush1.bf16.msra.mxu0 %v3166_v41  ;;  %2002 = vmatprep.subr.bf16.mxu1 %v3171_v42  ;;  %v3268_v41 = vld [vmem:[%s4186_s1 + $0x610] ss:$8 sps:$4 sm:$0xff]   ;;  %v3279_v42 = vld [vmem:[%s4186_s1 + $0x624] ss:$8 sps:$4 sm:$0xff]  }
  0x95   : > { %2221 = vmatprep.subr.bf16.mxu0 %v3174_v43  ;;  %v3275_v43 = vld [vmem:[%s3515_s12 + $0x80] ss:$56 sps:$4 sm:$0xff]  }
  0x96   : > { %1974 = vmatmul.mubr.bf16.gmra.mrb[8].mxu1 %v3227_v45  ;;  %v3277_v45 = vld [vmem:[%s4186_s1 + $0x620] ss:$8 sps:$4 sm:$0xff]  }
  0x97   : > { %2193 = vmatmul.mubr.bf16.gmra.mrb[8].mxu0 %v3231_v46  ;;  %2003 = vmatpush1.bf16.msra.mxu1 %v3169_v44  ;;  %v3276_v44 = vld [vmem:[%s3515_s12 + $0x98] ss:$56 sps:$4 sm:$0xff]   ;;  %v3282_v46 = vld [vmem:[%s4186_s1 + $0x634] ss:$8 sps:$4 sm:$0xff]  }
  0x98   : > { %2222 = vmatpush1.bf16.msra.mxu0 %v3172_v47  ;;  %2004 = vmatprep.subr.bf16.mxu1 %v3177_v48  ;;  %v3283_v47 = vld [vmem:[%s3515_s12 + $0xf4] ss:$56 sps:$4 sm:$0xff]  }
  0x99   : > { %2223 = vmatprep.subr.bf16.mxu0 %v3180_v49  ;;  %1983 = vmatprep.mubr.bf16.mxu1 %v3241_v50  ;;  %v3285_v48 = vld [vmem:[%s3515_s12 + $0x10c] ss:$56 sps:$4 sm:$0xff]   ;;  %v3280_v49 = vld [vmem:[%s4186_s1 + $0x630] ss:$8 sps:$4 sm:$0xff]  }
  0x9a   : > { %2202 = vmatprep.mubr.bf16.mxu0 %v3243_v51  ;;  %v3291_v50 = vld [vmem:[%s4186_s1 + $0x644] ss:$8 sps:$4 sm:$0xff]   ;;  %v3287_v51 = vld [vmem:[%s3515_s12 + $0xf0] ss:$56 sps:$4 sm:$0xff]  }
  0x9b   : > { %2005 = vmatpush1.bf16.msra.mxu1 %v3175_v52  ;;  %v3288_v52 = vld [vmem:[%s3515_s12 + $0x108] ss:$56 sps:$4 sm:$0xff]  }
  0x9c   : > { %2224 = vmatpush1.bf16.msra.mxu0 %v3178_v53  ;;  %2006 = vmatprep.subr.bf16.mxu1 %v3183_v54  ;;  %v3289_v53 = vld [vmem:[%s4186_s1 + $0x640] ss:$8 sps:$4 sm:$0xff]   ;;  %v3294_v54 = vld [vmem:[%s4186_s1 + $0x654] ss:$8 sps:$4 sm:$0xff]  }
  0x9d   : > { %2225 = vmatprep.subr.bf16.mxu0 %v3186_v55  ;;  %v3295_v55 = vld [vmem:[%s3515_s12 + $0x164] ss:$56 sps:$4 sm:$0xff]  }
  0x9e   : > { %1984 = vmatmul.mubr.bf16.gmra.mrb[12].mxu1 %v3245_v58  ;;  %v3303_v58 = vld [vmem:[%s4186_s1 + $0x664] ss:$8 sps:$4 sm:$0xff]  }
  0x9f   : > { %2203 = vmatmul.mubr.bf16.gmra.mrb[12].mxu0 %v3249_v59  ;;  %2007 = vmatpush1.bf16.msra.mxu1 %v3181_v56  ;;  %v3297_v56 = vld [vmem:[%s3515_s12 + $0x17c] ss:$56 sps:$4 sm:$0xff]   ;;  %v3299_v59 = vld [vmem:[%s3515_s12 + $0x160] ss:$56 sps:$4 sm:$0xff]  }
  0xa0   : > { %2226 = vmatpush1.bf16.msra.mxu0 %v3184_v57  ;;  %2008 = vmatprep.subr.bf16.mxu1 %v3189_v60  ;;  %v3292_v57 = vld [vmem:[%s4186_s1 + $0x650] ss:$8 sps:$4 sm:$0xff]  }
  0xa1   : > { %2227 = vmatprep.subr.bf16.mxu0 %v3192_v61  ;;  %2026 = vmatprep.mubr.bf16.mxu1 %v3261_v62  ;;  %v3300_v60 = vld [vmem:[%s3515_s12 + $0x178] ss:$56 sps:$4 sm:$0xff]   ;;  %v3301_v61 = vld [vmem:[%s4186_s1 + $0x660] ss:$8 sps:$4 sm:$0xff]   ;;  %v3306_v62 = vld [vmem:[%s4186_s1 + $0x674] ss:$8 sps:$4 sm:$0xff]  }
  0xa2   : > { %2245 = vmatprep.mubr.bf16.mxu0 %v3264_v63  ;;  %v3321_v63 = vld [vmem:[%s3515_s12 + $0x34] ss:$56 sps:$4 sm:$0xff]  }
  0xa3   : > { %2009 = vmatpush1.bf16.msra.mxu1 %v3187_v0  ;;  %v3324_v0 = vld [vmem:[%s3515_s12 + $0x114] ss:$56 sps:$4 sm:$0xff]  }
  0xa4   : > { %2228 = vmatpush1.bf16.msra.mxu0 %v3190_v1  ;;  %2010 = vmatprep.subr.bf16.mxu1 %v3195_v2  ;;  %v3304_v1 = vld [vmem:[%s4186_s1 + $0x670] ss:$8 sps:$4 sm:$0xff]   ;;  %v3309_v2 = vld [vmem:[%s4186_s1 + $0x684] ss:$8 sps:$4 sm:$0xff]  }
  0xa5   : > { %2229 = vmatprep.subr.bf16.mxu0 %v3198_v3  ;;  %v3307_v3 = vld [vmem:[%s4186_s1 + $0x680] ss:$8 sps:$4 sm:$0xff]  }
  0xa7   : > { %2011 = vmatpush1.bf16.msra.mxu1 %v3193_v4  ;;  %v3312_v4 = vld [vmem:[%s4186_s1 + $0x694] ss:$8 sps:$4 sm:$0xff]  }
  0xa8   : > { %2230 = vmatpush1.bf16.msra.mxu0 %v3196_v5  ;;  %2012 = vmatprep.subr.bf16.mxu1 %v3201_v6  ;;  %v3310_v5 = vld [vmem:[%s4186_s1 + $0x690] ss:$8 sps:$4 sm:$0xff]   ;;  %v3315_v6 = vld [vmem:[%s4186_s1 + $0x6a4] ss:$8 sps:$4 sm:$0xff]  }
  0xa9   : > { %2231 = vmatprep.subr.bf16.mxu0 %v3204_v7  ;;  %v3313_v7 = vld [vmem:[%s4186_s1 + $0x6a0] ss:$8 sps:$4 sm:$0xff]  }
  0xab   : > { %2013 = vmatpush1.bf16.msra.mxu1 %v3199_v8  ;;  %v3318_v8 = vld [vmem:[%s4186_s1 + $0x6b4] ss:$8 sps:$4 sm:$0xff]  }
  0xac   : > { %2232 = vmatpush1.bf16.msra.mxu0 %v3202_v9  ;;  %2014 = vmatprep.subr.bf16.mxu1 %v3212_v10  ;;  %v3316_v9 = vld [vmem:[%s4186_s1 + $0x6b0] ss:$8 sps:$4 sm:$0xff]  }
  0xad   : > { %2233 = vmatprep.subr.bf16.mxu0 %v3216_v11  ;;  %v3319_v10 = vld [vmem:[%s3515_s12 + $0x30] ss:$56 sps:$4 sm:$0xff]  }
  0xae   : > { %v3322_v11 = vld [vmem:[%s3515_s12 + $0x110] ss:$56 sps:$4 sm:$0xff]  }
  0xaf   : > { %2015 = vmatpush1.bf16.msra.mxu1 %v3210_v12  ;;  %v3325_v12 = vld [vmem:[%s3515_s12 + $0xa4] ss:$56 sps:$4 sm:$0xff]  }
  0xb0   : > { %2234 = vmatpush1.bf16.msra.mxu0 %v3214_v13  ;;  %2016 = vmatprep.subr.bf16.mxu1 %v3219_v14  ;;  %v3327_v13 = vld [vmem:[%s3515_s12 + $0x184] ss:$56 sps:$4 sm:$0xff]   ;;  %v3329_v14 = vld [vmem:[%s3515_s12 + $0xa0] ss:$56 sps:$4 sm:$0xff]  }
  0xb1   : > { %2235 = vmatprep.subr.bf16.mxu0 %v3222_v15  ;;  %v3330_v15 = vld [vmem:[%s3515_s12 + $0x180] ss:$56 sps:$4 sm:$0xff]  }
  0xb3   : > { %2017 = vmatpush1.bf16.msra.mxu1 %v3217_v16 }
  0xb4   : > { %2236 = vmatpush1.bf16.msra.mxu0 %v3220_v17  ;;  %2018 = vmatprep.subr.bf16.mxu1 %v3230_v18 }
  0xb5   : > { %2237 = vmatprep.subr.bf16.mxu0 %v3234_v19 }
  0xb7   : > { %2019 = vmatpush1.bf16.msra.mxu1 %v3228_v20 }
  0xb8   : > { %2238 = vmatpush1.bf16.msra.mxu0 %v3232_v21  ;;  %2020 = vmatprep.subr.bf16.mxu1 %v3237_v22 }
  0xb9   : > { %2239 = vmatprep.subr.bf16.mxu0 %v3240_v23 }
  0xbb   : > { %2021 = vmatpush1.bf16.msra.mxu1 %v3235_v24 }
  0xbc   : > { %2240 = vmatpush1.bf16.msra.mxu0 %v3238_v25  ;;  %2022 = vmatprep.subr.bf16.mxu1 %v3248_v26 }
  0xbd   : > { %2241 = vmatprep.subr.bf16.mxu0 %v3252_v27 }
  0xbf   : > { %2023 = vmatpush1.bf16.msra.mxu1 %v3246_v28 }
  0xc0   : > { %2242 = vmatpush1.bf16.msra.mxu0 %v3250_v29  ;;  %2024 = vmatprep.subr.bf16.mxu1 %v3255_v30 }
  0xc1   : > { %2243 = vmatprep.subr.bf16.mxu0 %v3258_v31 }
  0xc3   : > { %2025 = vmatpush1.bf16.msra.mxu1 %v3253_v32 }
  0xc4   : > { %2244 = vmatpush1.bf16.msra.mxu0 %v3256_v33  ;;  %2794 = vmatprep.subr.bf16.mxu1 %v3267_v34 }
  0xc5   : > { %2286 = vmatprep.subr.bf16.mxu0 %v3267_v34 }
  0xc6   : > { %2027 = vmatmul.mubr.bf16.vlgmr.msra.gmra.mrb[0].mxu1 %v3259_v35 }
  0xc7   : > { %2246 = vmatmul.mubr.bf16.vlgmr.msra.gmra.mrb[0].mxu0 %v3262_v36  ;;  %2806 = vmatpush1.bf16.msra.mxu1 %v3265_v37 }
  0xc8   : > { %2287 = vmatpush1.bf16.msra.mxu0 %v3265_v37  ;;  %2795 = vmatprep.subr.bf16.mxu1 %v3270_v38 }
  0xc9   : > { %2288 = vmatprep.subr.bf16.mxu0 %v3270_v38  ;;  %2036 = vmatprep.mubr.bf16.mxu1 %v3271_v39 }
  0xca   : > { %2255 = vmatprep.mubr.bf16.mxu0 %v3273_v40 }
  0xcb   : > { %2807 = vmatpush1.bf16.msra.mxu1 %v3268_v41 }
  0xcc   : > { %2289 = vmatpush1.bf16.msra.mxu0 %v3268_v41  ;;  %2796 = vmatprep.subr.bf16.mxu1 %v3279_v42 }
  0xcd   : > { %2290 = vmatprep.subr.bf16.mxu0 %v3279_v42 }
  0xce   : > { %2037 = vmatmul.mubr.bf16.gmra.mrb[4].mxu1 %v3275_v43 }
  0xcf   : > { %2256 = vmatmul.mubr.bf16.gmra.mrb[4].mxu0 %v3276_v44  ;;  %2808 = vmatpush1.bf16.msra.mxu1 %v3277_v45 }
  0xd0   : > { %2291 = vmatpush1.bf16.msra.mxu0 %v3277_v45  ;;  %2797 = vmatprep.subr.bf16.mxu1 %v3282_v46 }
  0xd1   : > { %2292 = vmatprep.subr.bf16.mxu0 %v3282_v46  ;;  %2046 = vmatprep.mubr.bf16.mxu1 %v3283_v47 }
  0xd2   : > { %2265 = vmatprep.mubr.bf16.mxu0 %v3285_v48  ;;  %v2361_v48 = vlaneseq }
  0xd3   : > { %2809 = vmatpush1.bf16.msra.mxu1 %v3280_v49 }
  0xd4   : > { %2293 = vmatpush1.bf16.msra.mxu0 %v3280_v49  ;;  %2798 = vmatprep.subr.bf16.mxu1 %v3291_v50  ;;  %v2362_v49 = vshrl.u32 %v2361_v48, 7 }
  0xd5   : > { %2294 = vmatprep.subr.bf16.mxu0 %v3291_v50 }
  0xd6   : > { %2047 = vmatmul.mubr.bf16.gmra.mrb[8].mxu1 %v3287_v51  ;;  %v2363_v50 = vsub.s32 0, %v2362_v49  ;;  %v2359_v51 = vld [vmem:[%s4187_s2] sm:$0x3] }
  0xd7   : > { %2266 = vmatmul.mubr.bf16.gmra.mrb[8].mxu0 %v3288_v52  ;;  %2810 = vmatpush1.bf16.msra.mxu1 %v3289_v53  ;;  %v2367_v52 = vsub.s32 1, %v2362_v49 }
  0xd8   : > { %2295 = vmatpush1.bf16.msra.mxu0 %v3289_v53  ;;  %2799 = vmatprep.subr.bf16.mxu1 %v3294_v54  ;;  %v2387_v53 = vld [vmem:[%s4188_s3] sm:$0x3] }
  0xd9   : > { %2296 = vmatprep.subr.bf16.mxu0 %v3294_v54  ;;  %2056 = vmatprep.mubr.bf16.mxu1 %v3295_v55  ;;  %v4112_v54 = vrot.slane %v2359_v51, %v2363_v50 }
  0xda   : > { %2275 = vmatprep.mubr.bf16.mxu0 %v3297_v56 }
  0xdb   : > { %2811 = vmatpush1.bf16.msra.mxu1 %v3292_v57 }
  0xdc   : > { %2297 = vmatpush1.bf16.msra.mxu0 %v3292_v57  ;;  %2800 = vmatprep.subr.bf16.mxu1 %v3303_v58  ;;  %v4114_v57 = vrot.slane %v2359_v51, %v2367_v52 }
  0xdd   : > { %2298 = vmatprep.subr.bf16.mxu0 %v3303_v58 }
  0xde   : > { %2057 = vmatmul.mubr.bf16.gmra.mrb[12].mxu1 %v3299_v59  ;;  %v4116_v59 = vrot.slane %v2387_v53, %v2363_v50 }
  0xdf   : > { %2276 = vmatmul.mubr.bf16.gmra.mrb[12].mxu0 %v3300_v60  ;;  %2812 = vmatpush1.bf16.msra.mxu1 %v3301_v61 }
  0xe0   : > { %2299 = vmatpush1.bf16.msra.mxu0 %v3301_v61  ;;  %2801 = vmatprep.subr.bf16.mxu1 %v3306_v62 }
  0xe1   : > { %2300 = vmatprep.subr.bf16.mxu0 %v3306_v62  ;;  %2787 = vmatprep.mubr.msk.bf16.mxu0 %vm1835_vm0, %v3321_v63 }
  0xe2   : > { %2789 = vmatprep.mubr.msk.bf16.mxu1 %vm1835_vm0, %v3324_v0  ;;  %v4118_v0 = vrot.slane %v2387_v53, %v2367_v52 }
  0xe3   : > { %2813 = vmatpush1.bf16.msra.mxu1 %v3304_v1 }
  0xe4   : > { %2301 = vmatpush1.bf16.msra.mxu0 %v3304_v1  ;;  %2802 = vmatprep.subr.bf16.mxu1 %v3309_v2 }
  0xe5   : > { %2302 = vmatprep.subr.bf16.mxu0 %v3309_v2 }
  0xe7   : > { %2814 = vmatpush1.bf16.msra.mxu1 %v3307_v3 }
  0xe8   : > { %2303 = vmatpush1.bf16.msra.mxu0 %v3307_v3  ;;  %2803 = vmatprep.subr.bf16.mxu1 %v3312_v4 }
  0xe9   : > { %2304 = vmatprep.subr.bf16.mxu0 %v3312_v4 }
  0xeb   : > { %2815 = vmatpush1.bf16.msra.mxu1 %v3310_v5 }
  0xec   : > { %2305 = vmatpush1.bf16.msra.mxu0 %v3310_v5  ;;  %2804 = vmatprep.subr.bf16.mxu1 %v3315_v6 }
  0xed   : > { %2306 = vmatprep.subr.bf16.mxu0 %v3315_v6 }
  0xef   : > { %2816 = vmatpush1.bf16.msra.mxu1 %v3313_v7 }
  0xf0   : > { %2307 = vmatpush1.bf16.msra.mxu0 %v3313_v7  ;;  %2805 = vmatprep.subr.bf16.mxu1 %v3318_v8 }
  0xf1   : > { %2308 = vmatprep.subr.bf16.mxu0 %v3318_v8 }
  0xf3   : > { %2817 = vmatpush1.bf16.msra.mxu1 %v3316_v9 }
  0xf4   : > { %2309 = vmatpush1.bf16.msra.mxu0 %v3316_v9 }
  0xf6   : > { %2339 = vmatmul.mubr.bf16.vlgmr.msra.gmra.mrb[16].mxu1 %v3322_v11 }
  0xf7   : > { %2319 = vmatmul.mubr.bf16.vlgmr.msra.gmra.mrb[0].mxu0 %v3319_v10  ;;  %2790 = vmatprep.mubr.msk.bf16.mxu1 %vm1835_vm0, %v3327_v13 }
  0xf8   : > { %2788 = vmatprep.mubr.msk.bf16.mxu0 %vm1835_vm0, %v3325_v12 }
  0xfe   : > { %2349 = vmatmul.mubr.bf16.gmra.mrb[20].mxu1 %v3330_v15 }
  0xff   : > { %2329 = vmatmul.mubr.bf16.gmra.mrb[4].mxu0 %v3329_v14 }
 0x199   : > { %v2028_v16 = vpop.f32.mrb[0].mxu1 }
 0x19a   : > { %v2030_v17 = vpop.f32.mrb[1].mxu1 }
 0x19b   : > { %v2032_v18 = vpop.f32.mrb[2].mxu1 }
 0x19c   : > { %v2034_v19 = vpop.f32.mrb[3].mxu1 }
 0x1a1   : > { %v4090_v20 = vpop.f32.mrb[4].mxu1 }
 0x1a2   : > { %v4092_v21 = vpop.f32.mrb[5].mxu1 }
 0x1a3   : > { %v4094_v22 = vpop.f32.mrb[6].mxu1 }
 0x1a4   : > { %v4096_v23 = vpop.f32.mrb[7].mxu1 }
 0x1a9   : > { %v2048_v24 = vpop.f32.mrb[8].mxu1 }
 0x1aa   : > { %v2267_v25 = vpop.f32.mrb[8].mxu0  ;;  %v2050_v27 = vpop.f32.mrb[9].mxu1 }
 0x1ab   : > { %v2826_v26 = vadd.f32 %v2267_v25, %v2048_v24  ;;  %v2269_v28 = vpop.f32.mrb[9].mxu0  ;;  %v2052_v30 = vpop.f32.mrb[10].mxu1 }
 0x1ac   : > { %v2828_v29 = vadd.f32 %v2269_v28, %v2050_v27  ;;  %v2271_v31 = vpop.f32.mrb[10].mxu0  ;;  %v2054_v33 = vpop.f32.mrb[11].mxu1 }
 0x1ad   : > { %v2830_v32 = vadd.f32 %v2271_v31, %v2052_v30  ;;  %v2273_v34 = vpop.f32.mrb[11].mxu0 }
 0x1ae   : > { %v2832_v35 = vadd.f32 %v2273_v34, %v2054_v33 }
 0x1b1   : > { %v2058_v36 = vpop.f32.mrb[12].mxu1 }
 0x1b2   : > { %v2277_v37 = vpop.f32.mrb[12].mxu0  ;;  %v2060_v39 = vpop.f32.mrb[13].mxu1 }
 0x1b3   : > { %v4098_v38 = vadd.f32 %v2277_v37, %v2058_v36  ;;  %v2279_v40 = vpop.f32.mrb[13].mxu0  ;;  %v2062_v42 = vpop.f32.mrb[14].mxu1 }
 0x1b4   : > { %v4100_v41 = vadd.f32 %v2279_v40, %v2060_v39  ;;  %v2281_v43 = vpop.f32.mrb[14].mxu0  ;;  %v2064_v45 = vpop.f32.mrb[15].mxu1 }
 0x1b5   : > { %v4102_v44 = vadd.f32 %v2281_v43, %v2062_v42  ;;  %v2283_v46 = vpop.f32.mrb[15].mxu0 }
 0x1b6   : > { %v4104_v47 = vadd.f32 %v2283_v46, %v2064_v45 }
 0x1c9   : > { %v2340_v56 = vpop.f32.mrb[16].mxu1 }
 0x1ca   : > { %v2320_v55 = vpop.f32.mrb[0].mxu0  ;;  %v2827_v60 = vadd.f32 %v2826_v26, %v2340_v56  ;;  %v2342_v62 = vpop.f32.mrb[17].mxu1 }
 0x1cb   : > { %v2818_v58 = vadd.f32 %v2320_v55, %v2028_v16  ;;  %v2322_v61 = vpop.f32.mrb[1].mxu0  ;;  %v2829_v1 = vadd.f32 %v2828_v29, %v2342_v62  ;;  %v2344_v3 = vpop.f32.mrb[18].mxu1 }
 0x1cc   : > { %v2819_v63 = vadd.f32 %v2322_v61, %v2030_v17  ;;  %v2324_v2 = vpop.f32.mrb[2].mxu0  ;;  %v2379_v5 = vmul.f32 %v2827_v60, %v4112_v54  ;;  %v2831_v7 = vadd.f32 %v2830_v32, %v2344_v3  ;;  %v2346_v9 = vpop.f32.mrb[19].mxu1 }
 0x1cd   : > { %v2371_v4 = vmul.f32 %v2818_v58, %v4112_v54  ;;  %v2820_v6 = vadd.f32 %v2324_v2, %v2032_v18  ;;  %v2326_v8 = vpop.f32.mrb[3].mxu0  ;;  %v2380_v11 = vmul.f32 %v2829_v1, %v4114_v57  ;;  %v2833_v13 = vadd.f32 %v2832_v35, %v2346_v9 }
 0x1ce   : > { %v2372_v10 = vmul.f32 %v2819_v63, %v4114_v57  ;;  %v2821_v12 = vadd.f32 %v2326_v8, %v2034_v19  ;;  %v2407_v15 = vadd.f32 %v4116_v59, %v2379_v5  ;;  %v2381_v17 = vmul.f32 %v2831_v7, %v4112_v54 }
 0x1cf   : > { %v2399_v14 = vadd.f32 %v4116_v59, %v2371_v4  ;;  %v2373_v16 = vmul.f32 %v2820_v6, %v4112_v54  ;;  %v2408_v19 = vadd.f32 %v4118_v0, %v2380_v11  ;;  %v2382_v25 = vmul.f32 %v2833_v13, %v4114_v57 }
 0x1d0   : > { %v2400_v18 = vadd.f32 %v4118_v0, %v2372_v10  ;;  %v2374_v24 = vmul.f32 %v2821_v12, %v4114_v57  ;;  %v2423_v27 = vmax.f32 %v2407_v15, 0.0  ;;  %v2409_v29 = vadd.f32 %v4116_v59, %v2381_v17 }
 0x1d1   : > { %v2415_v26 = vmax.f32 %v2399_v14, 0.0  ;;  %v2401_v28 = vadd.f32 %v4116_v59, %v2373_v16  ;;  %v2424_v31 = vmax.f32 %v2408_v19, 0.0  ;;  %v2410_v33 = vadd.f32 %v4118_v0, %v2382_v25  ;;  %v2350_v35 = vpop.f32.mrb[20].mxu1 }
 0x1d2   : > { %v2416_v30 = vmax.f32 %v2400_v18, 0.0  ;;  %v2402_v32 = vadd.f32 %v4118_v0, %v2374_v24  ;;  %v2330_v34 = vpop.f32.mrb[4].mxu0  ;;  %2439 = vst [vmem:[%s4132_s17 + $0x40] sm:$0xff] %v2423_v27  ;;  %v2425_v37 = vmax.f32 %v2409_v29, 0.0  ;;  %v2835_v40 = vadd.f32 %v4098_v38, %v2350_v35  ;;  %v2352_v43 = vpop.f32.mrb[21].mxu1 }
 0x1d3   : > { %2431 = vst [vmem:[%s4132_s17] sm:$0xff] %v2415_v26  ;;  %v2417_v36 = vmax.f32 %v2401_v28, 0.0  ;;  %v2822_v39 = vadd.f32 %v2330_v34, %v4090_v20  ;;  %v2332_v42 = vpop.f32.mrb[5].mxu0  ;;  %2440 = vst [vmem:[%s4132_s17 + $0x48] sm:$0xff] %v2424_v31  ;;  %v2426_v46 = vmax.f32 %v2410_v33, 0.0  ;;  %v2837_v49 = vadd.f32 %v4100_v41, %v2352_v43  ;;  %v2354_v51 = vpop.f32.mrb[22].mxu1 }
 0x1d4   : > { %2432 = vst [vmem:[%s4132_s17 + $0x8] sm:$0xff] %v2416_v30  ;;  %v2418_v45 = vmax.f32 %v2402_v32, 0.0  ;;  %v2823_v48 = vadd.f32 %v2332_v42, %v4092_v21  ;;  %v2334_v50 = vpop.f32.mrb[6].mxu0  ;;  %2441 = vst [vmem:[%s4132_s17 + $0x50] sm:$0xff] %v2425_v37  ;;  %v2383_v38 = vmul.f32 %v2835_v40, %v4112_v54  ;;  %v2839_v53 = vadd.f32 %v4102_v44, %v2354_v51  ;;  %v2356_v56 = vpop.f32.mrb[23].mxu1 }
 0x1d5   : > { %2433 = vst [vmem:[%s4132_s17 + $0x10] sm:$0xff] %v2417_v36  ;;  %v2375_v20 = vmul.f32 %v2822_v39, %v4112_v54  ;;  %v2824_v52 = vadd.f32 %v2334_v50, %v4094_v22  ;;  %v2336_v55 = vpop.f32.mrb[7].mxu0  ;;  %2442 = vst [vmem:[%s4132_s17 + $0x58] sm:$0xff] %v2426_v46  ;;  %v2384_v41 = vmul.f32 %v2837_v49, %v4114_v57 }
 0x1d6   : > { %2434 = vst [vmem:[%s4132_s17 + $0x18] sm:$0xff] %v2418_v45  ;;  %v2376_v21 = vmul.f32 %v2823_v48, %v4114_v57  ;;  %v2825_v58 = vadd.f32 %v2336_v55, %v4096_v23  ;;  %v2841_v60 = vadd.f32 %v4104_v47, %v2356_v56  ;;  %v2411_v62 = vadd.f32 %v4116_v59, %v2383_v38 }
 0x1d7   : > { %v2403_v61 = vadd.f32 %v4116_v59, %v2375_v20  ;;  %v2377_v22 = vmul.f32 %v2824_v52, %v4112_v54  ;;  %v2385_v44 = vmul.f32 %v2839_v53, %v4112_v54  ;;  %v2412_v1 = vadd.f32 %v4118_v0, %v2384_v41 }
 0x1d8   : > { %v2404_v63 = vadd.f32 %v4118_v0, %v2376_v21  ;;  %v2378_v23 = vmul.f32 %v2825_v58, %v4114_v57  ;;  %v2386_v47 = vmul.f32 %v2841_v60, %v4114_v57  ;;  %v2427_v3 = vmax.f32 %v2411_v62, 0.0 }
 0x1d9   : > { %v2419_v2 = vmax.f32 %v2403_v61, 0.0  ;;  %v2405_v4 = vadd.f32 %v4116_v59, %v2377_v22  ;;  %v2413_v5 = vadd.f32 %v4116_v59, %v2385_v44  ;;  %v2428_v6 = vmax.f32 %v2412_v1, 0.0 }
 0x1da   : > { %v2420_v54 = vmax.f32 %v2404_v63, 0.0  ;;  %v2406_v7 = vadd.f32 %v4118_v0, %v2378_v23  ;;  %v2414_v8 = vadd.f32 %v4118_v0, %v2386_v47  ;;  %2443 = vst [vmem:[%s4132_s17 + $0x60] sm:$0xff] %v2427_v3 }
 0x1db   : > { %2435 = vst [vmem:[%s4132_s17 + $0x20] sm:$0xff] %v2419_v2  ;;  %v2421_v9 = vmax.f32 %v2405_v4, 0.0  ;;  %v2429_v57 = vmax.f32 %v2413_v5, 0.0  ;;  %2444 = vst [vmem:[%s4132_s17 + $0x68] sm:$0xff] %v2428_v6 }
 0x1dc   : > { %2436 = vst [vmem:[%s4132_s17 + $0x28] sm:$0xff] %v2420_v54  ;;  %v2422_v10 = vmax.f32 %v2406_v7, 0.0  ;;  %v2430_v11 = vmax.f32 %v2414_v8, 0.0 }
 0x1dd   : > { %2437 = vst [vmem:[%s4132_s17 + $0x30] sm:$0xff] %v2421_v9  ;;  %2445 = vst [vmem:[%s4132_s17 + $0x70] sm:$0xff] %v2429_v57 }
 0x1de   : > { %2438 = vst [vmem:[%s4132_s17 + $0x38] sm:$0xff] %v2422_v10  ;;  %2446 = vst [vmem:[%s4132_s17 + $0x78] sm:$0xff] %v2430_v11 }
 0x1df PF: > { %s14_s15 = sadd.s32 1, %s3337_s15  }
 0x1e0   : > { %p11_p4 = scmp.ge.s32.totalorder %s14_s15, 4  }
 0x1e2   :  { %13 = sbr.rel (!%p11_p4) target bundleno = 1 (0x1), region = 66 }

// kernel: inception_d.6
= control target key start
LH: loop header
LB: loop body
LE: loop exit
PB: predicated region body
PF: predicated region fallthrough
CT: control target
= control target key end

     0   :  { %s5195_s15 = smov 0   ;;  %s6630_s0 = inlined_call_operand.vmem [shape: bf16[128,1728], index: 0, kind: input, shape index: {}]   ;;  %s6631_s1 = inlined_call_operand.vmem [shape: bf16[1728,384], index: 1, kind: input, shape index: {}]   ;;  %s6632_s2 = inlined_call_operand.vmem [shape: f32[1,384], index: 2, kind: input, shape index: {}]   ;;  %s6633_s3 = inlined_call_operand.vmem [shape: f32[1,384], index: 3, kind: input, shape index: {}]   ;;  %s6634_s4 = inlined_call_operand.vmem [shape: f32[128,384], index: 4, kind: output, shape index: {}]  }
   0x1 LB: > { %s3866_s16 = sadd.s32 4294967295, %s5167_s15   ;;  %p3870_p0 = scmp.ge.s32.totalorder %s5167_s15, 1  ;;  %s5167_s15 = sphi %s5195_s15, %s14_s15  }
   0x2   : > { %p164_p1 = scmp.lt.s32.totalorder %s5167_s15, 3 }
   0x4   : > { %p165_p2 = pnand %p3870_p0, %p164_p1 }
   0x5   : > { %v4636_v0 = vld [vmem:[%s6631_s1 + $0x4] ss:$12 sps:$4 sm:$0xff] (!%p165_p2)   ;;  %v4640_v2 = vld [vmem:[%s6631_s1] ss:$12 sps:$4 sm:$0xff] (!%p165_p2)   ;;  %v4642_v4 = vld [vmem:[%s6631_s1 + $0x1c] ss:$12 sps:$4 sm:$0xff] (!%p165_p2)  }
   0x6   : > { %168 = sbr.rel (%p165_p2) target bundleno = 598 (0x256), region = 36  ;;  %v4638_v1 = vld [vmem:[%s6631_s1 + $0x184] ss:$12 sps:$4 sm:$0xff] (!%p165_p2)   ;;  %2712 = vmatprep.subr.bf16.mxu1 (!%p165_p2), %v4636_v0  ;;  %v4641_v3 = vld [vmem:[%s6631_s1 + $0x180] ss:$12 sps:$4 sm:$0xff] (!%p165_p2)   ;;  %s3871_s29 = sshll.u32 (!%p165_p2), %s3866_s16, 3 }
   0x7   : > { %2785 = vmatprep.subr.bf16.mxu0 (!%p165_p2), %v4638_v1  ;;  %2713 = vmatpush1.bf16.msra.mxu1 (!%p165_p2), %v4640_v2  ;;  %v4644_v5 = vld [vmem:[%s6631_s1 + $0x19c] ss:$12 sps:$4 sm:$0xff] (!%p165_p2)   ;;  %v4646_v6 = vld [vmem:[%s6631_s1 + $0x18] ss:$12 sps:$4 sm:$0xff] (!%p165_p2)   ;;  %v4648_v8 = vld [vmem:[%s6631_s1 + $0x34] ss:$12 sps:$4 sm:$0xff] (!%p165_p2)  }
   0x8   : > { %2786 = vmatpush1.bf16.msra.mxu0 (!%p165_p2), %v4641_v3  ;;  %2714 = vmatprep.subr.bf16.mxu1 (!%p165_p2), %v4642_v4  ;;  %v4647_v7 = vld [vmem:[%s6631_s1 + $0x198] ss:$12 sps:$4 sm:$0xff] (!%p165_p2)   ;;  %v4650_v9 = vld [vmem:[%s6631_s1 + $0x1b4] ss:$12 sps:$4 sm:$0xff] (!%p165_p2)   ;;  %v4652_v10 = vld [vmem:[%s6631_s1 + $0x30] ss:$12 sps:$4 sm:$0xff] (!%p165_p2)  }
   0x9   : > { %2787 = vmatprep.subr.bf16.mxu0 (!%p165_p2), %v4644_v5  ;;  %v4653_v11 = vld [vmem:[%s6631_s1 + $0x1b0] ss:$12 sps:$4 sm:$0xff] (!%p165_p2)   ;;  %v4654_v12 = vld [vmem:[%s6631_s1 + $0x4c] ss:$12 sps:$4 sm:$0xff] (!%p165_p2)   ;;  %v4658_v14 = vld [vmem:[%s6631_s1 + $0x48] ss:$12 sps:$4 sm:$0xff] (!%p165_p2)  }
   0xa   : > { %v4656_v13 = vld [vmem:[%s6631_s1 + $0x1cc] ss:$12 sps:$4 sm:$0xff] (!%p165_p2)   ;;  %v4659_v15 = vld [vmem:[%s6631_s1 + $0x1c8] ss:$12 sps:$4 sm:$0xff] (!%p165_p2)   ;;  %v4660_v16 = vld [vmem:[%s6631_s1 + $0x64] ss:$12 sps:$4 sm:$0xff] (!%p165_p2)  }
   0xb   : > { %2715 = vmatpush1.bf16.msra.mxu1 (!%p165_p2), %v4646_v6  ;;  %v4662_v17 = vld [vmem:[%s6631_s1 + $0x1e4] ss:$12 sps:$4 sm:$0xff] (!%p165_p2)   ;;  %v4664_v18 = vld [vmem:[%s6631_s1 + $0x60] ss:$12 sps:$4 sm:$0xff] (!%p165_p2)   ;;  %v4666_v20 = vld [vmem:[%s6631_s1 + $0x7c] ss:$12 sps:$4 sm:$0xff] (!%p165_p2)  }
   0xc   : > { %2788 = vmatpush1.bf16.msra.mxu0 (!%p165_p2), %v4647_v7  ;;  %2716 = vmatprep.subr.bf16.mxu1 (!%p165_p2), %v4648_v8  ;;  %v4665_v19 = vld [vmem:[%s6631_s1 + $0x1e0] ss:$12 sps:$4 sm:$0xff] (!%p165_p2)   ;;  %v4668_v21 = vld [vmem:[%s6631_s1 + $0x1fc] ss:$12 sps:$4 sm:$0xff] (!%p165_p2)   ;;  %v4670_v22 = vld [vmem:[%s6631_s1 + $0x78] ss:$12 sps:$4 sm:$0xff] (!%p165_p2)  }
   0xd   : > { %2789 = vmatprep.subr.bf16.mxu0 %v4650_v9  ;;  %v4671_v23 = vld [vmem:[%s6631_s1 + $0x1f8] ss:$12 sps:$4 sm:$0xff]   ;;  %v4672_v24 = vld [vmem:[%s6631_s1 + $0x94] ss:$12 sps:$4 sm:$0xff]   ;;  %v4676_v26 = vld [vmem:[%s6631_s1 + $0x90] ss:$12 sps:$4 sm:$0xff]  }
   0xe   : > { %v4674_v25 = vld [vmem:[%s6631_s1 + $0x214] ss:$12 sps:$4 sm:$0xff]   ;;  %v4677_v27 = vld [vmem:[%s6631_s1 + $0x210] ss:$12 sps:$4 sm:$0xff]   ;;  %v4678_v28 = vld [vmem:[%s6631_s1 + $0xac] ss:$12 sps:$4 sm:$0xff]  }
   0xf   : > { %2717 = vmatpush1.bf16.msra.mxu1 %v4652_v10  ;;  %v4680_v29 = vld [vmem:[%s6631_s1 + $0x22c] ss:$12 sps:$4 sm:$0xff]   ;;  %v4682_v30 = vld [vmem:[%s6631_s1 + $0xa8] ss:$12 sps:$4 sm:$0xff]   ;;  %v4684_v32 = vld [vmem:[%s6631_s1 + $0xc4] ss:$12 sps:$4 sm:$0xff]  }
  0x10   : > { %2790 = vmatpush1.bf16.msra.mxu0 %v4653_v11  ;;  %2718 = vmatprep.subr.bf16.mxu1 %v4654_v12  ;;  %v4683_v31 = vld [vmem:[%s6631_s1 + $0x228] ss:$12 sps:$4 sm:$0xff]   ;;  %p193_p3 = scmp.lt.s32.totalorder %s3871_s29, 15  ;;  %v4686_v33 = vld [vmem:[%s6631_s1 + $0x244] ss:$12 sps:$4 sm:$0xff]   ;;  %vm2699_vm0 = vcmask 523264  }
  0x11   : > { %2791 = vmatprep.subr.bf16.mxu0 %v4656_v13  ;;  %v4688_v34 = vld [vmem:[%s6631_s1 + $0xc0] ss:$12 sps:$4 sm:$0xff]   ;;  %v4690_v36 = vld [vmem:[%s6631_s1 + $0xdc] ss:$12 sps:$4 sm:$0xff]   ;;  %v4694_v38 = vld [vmem:[%s6631_s1 + $0xd8] ss:$12 sps:$4 sm:$0xff]  }
  0x12   : > { %v4689_v35 = vld [vmem:[%s6631_s1 + $0x240] ss:$12 sps:$4 sm:$0xff]   ;;  %s6636_s29 = smov (!%p193_p3, %s3871_s29), 15  ;;  %v4692_v37 = vld [vmem:[%s6631_s1 + $0x25c] ss:$12 sps:$4 sm:$0xff]  }
  0x13   : > { %2719 = vmatpush1.bf16.msra.mxu1 %v4658_v14  ;;  %v4695_v39 = vld [vmem:[%s6631_s1 + $0x258] ss:$12 sps:$4 sm:$0xff]   ;;  %v4696_v40 = vld [vmem:[%s6631_s1 + $0xf4] ss:$12 sps:$4 sm:$0xff]   ;;  %s4625_s27 = smul.u32 56, %s6636_s29 }
  0x14   : > { %2792 = vmatpush1.bf16.msra.mxu0 %v4659_v15  ;;  %2720 = vmatprep.subr.bf16.mxu1 %v4660_v16  ;;  %v4698_v41 = vld [vmem:[%s6631_s1 + $0x274] ss:$12 sps:$4 sm:$0xff]   ;;  %v4700_v42 = vld [vmem:[%s6631_s1 + $0xf0] ss:$12 sps:$4 sm:$0xff]   ;;  %v4702_v44 = vld [vmem:[%s6631_s1 + $0x10c] ss:$12 sps:$4 sm:$0xff]  }
  0x15   : > { %2793 = vmatprep.subr.bf16.mxu0 %v4662_v17  ;;  %v4701_v43 = vld [vmem:[%s6631_s1 + $0x270] ss:$12 sps:$4 sm:$0xff]   ;;  %s5346_s12 = scalar_lea.vmem %s6630_s0, %s4625_s27  ;;  %v4704_v45 = vld [vmem:[%s6631_s1 + $0x28c] ss:$12 sps:$4 sm:$0xff]   ;;  %v4706_v46 = vld [vmem:[%s6631_s1 + $0x108] ss:$12 sps:$4 sm:$0xff]  }
  0x16   : > { %v4707_v47 = vld [vmem:[%s6631_s1 + $0x288] ss:$12 sps:$4 sm:$0xff]   ;;  %v4708_v48 = vld [vmem:[%s6631_s1 + $0x124] ss:$12 sps:$4 sm:$0xff]   ;;  %v4712_v52 = vld [vmem:[%s6631_s1 + $0x120] ss:$12 sps:$4 sm:$0xff]  }
  0x17   : > { %2721 = vmatpush1.bf16.msra.mxu1 %v4664_v18  ;;  %v5361_v49 = vld [vmem:[%s5346_s12 + $0x4] ss:$56 sps:$4 sm:$0xff]   ;;  %v4713_v53 = vld [vmem:[%s6631_s1 + $0x2a0] ss:$12 sps:$4 sm:$0xff]   ;;  %v4730_v0 = vld [vmem:[%s6631_s1 + $0x168] ss:$12 sps:$4 sm:$0xff]  }
  0x18   : > { %2794 = vmatpush1.bf16.msra.mxu0 %v4665_v19  ;;  %2722 = vmatprep.subr.bf16.mxu1 %v4666_v20  ;;  %v4710_v50 = vld [vmem:[%s6631_s1 + $0x2a4] ss:$12 sps:$4 sm:$0xff]   ;;  %v4714_v54 = vld [vmem:[%s6631_s1 + $0x13c] ss:$12 sps:$4 sm:$0xff]   ;;  %v4720_v58 = vld [vmem:[%s6631_s1 + $0x154] ss:$12 sps:$4 sm:$0xff]  }
  0x19   : > { %2795 = vmatprep.subr.bf16.mxu0 %v4668_v21  ;;  %v4737_v51 = vld [vmem:[%s5346_s12 + $0xc] ss:$56 sps:$4 sm:$0xff]   ;;  %2744 = vmatprep.mubr.bf16.mxu1 %v5361_v49  ;;  %v4716_v55 = vld [vmem:[%s6631_s1 + $0x2bc] ss:$12 sps:$4 sm:$0xff]   ;;  %v4722_v59 = vld [vmem:[%s6631_s1 + $0x2d4] ss:$12 sps:$4 sm:$0xff]  }
  0x1a   : > { %2817 = vmatprep.mubr.bf16.mxu0 %v4737_v51  ;;  %v4718_v56 = vld [vmem:[%s6631_s1 + $0x138] ss:$12 sps:$4 sm:$0xff]   ;;  %v4724_v60 = vld [vmem:[%s6631_s1 + $0x150] ss:$12 sps:$4 sm:$0xff]   ;;  %v4731_v1 = vld [vmem:[%s6631_s1 + $0x2e8] ss:$12 sps:$4 sm:$0xff]  }
  0x1b   : > { %2723 = vmatpush1.bf16.msra.mxu1 %v4670_v22  ;;  %v4719_v57 = vld [vmem:[%s6631_s1 + $0x2b8] ss:$12 sps:$4 sm:$0xff]   ;;  %v4725_v61 = vld [vmem:[%s6631_s1 + $0x2d0] ss:$12 sps:$4 sm:$0xff]   ;;  %v5420_v5 = vld [vmem:[%s5346_s12 + $0x8] ss:$56 sps:$4 sm:$0xff]  }
  0x1c   : > { %2796 = vmatpush1.bf16.msra.mxu0 %v4671_v23  ;;  %2724 = vmatprep.subr.bf16.mxu1 %v4672_v24  ;;  %v4726_v62 = vld [vmem:[%s6631_s1 + $0x16c] ss:$12 sps:$4 sm:$0xff]   ;;  %v4740_v2 = vld [vmem:[%s6631_s1 + $0x304] ss:$12 sps:$4 sm:$0xff]   ;;  %v4746_v8 = vld [vmem:[%s6631_s1 + $0x31c] ss:$12 sps:$4 sm:$0xff]  }
  0x1d   : > { %2797 = vmatprep.subr.bf16.mxu0 %v4674_v25  ;;  %v4728_v63 = vld [vmem:[%s6631_s1 + $0x2ec] ss:$12 sps:$4 sm:$0xff]   ;;  %v4743_v3 = vld [vmem:[%s6631_s1 + $0x904] ss:$12 sps:$4 sm:$0xff]   ;;  %v4749_v9 = vld [vmem:[%s6631_s1 + $0x91c] ss:$12 sps:$4 sm:$0xff]  }
  0x1e   : > { %v5417_v4 = vld [vmem:[%s5346_s12] ss:$56 sps:$4 sm:$0xff]   ;;  %v5435_v10 = vld [vmem:[%s5346_s12 + $0x74] ss:$56 sps:$4 sm:$0xff]   ;;  %v4750_v15 = vld [vmem:[%s6631_s1 + $0x330] ss:$12 sps:$4 sm:$0xff]  }
  0x1f   : > { %2725 = vmatpush1.bf16.msra.mxu1 %v4676_v26  ;;  %v4738_v6 = vld [vmem:[%s6631_s1 + $0x300] ss:$12 sps:$4 sm:$0xff]   ;;  %v4744_v11 = vld [vmem:[%s6631_s1 + $0x318] ss:$12 sps:$4 sm:$0xff]   ;;  %v4753_v16 = vld [vmem:[%s6631_s1 + $0x930] ss:$12 sps:$4 sm:$0xff]  }
  0x20   : > { %2798 = vmatpush1.bf16.msra.mxu0 %v4677_v27  ;;  %2726 = vmatprep.subr.bf16.mxu1 %v4678_v28  ;;  %v4741_v7 = vld [vmem:[%s6631_s1 + $0x900] ss:$12 sps:$4 sm:$0xff]   ;;  %v4747_v12 = vld [vmem:[%s6631_s1 + $0x918] ss:$12 sps:$4 sm:$0xff]   ;;  %v5459_v17 = vld [vmem:[%s5346_s12 + $0x70] ss:$56 sps:$4 sm:$0xff]  }
  0x21   : > { %2799 = vmatprep.subr.bf16.mxu0 %v4680_v29  ;;  %v4752_v13 = vld [vmem:[%s6631_s1 + $0x334] ss:$12 sps:$4 sm:$0xff]   ;;  %v4758_v18 = vld [vmem:[%s6631_s1 + $0x34c] ss:$12 sps:$4 sm:$0xff]   ;;  %v5471_v21 = vld [vmem:[%s5346_s12 + $0xe4] ss:$56 sps:$4 sm:$0xff]  }
  0x22   : > { %v4755_v14 = vld [vmem:[%s6631_s1 + $0x934] ss:$12 sps:$4 sm:$0xff]   ;;  %v4761_v19 = vld [vmem:[%s6631_s1 + $0x94c] ss:$12 sps:$4 sm:$0xff]   ;;  %v4764_v23 = vld [vmem:[%s6631_s1 + $0x364] ss:$12 sps:$4 sm:$0xff]  }
  0x23   : > { %2727 = vmatpush1.bf16.msra.mxu1 %v4682_v30  ;;  %v4756_v20 = vld [vmem:[%s6631_s1 + $0x348] ss:$12 sps:$4 sm:$0xff]   ;;  %v4767_v25 = vld [vmem:[%s6631_s1 + $0x964] ss:$12 sps:$4 sm:$0xff]   ;;  %v4762_v26 = vld [vmem:[%s6631_s1 + $0x360] ss:$12 sps:$4 sm:$0xff]  }
  0x24   : > { %2800 = vmatpush1.bf16.msra.mxu0 %v4683_v31  ;;  %2728 = vmatprep.subr.bf16.mxu1 %v4684_v32  ;;  %v4759_v22 = vld [vmem:[%s6631_s1 + $0x948] ss:$12 sps:$4 sm:$0xff]   ;;  %v4765_v27 = vld [vmem:[%s6631_s1 + $0x960] ss:$12 sps:$4 sm:$0xff]   ;;  %v5498_v29 = vld [vmem:[%s5346_s12 + $0x78] ss:$56 sps:$4 sm:$0xff]  }
  0x25   : > { %2801 = vmatprep.subr.bf16.mxu0 %v4686_v33  ;;  %v5481_v24 = vld [vmem:[%s5346_s12 + $0x7c] ss:$56 sps:$4 sm:$0xff]   ;;  %v5495_v28 = vld [vmem:[%s5346_s12 + $0xe0] ss:$56 sps:$4 sm:$0xff]   ;;  %s4626_s24 = smul.u32 24, %s6636_s29 }
  0x26   : > { %v4770_v30 = vld [vmem:[%s6631_s1 + $0x37c] ss:$12 sps:$4 sm:$0xff]   ;;  %v4768_v32 = vld [vmem:[%s6631_s1 + $0x378] ss:$12 sps:$4 sm:$0xff]   ;;  %v5510_v33 = vld [vmem:[%s5346_s12 + $0x154] ss:$56 sps:$4 sm:$0xff]  }
  0x27   : > { %2729 = vmatpush1.bf16.msra.mxu1 %v4688_v34  ;;  %v4773_v31 = vld [vmem:[%s6631_s1 + $0x97c] ss:$12 sps:$4 sm:$0xff]   ;;  %v4771_v34 = vld [vmem:[%s6631_s1 + $0x978] ss:$12 sps:$4 sm:$0xff]   ;;  %v4792_v51 = vld [vmem:[%s6631_s1 + $0x3c0] ss:$12 sps:$4 sm:$0xff]   ;;  %s6532_s26 = scalar_lea.vmem %s6634_s4, %s4626_s24 }
  0x28   : > { %2802 = vmatpush1.bf16.msra.mxu0 %v4689_v35  ;;  %2730 = vmatprep.subr.bf16.mxu1 %v4690_v36  ;;  %v4779_v35 = vld [vmem:[%s6631_s1 + $0x394] ss:$12 sps:$4 sm:$0xff]   ;;  %v5521_v36 = vld [vmem:[%s5346_s12 + $0xec] ss:$56 sps:$4 sm:$0xff]  }
  0x29   : > { %2803 = vmatprep.subr.bf16.mxu0 %v4692_v37  ;;  %v4782_v37 = vld [vmem:[%s6631_s1 + $0x994] ss:$12 sps:$4 sm:$0xff]  }
  0x2b   : > { %2731 = vmatpush1.bf16.msra.mxu1 %v4694_v38  ;;  %v4777_v38 = vld [vmem:[%s6631_s1 + $0x390] ss:$12 sps:$4 sm:$0xff]  }
  0x2c   : > { %2804 = vmatpush1.bf16.msra.mxu0 %v4695_v39  ;;  %2732 = vmatprep.subr.bf16.mxu1 %v4696_v40  ;;  %v5532_v39 = vld [vmem:[%s5346_s12 + $0x150] ss:$56 sps:$4 sm:$0xff]  }
  0x2d   : > { %2805 = vmatprep.subr.bf16.mxu0 %v4698_v41  ;;  %v5535_v40 = vld [vmem:[%s5346_s12 + $0xe8] ss:$56 sps:$4 sm:$0xff]   ;;  %v4780_v41 = vld [vmem:[%s6631_s1 + $0x990] ss:$12 sps:$4 sm:$0xff]  }
  0x2f   : > { %2733 = vmatpush1.bf16.msra.mxu1 %v4700_v42  ;;  %v4785_v42 = vld [vmem:[%s6631_s1 + $0x3ac] ss:$12 sps:$4 sm:$0xff]  }
  0x30   : > { %2806 = vmatpush1.bf16.msra.mxu0 %v4701_v43  ;;  %2734 = vmatprep.subr.bf16.mxu1 %v4702_v44  ;;  %v4788_v43 = vld [vmem:[%s6631_s1 + $0x9ac] ss:$12 sps:$4 sm:$0xff]   ;;  %v4783_v44 = vld [vmem:[%s6631_s1 + $0x3a8] ss:$12 sps:$4 sm:$0xff]  }
  0x31   : > { %2807 = vmatprep.subr.bf16.mxu0 %v4704_v45  ;;  %v4786_v45 = vld [vmem:[%s6631_s1 + $0x9a8] ss:$12 sps:$4 sm:$0xff]  }
  0x33   : > { %2735 = vmatpush1.bf16.msra.mxu1 %v4706_v46  ;;  %v4824_v46 = vld [vmem:[%s5346_s12 + $0x34] ss:$56 sps:$4 sm:$0xff]  }
  0x34   : > { %2808 = vmatpush1.bf16.msra.mxu0 %v4707_v47  ;;  %2736 = vmatprep.subr.bf16.mxu1 %v4708_v48  ;;  %v4794_v47 = vld [vmem:[%s6631_s1 + $0x3c4] ss:$12 sps:$4 sm:$0xff]  }
  0x35   : > { %2809 = vmatprep.subr.bf16.mxu0 %v4710_v50  ;;  %v4797_v48 = vld [vmem:[%s6631_s1 + $0x9c4] ss:$12 sps:$4 sm:$0xff]   ;;  %v5562_v50 = vld [vmem:[%s5346_s12 + $0x15c] ss:$56 sps:$4 sm:$0xff]  }
  0x37   : > { %2737 = vmatpush1.bf16.msra.mxu1 %v4712_v52  ;;  %v4795_v52 = vld [vmem:[%s6631_s1 + $0x9c0] ss:$12 sps:$4 sm:$0xff]  }
  0x38   : > { %2810 = vmatpush1.bf16.msra.mxu0 %v4713_v53  ;;  %2738 = vmatprep.subr.bf16.mxu1 %v4714_v54  ;;  %v4800_v53 = vld [vmem:[%s6631_s1 + $0x3dc] ss:$12 sps:$4 sm:$0xff]   ;;  %v5576_v54 = vld [vmem:[%s5346_s12 + $0x158] ss:$56 sps:$4 sm:$0xff]  }
  0x39   : > { %2811 = vmatprep.subr.bf16.mxu0 %v4716_v55  ;;  %v4803_v55 = vld [vmem:[%s6631_s1 + $0x9dc] ss:$12 sps:$4 sm:$0xff]  }
  0x3b   : > { %2739 = vmatpush1.bf16.msra.mxu1 %v4718_v56  ;;  %v4798_v56 = vld [vmem:[%s6631_s1 + $0x3d8] ss:$12 sps:$4 sm:$0xff]  }
  0x3c   : > { %2812 = vmatpush1.bf16.msra.mxu0 %v4719_v57  ;;  %2740 = vmatprep.subr.bf16.mxu1 %v4720_v58  ;;  %v4801_v57 = vld [vmem:[%s6631_s1 + $0x9d8] ss:$12 sps:$4 sm:$0xff]   ;;  %v4811_v58 = vld [vmem:[%s6631_s1 + $0x3f4] ss:$12 sps:$4 sm:$0xff]  }
  0x3d   : > { %2813 = vmatprep.subr.bf16.mxu0 %v4722_v59  ;;  %v4814_v59 = vld [vmem:[%s6631_s1 + $0x9f4] ss:$12 sps:$4 sm:$0xff]  }
  0x3f   : > { %2741 = vmatpush1.bf16.msra.mxu1 %v4724_v60  ;;  %v4809_v60 = vld [vmem:[%s6631_s1 + $0x3f0] ss:$12 sps:$4 sm:$0xff]  }
  0x40   : > { %2814 = vmatpush1.bf16.msra.mxu0 %v4725_v61  ;;  %2742 = vmatprep.subr.bf16.mxu1 %v4726_v62  ;;  %v5598_v61 = vld [vmem:[%s5346_s12 + $0x14] ss:$56 sps:$4 sm:$0xff]   ;;  %v4812_v62 = vld [vmem:[%s6631_s1 + $0x9f0] ss:$12 sps:$4 sm:$0xff]  }
  0x41   : > { %2815 = vmatprep.subr.bf16.mxu0 %v4728_v63  ;;  %v4818_v63 = vld [vmem:[%s6631_s1 + $0x40c] ss:$12 sps:$4 sm:$0xff]  }
  0x43   : > { %2743 = vmatpush1.bf16.msra.mxu1 %v4730_v0  ;;  %v4821_v0 = vld [vmem:[%s6631_s1 + $0xa0c] ss:$12 sps:$4 sm:$0xff]  }
  0x44   : > { %2816 = vmatpush1.bf16.msra.mxu0 %v4731_v1  ;;  %3150 = vmatprep.subr.bf16.mxu1 %v4743_v3  ;;  %v4816_v1 = vld [vmem:[%s6631_s1 + $0x408] ss:$12 sps:$4 sm:$0xff]   ;;  %v4829_v3 = vld [vmem:[%s6631_s1 + $0x424] ss:$12 sps:$4 sm:$0xff]  }
  0x45   : > { %2858 = vmatprep.subr.bf16.mxu0 %v4740_v2  ;;  %v4819_v2 = vld [vmem:[%s6631_s1 + $0xa08] ss:$12 sps:$4 sm:$0xff]  }
  0x46   : > { %2745 = vmatmul.mubr.bf16.vlgmr.msra.gmra.mrb[0].mxu1 %v5417_v4 }
  0x47   : > { %2818 = vmatmul.mubr.bf16.vlgmr.msra.gmra.mrb[0].mxu0 %v5420_v5  ;;  %3151 = vmatpush1.bf16.msra.mxu1 %v4741_v7  ;;  %v4822_v7 = vld [vmem:[%s5346_s12 + $0x30] ss:$56 sps:$4 sm:$0xff]  }
  0x48   : > { %2859 = vmatpush1.bf16.msra.mxu0 %v4738_v6  ;;  %3152 = vmatprep.subr.bf16.mxu1 %v4749_v9  ;;  %v4830_v6 = vld [vmem:[%s6631_s1 + $0xc8] ss:$12 sps:$4 sm:$0xff]  }
  0x49   : > { %2860 = vmatprep.subr.bf16.mxu0 %v4746_v8  ;;  %2754 = vmatprep.mubr.bf16.mxu1 %v5435_v10  ;;  %v4827_v8 = vld [vmem:[%s6631_s1 + $0x420] ss:$12 sps:$4 sm:$0xff]   ;;  %v4832_v9 = vld [vmem:[%s6631_s1 + $0x8] ss:$12 sps:$4 sm:$0xff]  }
  0x4a   : > { %2827 = vmatprep.mubr.bf16.mxu0 %v5481_v24 }
  0x4b   : > { %3153 = vmatpush1.bf16.msra.mxu1 %v4747_v12  ;;  %v4836_v12 = vld [vmem:[%s6631_s1 + $0xe0] ss:$12 sps:$4 sm:$0xff]  }
  0x4c   : > { %2861 = vmatpush1.bf16.msra.mxu0 %v4744_v11  ;;  %3154 = vmatprep.subr.bf16.mxu1 %v4755_v14  ;;  %v4835_v11 = vld [vmem:[%s6631_s1 + $0x43c] ss:$12 sps:$4 sm:$0xff]   ;;  %v4833_v14 = vld [vmem:[%s6631_s1 + $0x438] ss:$12 sps:$4 sm:$0xff]  }
  0x4d   : > { %2862 = vmatprep.subr.bf16.mxu0 %v4752_v13  ;;  %v4838_v13 = vld [vmem:[%s5346_s12 + $0xa4] ss:$56 sps:$4 sm:$0xff]  }
  0x4e   : > { %2755 = vmatmul.mubr.bf16.gmra.mrb[4].mxu1 %v5459_v17 }
  0x4f   : > { %3155 = vmatpush1.bf16.msra.mxu1 %v4753_v16  ;;  %2764 = vmatprep.mubr.bf16.mxu1 %v5471_v21  ;;  %v4844_v16 = vld [vmem:[%s6631_s1 + $0x454] ss:$12 sps:$4 sm:$0xff]  }
  0x50   : > { %2863 = vmatpush1.bf16.msra.mxu0 %v4750_v15  ;;  %3156 = vmatprep.subr.bf16.mxu1 %v4761_v19  ;;  %v4837_v15 = vld [vmem:[%s6631_s1 + $0x20] ss:$12 sps:$4 sm:$0xff]   ;;  %v4842_v19 = vld [vmem:[%s6631_s1 + $0x450] ss:$12 sps:$4 sm:$0xff]  }
  0x51   : > { %2864 = vmatprep.subr.bf16.mxu0 %v4758_v18  ;;  %2828 = vmatmul.mubr.bf16.gmra.mrb[4].mxu0 %v5498_v29  ;;  %v4846_v18 = vld [vmem:[%s6631_s1 + $0xf8] ss:$12 sps:$4 sm:$0xff]  }
  0x52   : > { %2837 = vmatprep.mubr.bf16.mxu0 %v5521_v36 }
  0x53   : > { %3157 = vmatpush1.bf16.msra.mxu1 %v4759_v22  ;;  %v4848_v22 = vld [vmem:[%s6631_s1 + $0x38] ss:$12 sps:$4 sm:$0xff]  }
  0x54   : > { %2865 = vmatpush1.bf16.msra.mxu0 %v4756_v20  ;;  %3158 = vmatprep.subr.bf16.mxu1 %v4767_v25  ;;  %v4845_v20 = vld [vmem:[%s5346_s12 + $0xa0] ss:$56 sps:$4 sm:$0xff]   ;;  %v4852_v25 = vld [vmem:[%s6631_s1 + $0x110] ss:$12 sps:$4 sm:$0xff]  }
  0x55   : > { %2866 = vmatprep.subr.bf16.mxu0 %v4764_v23  ;;  %v4851_v23 = vld [vmem:[%s6631_s1 + $0x46c] ss:$12 sps:$4 sm:$0xff]  }
  0x56   : > { %2765 = vmatmul.mubr.bf16.gmra.mrb[8].mxu1 %v5495_v28 }
  0x57   : > { %3159 = vmatpush1.bf16.msra.mxu1 %v4765_v27  ;;  %2774 = vmatprep.mubr.bf16.mxu1 %v5510_v33  ;;  %v4854_v27 = vld [vmem:[%s5346_s12 + $0x114] ss:$56 sps:$4 sm:$0xff]  }
  0x58   : > { %2867 = vmatpush1.bf16.msra.mxu0 %v4762_v26  ;;  %3160 = vmatprep.subr.bf16.mxu1 %v4773_v31  ;;  %v4849_v26 = vld [vmem:[%s6631_s1 + $0x468] ss:$12 sps:$4 sm:$0xff]   ;;  %v4861_v31 = vld [vmem:[%s6631_s1 + $0x484] ss:$12 sps:$4 sm:$0xff]  }
  0x59   : > { %2868 = vmatprep.subr.bf16.mxu0 %v4770_v30  ;;  %2838 = vmatmul.mubr.bf16.gmra.mrb[8].mxu0 %v5535_v40  ;;  %v4853_v30 = vld [vmem:[%s6631_s1 + $0x50] ss:$12 sps:$4 sm:$0xff]  }
  0x5a   : > { %2847 = vmatprep.mubr.bf16.mxu0 %v5562_v50 }
  0x5b   : > { %3161 = vmatpush1.bf16.msra.mxu1 %v4771_v34  ;;  %v5677_v34 = vld [vmem:[%s5346_s12 + $0x10] ss:$56 sps:$4 sm:$0xff]  }
  0x5c   : > { %2869 = vmatpush1.bf16.msra.mxu0 %v4768_v32  ;;  %3162 = vmatprep.subr.bf16.mxu1 %v4782_v37  ;;  %v4863_v32 = vld [vmem:[%s6631_s1 + $0x128] ss:$12 sps:$4 sm:$0xff]  }
  0x5d   : > { %2870 = vmatprep.subr.bf16.mxu0 %v4779_v35  ;;  %v4859_v35 = vld [vmem:[%s6631_s1 + $0x480] ss:$12 sps:$4 sm:$0xff]   ;;  %v4862_v37 = vld [vmem:[%s5346_s12 + $0x110] ss:$56 sps:$4 sm:$0xff]  }
  0x5e   : > { %2775 = vmatmul.mubr.bf16.gmra.mrb[12].mxu1 %v5532_v39 }
  0x5f   : > { %3163 = vmatpush1.bf16.msra.mxu1 %v4780_v41  ;;  %4255 = vmatprep.mubr.msk.bf16.mxu1 %vm2699_vm0, %v4824_v46  ;;  %v4867_v41 = vld [vmem:[%s6631_s1 + $0x49c] ss:$12 sps:$4 sm:$0xff]   ;;  %v4874_v46 = vld [vmem:[%s6631_s1 + $0x4b4] ss:$12 sps:$4 sm:$0xff]  }
  0x60   : > { %2871 = vmatpush1.bf16.msra.mxu0 %v4777_v38  ;;  %3164 = vmatprep.subr.bf16.mxu1 %v4788_v43  ;;  %v4864_v38 = vld [vmem:[%s6631_s1 + $0x68] ss:$12 sps:$4 sm:$0xff]   ;;  %v4865_v43 = vld [vmem:[%s6631_s1 + $0x498] ss:$12 sps:$4 sm:$0xff]  }
  0x61   : > { %2872 = vmatprep.subr.bf16.mxu0 %v4785_v42  ;;  %2848 = vmatmul.mubr.bf16.gmra.mrb[12].mxu0 %v5576_v54  ;;  %v4868_v42 = vld [vmem:[%s6631_s1 + $0x140] ss:$12 sps:$4 sm:$0xff]  }
  0x62   : > { %2890 = vmatprep.mubr.bf16.mxu0 %v5598_v61 }
  0x63   : > { %3165 = vmatpush1.bf16.msra.mxu1 %v4786_v45  ;;  %v4869_v45 = vld [vmem:[%s6631_s1 + $0x80] ss:$12 sps:$4 sm:$0xff]  }
  0x64   : > { %2873 = vmatpush1.bf16.msra.mxu0 %v4783_v44  ;;  %3166 = vmatprep.subr.bf16.mxu1 %v4797_v48  ;;  %v4870_v44 = vld [vmem:[%s5346_s12 + $0x184] ss:$56 sps:$4 sm:$0xff]  }
  0x65   : > { %2874 = vmatprep.subr.bf16.mxu0 %v4794_v47  ;;  %v4876_v47 = vld [vmem:[%s6631_s1 + $0x158] ss:$12 sps:$4 sm:$0xff]   ;;  %v4872_v48 = vld [vmem:[%s6631_s1 + $0x4b0] ss:$12 sps:$4 sm:$0xff]  }
  0x67   : > { %3167 = vmatpush1.bf16.msra.mxu1 %v4795_v52  ;;  %v4877_v52 = vld [vmem:[%s6631_s1 + $0x98] ss:$12 sps:$4 sm:$0xff]  }
  0x68   : > { %2875 = vmatpush1.bf16.msra.mxu0 %v4792_v51  ;;  %3168 = vmatprep.subr.bf16.mxu1 %v4803_v55  ;;  %v4875_v51 = vld [vmem:[%s5346_s12 + $0x180] ss:$56 sps:$4 sm:$0xff]   ;;  %v4881_v55 = vld [vmem:[%s6631_s1 + $0x170] ss:$12 sps:$4 sm:$0xff]  }
  0x69   : > { %2876 = vmatprep.subr.bf16.mxu0 %v4800_v53  ;;  %v4880_v53 = vld [vmem:[%s6631_s1 + $0x4cc] ss:$12 sps:$4 sm:$0xff]  }
  0x6b   : > { %3169 = vmatpush1.bf16.msra.mxu1 %v4801_v57  ;;  %v5724_v57 = vld [vmem:[%s5346_s12 + $0x84] ss:$56 sps:$4 sm:$0xff]  }
  0x6c   : > { %2877 = vmatpush1.bf16.msra.mxu0 %v4798_v56  ;;  %3170 = vmatprep.subr.bf16.mxu1 %v4814_v59  ;;  %v4878_v56 = vld [vmem:[%s6631_s1 + $0x4c8] ss:$12 sps:$4 sm:$0xff]   ;;  %v4885_v59 = vld [vmem:[%s6631_s1 + $0x4e4] ss:$12 sps:$4 sm:$0xff]  }
  0x6d   : > { %2878 = vmatprep.subr.bf16.mxu0 %v4811_v58  ;;  %v4882_v58 = vld [vmem:[%s6631_s1 + $0xb0] ss:$12 sps:$4 sm:$0xff]  }
  0x6f   : > { %3171 = vmatpush1.bf16.msra.mxu1 %v4812_v62  ;;  %v5738_v62 = vld [vmem:[%s5346_s12 + $0x80] ss:$56 sps:$4 sm:$0xff]  }
  0x70   : > { %2879 = vmatpush1.bf16.msra.mxu0 %v4809_v60  ;;  %3172 = vmatprep.subr.bf16.mxu1 %v4821_v0  ;;  %v4886_v60 = vld [vmem:[%s6631_s1 + $0x248] ss:$12 sps:$4 sm:$0xff]  }
  0x71   : > { %2880 = vmatprep.subr.bf16.mxu0 %v4818_v63  ;;  %v4883_v63 = vld [vmem:[%s6631_s1 + $0x4e0] ss:$12 sps:$4 sm:$0xff]   ;;  %v4887_v0 = vld [vmem:[%s6631_s1 + $0x188] ss:$12 sps:$4 sm:$0xff]  }
  0x73   : > { %3173 = vmatpush1.bf16.msra.mxu1 %v4819_v2  ;;  %v4888_v2 = vld [vmem:[%s6631_s1 + $0x4f8] ss:$12 sps:$4 sm:$0xff]  }
  0x74   : > { %2881 = vmatpush1.bf16.msra.mxu0 %v4816_v1  ;;  %4265 = vmatprep.subr.bf16.mxu1 %v4830_v6  ;;  %v4890_v1 = vld [vmem:[%s6631_s1 + $0x4fc] ss:$12 sps:$4 sm:$0xff]   ;;  %v4892_v6 = vld [vmem:[%s6631_s1 + $0x1a0] ss:$12 sps:$4 sm:$0xff]  }
  0x75   : > { %2882 = vmatprep.subr.bf16.mxu0 %v4829_v3  ;;  %v5758_v3 = vld [vmem:[%s5346_s12 + $0xf4] ss:$56 sps:$4 sm:$0xff]  }
  0x76   : > { %3183 = vmatmul.mubr.bf16.vlgmr.msra.gmra.mrb[16].mxu1 %v4822_v7  ;;  %v4895_v7 = vld [vmem:[%s6631_s1 + $0x514] ss:$12 sps:$4 sm:$0xff]  }
  0x77   : > { %4266 = vmatpush3.bf16.msra.mxu1 %v4832_v9  ;;  %4256 = vmatprep.mubr.msk.bf16.mxu1 %vm2699_vm0, %v4838_v13  ;;  %v4893_v9 = vld [vmem:[%s6631_s1 + $0x510] ss:$12 sps:$4 sm:$0xff]   ;;  %v4898_v13 = vld [vmem:[%s6631_s1 + $0x528] ss:$12 sps:$4 sm:$0xff]  }
  0x78   : > { %2883 = vmatpush1.bf16.msra.mxu0 %v4827_v8  ;;  %4267 = vmatprep.subr.bf16.mxu1 %v4836_v12  ;;  %v4896_v8 = vld [vmem:[%s6631_s1 + $0x278] ss:$12 sps:$4 sm:$0xff]  }
  0x79   : > { %2884 = vmatprep.subr.bf16.mxu0 %v4835_v11  ;;  %v4897_v11 = vld [vmem:[%s6631_s1 + $0x1b8] ss:$12 sps:$4 sm:$0xff]  }
  0x7a   : > { %v4900_v12 = vld [vmem:[%s6631_s1 + $0x52c] ss:$12 sps:$4 sm:$0xff]  }
  0x7b   : > { %4268 = vmatpush3.bf16.msra.mxu1 %v4837_v15  ;;  %v4902_v15 = vld [vmem:[%s6631_s1 + $0x1d0] ss:$12 sps:$4 sm:$0xff]  }
  0x7c   : > { %2885 = vmatpush1.bf16.msra.mxu0 %v4833_v14  ;;  %4269 = vmatprep.subr.bf16.mxu1 %v4846_v18  ;;  %v5792_v14 = vld [vmem:[%s5346_s12 + $0x164] ss:$56 sps:$4 sm:$0xff]   ;;  %v4906_v18 = vld [vmem:[%s6631_s1 + $0x2a8] ss:$12 sps:$4 sm:$0xff]  }
  0x7d   : > { %2886 = vmatprep.subr.bf16.mxu0 %v4844_v16  ;;  %v4905_v16 = vld [vmem:[%s6631_s1 + $0x544] ss:$12 sps:$4 sm:$0xff]  }
  0x7e   : > { %3193 = vmatmul.mubr.bf16.gmra.mrb[20].mxu1 %v4845_v20  ;;  %v4907_v20 = vld [vmem:[%s6631_s1 + $0x1e8] ss:$12 sps:$4 sm:$0xff]  }
  0x7f   : > { %4270 = vmatpush3.bf16.msra.mxu1 %v4848_v22  ;;  %4257 = vmatprep.mubr.msk.bf16.mxu1 %vm2699_vm0, %v4854_v27  ;;  %v4910_v22 = vld [vmem:[%s6631_s1 + $0x55c] ss:$12 sps:$4 sm:$0xff]   ;;  %v4917_v27 = vld [vmem:[%s6631_s1 + $0x574] ss:$12 sps:$4 sm:$0xff]  }
  0x80   : > { %2887 = vmatpush1.bf16.msra.mxu0 %v4842_v19  ;;  %4271 = vmatprep.subr.bf16.mxu1 %v4852_v25  ;;  %v4903_v19 = vld [vmem:[%s6631_s1 + $0x540] ss:$12 sps:$4 sm:$0xff]  }
  0x81   : > { %2888 = vmatprep.subr.bf16.mxu0 %v4851_v23  ;;  %v4908_v23 = vld [vmem:[%s6631_s1 + $0x558] ss:$12 sps:$4 sm:$0xff]   ;;  %v4912_v25 = vld [vmem:[%s6631_s1 + $0x200] ss:$12 sps:$4 sm:$0xff]  }
  0x83   : > { %4272 = vmatpush3.bf16.msra.mxu1 %v4853_v30  ;;  %v4918_v30 = vld [vmem:[%s6631_s1 + $0x2d8] ss:$12 sps:$4 sm:$0xff]  }
  0x84   : > { %2889 = vmatpush1.bf16.msra.mxu0 %v4849_v26  ;;  %4273 = vmatprep.subr.bf16.mxu1 %v4863_v32  ;;  %v5829_v26 = vld [vmem:[%s5346_s12 + $0x1c] ss:$56 sps:$4 sm:$0xff]   ;;  %v4923_v32 = vld [vmem:[%s6631_s1 + $0x58c] ss:$12 sps:$4 sm:$0xff]  }
  0x85   : > { %2931 = vmatprep.subr.bf16.mxu0 %v4861_v31  ;;  %v4920_v31 = vld [vmem:[%s6631_s1 + $0x218] ss:$12 sps:$4 sm:$0xff]  }
  0x86   : > { %3203 = vmatmul.mubr.bf16.gmra.mrb[24].mxu1 %v4862_v37  ;;  %v4925_v37 = vld [vmem:[%s6631_s1 + $0x230] ss:$12 sps:$4 sm:$0xff]  }
  0x87   : > { %2891 = vmatmul.mubr.bf16.vlgmr.msra.gmra.mrb[0].mxu0 %v5677_v34  ;;  %4274 = vmatpush3.bf16.msra.mxu1 %v4864_v38  ;;  %v4930_v38 = vld [vmem:[%s6631_s1 + $0x5a4] ss:$12 sps:$4 sm:$0xff]  }
  0x88   : > { %2932 = vmatpush1.bf16.msra.mxu0 %v4859_v35  ;;  %4275 = vmatprep.subr.bf16.mxu1 %v4868_v42  ;;  %v4921_v35 = vld [vmem:[%s6631_s1 + $0x588] ss:$12 sps:$4 sm:$0xff]   ;;  %v4928_v42 = vld [vmem:[%s6631_s1 + $0x5a0] ss:$12 sps:$4 sm:$0xff]  }
  0x89   : > { %2933 = vmatprep.subr.bf16.mxu0 %v4867_v41  ;;  %4258 = vmatprep.mubr.msk.bf16.mxu1 %vm2699_vm0, %v4870_v44  ;;  %v5152_v41 = vld [vmem:[%s5346_s12 + $0xc] ss:$56 sps:$4 sm:$0xff]   ;;  %v4936_v44 = vld [vmem:[%s6631_s1 + $0x5bc] ss:$12 sps:$4 sm:$0xff]  }
  0x8a   : > { %2900 = vmatprep.mubr.bf16.mxu0 %v5724_v57 }
  0x8b   : > { %4276 = vmatpush3.bf16.msra.mxu1 %v4869_v45  ;;  %v4937_v45 = vld [vmem:[%s6631_s1 + $0x3e0] ss:$12 sps:$4 sm:$0xff]  }
  0x8c   : > { %2934 = vmatpush1.bf16.msra.mxu0 %v4865_v43  ;;  %4277 = vmatprep.subr.bf16.mxu1 %v4876_v47  ;;  %v4933_v43 = vld [vmem:[%s6631_s1 + $0x308] ss:$12 sps:$4 sm:$0xff]   ;;  %v4938_v47 = vld [vmem:[%s6631_s1 + $0x320] ss:$12 sps:$4 sm:$0xff]  }
  0x8d   : > { %2935 = vmatprep.subr.bf16.mxu0 %v4874_v46  ;;  %v4934_v46 = vld [vmem:[%s6631_s1 + $0x5b8] ss:$12 sps:$4 sm:$0xff]  }
  0x8e   : > { %3213 = vmatmul.mubr.bf16.gmra.mrb[28].mxu1 %v4875_v51  ;;  %v4941_v51 = vld [vmem:[%s6631_s1 + $0x5d0] ss:$12 sps:$4 sm:$0xff]  }
  0x8f   : > { %4278 = vmatpush3.bf16.msra.mxu1 %v4877_v52  ;;  %3255 = vmatprep.mubr.bf16.mxu1 %v5361_v49  ;;  %v4891_v49 = vld [vmem:[%s6631_s1 + $0x260] ss:$12 sps:$4 sm:$0xff]   ;;  %v4946_v52 = vld [vmem:[%s6631_s1 + $0x338] ss:$12 sps:$4 sm:$0xff]  }
  0x90   : > { %2936 = vmatpush1.bf16.msra.mxu0 %v4872_v48  ;;  %4279 = vmatprep.subr.bf16.mxu1 %v4881_v55  ;;  %v4943_v48 = vld [vmem:[%s6631_s1 + $0x5d4] ss:$12 sps:$4 sm:$0xff]  }
  0x91   : > { %2937 = vmatprep.subr.bf16.mxu0 %v4880_v53  ;;  %2901 = vmatmul.mubr.bf16.gmra.mrb[4].mxu0 %v5738_v62  ;;  %v4949_v53 = vld [vmem:[%s6631_s1 + $0x5ec] ss:$12 sps:$4 sm:$0xff]   ;;  %v4947_v55 = vld [vmem:[%s6631_s1 + $0x5e8] ss:$12 sps:$4 sm:$0xff]  }
  0x92   : > { %2910 = vmatprep.mubr.bf16.mxu0 %v5758_v3 }
  0x93   : > { %4280 = vmatpush3.bf16.msra.mxu1 %v4882_v58  ;;  %v4957_v58 = vld [vmem:[%s6631_s1 + $0x604] ss:$12 sps:$4 sm:$0xff]  }
  0x94   : > { %2938 = vmatpush1.bf16.msra.mxu0 %v4878_v56  ;;  %4305 = vmatprep.subr.bf16.mxu1 %v4886_v60  ;;  %v4951_v56 = vld [vmem:[%s6631_s1 + $0x350] ss:$12 sps:$4 sm:$0xff]   ;;  %v4955_v60 = vld [vmem:[%s6631_s1 + $0x600] ss:$12 sps:$4 sm:$0xff]  }
  0x95   : > { %2939 = vmatprep.subr.bf16.mxu0 %v4885_v59  ;;  %v5918_v59 = vld [vmem:[%s5346_s12 + $0x18] ss:$56 sps:$4 sm:$0xff]  }
  0x96   : > { %3256 = vmatmul.mubr.bf16.vlgmr.msra.gmra.mrb[32].mxu1 %v5417_v4  ;;  %v5772_v4 = vld [vmem:[%s5346_s12 + $0xf0] ss:$56 sps:$4 sm:$0xff]  }
  0x97   : > { %4306 = vmatpush3.bf16.msra.mxu1 %v4887_v0  ;;  %3263 = vmatprep.mubr.bf16.mxu1 %v5435_v10  ;;  %v4901_v10 = vld [vmem:[%s6631_s1 + $0x290] ss:$12 sps:$4 sm:$0xff]  }
  0x98   : > { %2940 = vmatpush1.bf16.msra.mxu0 %v4883_v63  ;;  %4307 = vmatprep.subr.bf16.mxu1 %v4891_v49  ;;  %v4959_v63 = vld [vmem:[%s6631_s1 + $0x368] ss:$12 sps:$4 sm:$0xff]   ;;  %v4964_v49 = vld [vmem:[%s6631_s1 + $0x380] ss:$12 sps:$4 sm:$0xff]  }
  0x99   : > { %2941 = vmatprep.subr.bf16.mxu0 %v4890_v1  ;;  %2911 = vmatmul.mubr.bf16.gmra.mrb[8].mxu0 %v5772_v4  ;;  %v4962_v0 = vld [vmem:[%s6631_s1 + $0x61c] ss:$12 sps:$4 sm:$0xff]   ;;  %v4960_v1 = vld [vmem:[%s6631_s1 + $0x618] ss:$12 sps:$4 sm:$0xff]  }
  0x9a   : > { %2920 = vmatprep.mubr.bf16.mxu0 %v5792_v14 }
  0x9b   : > { %4308 = vmatpush3.bf16.msra.mxu1 %v4892_v6  ;;  %v4968_v6 = vld [vmem:[%s6631_s1 + $0x458] ss:$12 sps:$4 sm:$0xff]  }
  0x9c   : > { %2942 = vmatpush1.bf16.msra.mxu0 %v4888_v2  ;;  %4309 = vmatprep.subr.bf16.mxu1 %v4896_v8  ;;  %v4967_v2 = vld [vmem:[%s6631_s1 + $0x634] ss:$12 sps:$4 sm:$0xff]   ;;  %v4969_v8 = vld [vmem:[%s6631_s1 + $0x398] ss:$12 sps:$4 sm:$0xff]  }
  0x9d   : > { %2943 = vmatprep.subr.bf16.mxu0 %v4895_v7  ;;  %v4965_v7 = vld [vmem:[%s6631_s1 + $0x630] ss:$12 sps:$4 sm:$0xff]  }
  0x9e   : > { %3264 = vmatmul.mubr.bf16.gmra.mrb[36].mxu1 %v5459_v17  ;;  %v5806_v17 = vld [vmem:[%s5346_s12 + $0x160] ss:$56 sps:$4 sm:$0xff]  }
  0x9f   : > { %4310 = vmatpush3.bf16.msra.mxu1 %v4897_v11  ;;  %3271 = vmatprep.mubr.bf16.mxu1 %v5471_v21  ;;  %v4911_v21 = vld [vmem:[%s6631_s1 + $0x2c0] ss:$12 sps:$4 sm:$0xff]  }
  0xa0   : > { %2944 = vmatpush1.bf16.msra.mxu0 %v4893_v9  ;;  %4311 = vmatprep.subr.bf16.mxu1 %v4901_v10  ;;  %v4972_v9 = vld [vmem:[%s6631_s1 + $0x64c] ss:$12 sps:$4 sm:$0xff]   ;;  %v5960_v11 = vld [vmem:[%s5346_s12 + $0x88] ss:$56 sps:$4 sm:$0xff]   ;;  %v4974_v10 = vld [vmem:[%s6631_s1 + $0x3b0] ss:$12 sps:$4 sm:$0xff]  }
  0xa1   : > { %2945 = vmatprep.subr.bf16.mxu0 %v4900_v12  ;;  %2921 = vmatmul.mubr.bf16.gmra.mrb[12].mxu0 %v5806_v17  ;;  %v4970_v12 = vld [vmem:[%s6631_s1 + $0x648] ss:$12 sps:$4 sm:$0xff]  }
  0xa2   : > { %2963 = vmatprep.mubr.bf16.mxu0 %v5829_v26 }
  0xa3   : > { %4312 = vmatpush3.bf16.msra.mxu1 %v4902_v15  ;;  %v4978_v15 = vld [vmem:[%s6631_s1 + $0x548] ss:$12 sps:$4 sm:$0xff]  }
  0xa4   : > { %2946 = vmatpush1.bf16.msra.mxu0 %v4898_v13  ;;  %4313 = vmatprep.subr.bf16.mxu1 %v4906_v18  ;;  %v4977_v13 = vld [vmem:[%s6631_s1 + $0x664] ss:$12 sps:$4 sm:$0xff]   ;;  %v4979_v18 = vld [vmem:[%s6631_s1 + $0x488] ss:$12 sps:$4 sm:$0xff]  }
  0xa5   : > { %2947 = vmatprep.subr.bf16.mxu0 %v4905_v16  ;;  %v4975_v16 = vld [vmem:[%s6631_s1 + $0x660] ss:$12 sps:$4 sm:$0xff]  }
  0xa6   : > { %3272 = vmatmul.mubr.bf16.gmra.mrb[40].mxu1 %v5495_v28  ;;  %v4915_v28 = vld [vmem:[%s6631_s1 + $0x570] ss:$12 sps:$4 sm:$0xff]  }
  0xa7   : > { %4314 = vmatpush3.bf16.msra.mxu1 %v4907_v20  ;;  %3279 = vmatprep.mubr.bf16.mxu1 %v5510_v33  ;;  %v4924_v33 = vld [vmem:[%s6631_s1 + $0x2f0] ss:$12 sps:$4 sm:$0xff]  }
  0xa8   : > { %2948 = vmatpush1.bf16.msra.mxu0 %v4903_v19  ;;  %4315 = vmatprep.subr.bf16.mxu1 %v4911_v21  ;;  %v4982_v19 = vld [vmem:[%s6631_s1 + $0x67c] ss:$12 sps:$4 sm:$0xff]   ;;  %v5994_v20 = vld [vmem:[%s5346_s12 + $0xf8] ss:$56 sps:$4 sm:$0xff]   ;;  %v4984_v21 = vld [vmem:[%s6631_s1 + $0x4a0] ss:$12 sps:$4 sm:$0xff]  }
  0xa9   : > { %2949 = vmatprep.subr.bf16.mxu0 %v4910_v22  ;;  %v4980_v22 = vld [vmem:[%s6631_s1 + $0x678] ss:$12 sps:$4 sm:$0xff]  }
  0xab   : > { %4316 = vmatpush3.bf16.msra.mxu1 %v4912_v25  ;;  %v4988_v25 = vld [vmem:[%s6631_s1 + $0x578] ss:$12 sps:$4 sm:$0xff]  }
  0xac   : > { %2950 = vmatpush1.bf16.msra.mxu0 %v4908_v23  ;;  %4317 = vmatprep.subr.bf16.mxu1 %v4918_v30  ;;  %v4987_v23 = vld [vmem:[%s6631_s1 + $0x694] ss:$12 sps:$4 sm:$0xff]   ;;  %v4989_v30 = vld [vmem:[%s6631_s1 + $0x4b8] ss:$12 sps:$4 sm:$0xff]  }
  0xad   : > { %2951 = vmatprep.subr.bf16.mxu0 %v4917_v27  ;;  %v4985_v27 = vld [vmem:[%s6631_s1 + $0x690] ss:$12 sps:$4 sm:$0xff]  }
  0xae   : > { %3280 = vmatmul.mubr.bf16.gmra.mrb[44].mxu1 %v5532_v39  ;;  %v4931_v39 = vld [vmem:[%s6631_s1 + $0x3c8] ss:$12 sps:$4 sm:$0xff]  }
  0xaf   : > { %4318 = vmatpush3.bf16.msra.mxu1 %v4920_v31  ;;  %3320 = vmatprep.mubr.bf16.mxu1 %v5152_v41  ;;  %v6028_v31 = vld [vmem:[%s5346_s12 + $0x168] ss:$56 sps:$4 sm:$0xff]  }
  0xb0   : > { %2952 = vmatpush1.bf16.msra.mxu0 %v4915_v28  ;;  %4319 = vmatprep.subr.bf16.mxu1 %v4924_v33  ;;  %v4992_v28 = vld [vmem:[%s6631_s1 + $0x6ac] ss:$12 sps:$4 sm:$0xff]   ;;  %v4994_v33 = vld [vmem:[%s6631_s1 + $0x4d0] ss:$12 sps:$4 sm:$0xff]  }
  0xb1   : > { %2953 = vmatprep.subr.bf16.mxu0 %v4923_v32  ;;  %v4990_v32 = vld [vmem:[%s6631_s1 + $0x6a8] ss:$12 sps:$4 sm:$0xff]  }
  0xb2   : > { %v5002_v41 = vld [vmem:[%s6631_s1 + $0x6dc] ss:$12 sps:$4 sm:$0xff]  }
  0xb3   : > { %4320 = vmatpush3.bf16.msra.mxu1 %v4925_v37  ;;  %v4998_v37 = vld [vmem:[%s6631_s1 + $0x5a8] ss:$12 sps:$4 sm:$0xff]  }
  0xb4   : > { %2954 = vmatpush1.bf16.msra.mxu0 %v4921_v35  ;;  %4345 = vmatprep.subr.bf16.mxu1 %v4931_v39  ;;  %v4997_v35 = vld [vmem:[%s6631_s1 + $0x6c4] ss:$12 sps:$4 sm:$0xff]   ;;  %v4999_v39 = vld [vmem:[%s6631_s1 + $0x4e8] ss:$12 sps:$4 sm:$0xff]  }
  0xb5   : > { %2955 = vmatprep.subr.bf16.mxu0 %v4930_v38  ;;  %v4995_v38 = vld [vmem:[%s6631_s1 + $0x6c0] ss:$12 sps:$4 sm:$0xff]  }
  0xb6   : > { %3321 = vmatmul.mubr.bf16.vlgmr.msra.gmra.mrb[48].mxu1 %v5420_v5  ;;  %v4944_v5 = vld [vmem:[%s6631_s1 + $0x3f8] ss:$12 sps:$4 sm:$0xff]  }
  0xb7   : > { %4346 = vmatpush3.bf16.msra.mxu1 %v4933_v43  ;;  %3328 = vmatprep.mubr.bf16.mxu1 %v5481_v24  ;;  %v4950_v24 = vld [vmem:[%s6631_s1 + $0x410] ss:$12 sps:$4 sm:$0xff]   ;;  %v5004_v43 = vld [vmem:[%s6631_s1 + $0x500] ss:$12 sps:$4 sm:$0xff]  }
  0xb8   : > { %2956 = vmatpush1.bf16.msra.mxu0 %v4928_v42  ;;  %4347 = vmatprep.subr.bf16.mxu1 %v4937_v45  ;;  %v5000_v42 = vld [vmem:[%s6631_s1 + $0x6d8] ss:$12 sps:$4 sm:$0xff]  }
  0xb9   : > { %2957 = vmatprep.subr.bf16.mxu0 %v4936_v44  ;;  %v5009_v44 = vld [vmem:[%s6631_s1 + $0x6f4] ss:$12 sps:$4 sm:$0xff]   ;;  %v5010_v45 = vld [vmem:[%s6631_s1 + $0x5d8] ss:$12 sps:$4 sm:$0xff]  }
  0xbb   : > { %4348 = vmatpush3.bf16.msra.mxu1 %v4938_v47  ;;  %v5015_v47 = vld [vmem:[%s6631_s1 + $0x70c] ss:$12 sps:$4 sm:$0xff]  }
  0xbc   : > { %2958 = vmatpush1.bf16.msra.mxu0 %v4934_v46  ;;  %4349 = vmatprep.subr.bf16.mxu1 %v4944_v5  ;;  %v5012_v46 = vld [vmem:[%s6631_s1 + $0x518] ss:$12 sps:$4 sm:$0xff]   ;;  %v5017_v5 = vld [vmem:[%s6631_s1 + $0x530] ss:$12 sps:$4 sm:$0xff]  }
  0xbd   : > { %2959 = vmatprep.subr.bf16.mxu0 %v4943_v48  ;;  %v5013_v48 = vld [vmem:[%s6631_s1 + $0x708] ss:$12 sps:$4 sm:$0xff]  }
  0xbe   : > { %3329 = vmatmul.mubr.bf16.gmra.mrb[52].mxu1 %v5498_v29  ;;  %v4958_v29 = vld [vmem:[%s6631_s1 + $0x428] ss:$12 sps:$4 sm:$0xff]  }
  0xbf   : > { %4350 = vmatpush3.bf16.msra.mxu1 %v4946_v52  ;;  %3336 = vmatprep.mubr.bf16.mxu1 %v5521_v36  ;;  %v4963_v36 = vld [vmem:[%s6631_s1 + $0x440] ss:$12 sps:$4 sm:$0xff]   ;;  %v5023_v52 = vld [vmem:[%s6631_s1 + $0x6c8] ss:$12 sps:$4 sm:$0xff]  }
  0xc0   : > { %2960 = vmatpush1.bf16.msra.mxu0 %v4941_v51  ;;  %4351 = vmatprep.subr.bf16.mxu1 %v4950_v24  ;;  %v5022_v51 = vld [vmem:[%s6631_s1 + $0x724] ss:$12 sps:$4 sm:$0xff]   ;;  %v5028_v24 = vld [vmem:[%s6631_s1 + $0x73c] ss:$12 sps:$4 sm:$0xff]  }
  0xc1   : > { %2961 = vmatprep.subr.bf16.mxu0 %v4949_v53  ;;  %v5025_v53 = vld [vmem:[%s6631_s1 + $0x608] ss:$12 sps:$4 sm:$0xff]  }
  0xc3   : > { %4352 = vmatpush3.bf16.msra.mxu1 %v4951_v56  ;;  %v5030_v56 = vld [vmem:[%s6631_s1 + $0x620] ss:$12 sps:$4 sm:$0xff]  }
  0xc4   : > { %2962 = vmatpush1.bf16.msra.mxu0 %v4947_v55  ;;  %4353 = vmatprep.subr.bf16.mxu1 %v4958_v29  ;;  %v5026_v55 = vld [vmem:[%s6631_s1 + $0x738] ss:$12 sps:$4 sm:$0xff]  }
  0xc5   : > { %3004 = vmatprep.subr.bf16.mxu0 %v4957_v58  ;;  %v5035_v58 = vld [vmem:[%s6631_s1 + $0x754] ss:$12 sps:$4 sm:$0xff]   ;;  %v5036_v29 = vld [vmem:[%s6631_s1 + $0x6f8] ss:$12 sps:$4 sm:$0xff]  }
  0xc6   : > { %3337 = vmatmul.mubr.bf16.gmra.mrb[56].mxu1 %v5535_v40  ;;  %v5948_v40 = vld [vmem:[%s5346_s12 + $0x8c] ss:$56 sps:$4 sm:$0xff]  }
  0xc7   : > { %2964 = vmatmul.mubr.bf16.vlgmr.msra.gmra.mrb[0].mxu0 %v5918_v59  ;;  %4354 = vmatpush3.bf16.msra.mxu1 %v4959_v63  ;;  %v5041_v63 = vld [vmem:[%s6631_s1 + $0x76c] ss:$12 sps:$4 sm:$0xff]  }
  0xc8   : > { %3005 = vmatpush1.bf16.msra.mxu0 %v4955_v60  ;;  %4355 = vmatprep.subr.bf16.mxu1 %v4963_v36  ;;  %v5038_v60 = vld [vmem:[%s6631_s1 + $0x638] ss:$12 sps:$4 sm:$0xff]   ;;  %v5039_v36 = vld [vmem:[%s6631_s1 + $0x768] ss:$12 sps:$4 sm:$0xff]  }
  0xc9   : > { %3006 = vmatprep.subr.bf16.mxu0 %v4962_v0  ;;  %3344 = vmatprep.mubr.bf16.mxu1 %v5562_v50  ;;  %v4973_v50 = vld [vmem:[%s6631_s1 + $0x470] ss:$12 sps:$4 sm:$0xff]  }
  0xca   : > { %2973 = vmatprep.mubr.bf16.mxu0 %v5948_v40  ;;  %v5042_v0 = vld [vmem:[%s6631_s1 + $0x710] ss:$12 sps:$4 sm:$0xff]  }
  0xcb   : > { %4356 = vmatpush3.bf16.msra.mxu1 %v4964_v49  ;;  %v5049_v49 = vld [vmem:[%s6631_s1 + $0x784] ss:$12 sps:$4 sm:$0xff]  }
  0xcc   : > { %3007 = vmatpush1.bf16.msra.mxu0 %v4960_v1  ;;  %4357 = vmatprep.subr.bf16.mxu1 %v4968_v6  ;;  %v5043_v1 = vld [vmem:[%s6631_s1 + $0x650] ss:$12 sps:$4 sm:$0xff]   ;;  %v5044_v6 = vld [vmem:[%s5346_s12 + $0x20] ss:$56 sps:$4 sm:$0xff]  }
  0xcd   : > { %3008 = vmatprep.subr.bf16.mxu0 %v4967_v2  ;;  %v5050_v2 = vld [vmem:[%s6631_s1 + $0x728] ss:$12 sps:$4 sm:$0xff]  }
  0xce   : > { %3345 = vmatmul.mubr.bf16.gmra.mrb[60].mxu1 %v5576_v54  ;;  %v5982_v54 = vld [vmem:[%s5346_s12 + $0xfc] ss:$56 sps:$4 sm:$0xff]  }
  0xcf   : > { %2974 = vmatmul.mubr.bf16.gmra.mrb[4].mxu0 %v5960_v11  ;;  %4358 = vmatpush3.bf16.msra.mxu1 %v4969_v8  ;;  %v5054_v8 = vld [vmem:[%s6631_s1 + $0x79c] ss:$12 sps:$4 sm:$0xff]  }
  0xd0   : > { %3009 = vmatpush1.bf16.msra.mxu0 %v4965_v7  ;;  %4359 = vmatprep.subr.bf16.mxu1 %v4973_v50  ;;  %v5051_v7 = vld [vmem:[%s6631_s1 + $0x668] ss:$12 sps:$4 sm:$0xff]   ;;  %v5056_v50 = vld [vmem:[%s6631_s1 + $0x680] ss:$12 sps:$4 sm:$0xff]  }
  0xd1   : > { %3010 = vmatprep.subr.bf16.mxu0 %v4972_v9  ;;  %3385 = vmatprep.mubr.bf16.mxu1 %v5598_v61  ;;  %v4983_v61 = vld [vmem:[%s6631_s1 + $0x560] ss:$12 sps:$4 sm:$0xff]  }
  0xd2   : > { %2983 = vmatprep.mubr.bf16.mxu0 %v5982_v54  ;;  %v5055_v9 = vld [vmem:[%s6631_s1 + $0x740] ss:$12 sps:$4 sm:$0xff]  }
  0xd3   : > { %4360 = vmatpush3.bf16.msra.mxu1 %v4974_v10  ;;  %v5077_v10 = vld [vmem:[%s5346_s12 + $0x94] ss:$56 sps:$4 sm:$0xff]  }
  0xd4   : > { %3011 = vmatpush1.bf16.msra.mxu0 %v4970_v12  ;;  %4385 = vmatprep.subr.bf16.mxu1 %v4978_v15  ;;  %v5059_v12 = vld [vmem:[%s6631_s1 + $0x7b4] ss:$12 sps:$4 sm:$0xff]   ;;  %v5057_v15 = vld [vmem:[%s6631_s1 + $0x7b0] ss:$12 sps:$4 sm:$0xff]  }
  0xd5   : > { %3012 = vmatprep.subr.bf16.mxu0 %v4977_v13  ;;  %v5060_v13 = vld [vmem:[%s6631_s1 + $0x758] ss:$12 sps:$4 sm:$0xff]  }
  0xd6   : > { %3386 = vmatmul.mubr.bf16.vlgmr.msra.gmra.mrb[64].mxu1 %v5677_v34  ;;  %v6016_v34 = vld [vmem:[%s5346_s12 + $0x16c] ss:$56 sps:$4 sm:$0xff]  }
  0xd7   : > { %2984 = vmatmul.mubr.bf16.gmra.mrb[8].mxu0 %v5994_v20  ;;  %4386 = vmatpush3.bf16.msra.mxu1 %v4979_v18  ;;  %v5065_v18 = vld [vmem:[%s6631_s1 + $0x770] ss:$12 sps:$4 sm:$0xff]  }
  0xd8   : > { %3013 = vmatpush1.bf16.msra.mxu0 %v4975_v16  ;;  %4387 = vmatprep.subr.bf16.mxu1 %v4983_v61  ;;  %v5064_v16 = vld [vmem:[%s6631_s1 + $0x7cc] ss:$12 sps:$4 sm:$0xff]   ;;  %v5066_v61 = vld [vmem:[%s6631_s1 + $0x6b0] ss:$12 sps:$4 sm:$0xff]  }
  0xd9   : > { %3014 = vmatprep.subr.bf16.mxu0 %v4982_v19  ;;  %3393 = vmatprep.mubr.bf16.mxu1 %v5724_v57  ;;  %v4993_v57 = vld [vmem:[%s6631_s1 + $0x590] ss:$12 sps:$4 sm:$0xff]  }
  0xda   : > { %2993 = vmatprep.mubr.bf16.mxu0 %v6016_v34  ;;  %v5082_v19 = vld [vmem:[%s5346_s12 + $0x90] ss:$56 sps:$4 sm:$0xff]  }
  0xdb   : > { %4388 = vmatpush3.bf16.msra.mxu1 %v4984_v21  ;;  %v5090_v21 = vld [vmem:[%s5346_s12 + $0x104] ss:$56 sps:$4 sm:$0xff]  }
  0xdc   : > { %3015 = vmatpush1.bf16.msra.mxu0 %v4980_v22  ;;  %4389 = vmatprep.subr.bf16.mxu1 %v4988_v25  ;;  %v5069_v22 = vld [vmem:[%s6631_s1 + $0x7e4] ss:$12 sps:$4 sm:$0xff]   ;;  %v5067_v25 = vld [vmem:[%s6631_s1 + $0x7e0] ss:$12 sps:$4 sm:$0xff]  }
  0xdd   : > { %3016 = vmatprep.subr.bf16.mxu0 %v4987_v23  ;;  %v5070_v23 = vld [vmem:[%s6631_s1 + $0x848] ss:$12 sps:$4 sm:$0xff]  }
  0xde   : > { %3394 = vmatmul.mubr.bf16.gmra.mrb[68].mxu1 %v5738_v62  ;;  %v6050_v62 = vld [vmem:[%s5346_s12 + $0x24] ss:$56 sps:$4 sm:$0xff]  }
  0xdf   : > { %2994 = vmatmul.mubr.bf16.gmra.mrb[12].mxu0 %v6028_v31  ;;  %4390 = vmatpush3.bf16.msra.mxu1 %v4989_v30  ;;  %v5075_v30 = vld [vmem:[%s6631_s1 + $0x860] ss:$12 sps:$4 sm:$0xff]  }
  0xe0   : > { %3017 = vmatpush1.bf16.msra.mxu0 %v4985_v27  ;;  %4391 = vmatprep.subr.bf16.mxu1 %v4993_v57  ;;  %v5074_v27 = vld [vmem:[%s6631_s1 + $0x7fc] ss:$12 sps:$4 sm:$0xff]   ;;  %v5076_v57 = vld [vmem:[%s6631_s1 + $0x7a0] ss:$12 sps:$4 sm:$0xff]  }
  0xe1   : > { %3018 = vmatprep.subr.bf16.mxu0 %v4992_v28  ;;  %3401 = vmatprep.mubr.bf16.mxu1 %v5758_v3  ;;  %v5003_v3 = vld [vmem:[%s6631_s1 + $0x5c0] ss:$12 sps:$4 sm:$0xff]  }
  0xe2   : > { %3036 = vmatprep.mubr.bf16.mxu0 %v6050_v62  ;;  %v5095_v28 = vld [vmem:[%s5346_s12 + $0x100] ss:$56 sps:$4 sm:$0xff]  }
  0xe3   : > { %4392 = vmatpush3.bf16.msra.mxu1 %v4994_v33  ;;  %v5081_v33 = vld [vmem:[%s6631_s1 + $0x814] ss:$12 sps:$4 sm:$0xff]  }
  0xe4   : > { %3019 = vmatpush1.bf16.msra.mxu0 %v4990_v32  ;;  %4393 = vmatprep.subr.bf16.mxu1 %v4998_v37  ;;  %v5103_v32 = vld [vmem:[%s5346_s12 + $0x174] ss:$56 sps:$4 sm:$0xff]  }
  0xe5   : > { %3020 = vmatprep.subr.bf16.mxu0 %v4997_v35  ;;  %v5083_v35 = vld [vmem:[%s6631_s1 + $0x878] ss:$12 sps:$4 sm:$0xff]  }
  0xe6   : > { %3402 = vmatmul.mubr.bf16.gmra.mrb[72].mxu1 %v5772_v4  ;;  %v5007_v4 = vld [vmem:[%s6631_s1 + $0x6f0] ss:$12 sps:$4 sm:$0xff]  }
  0xe7   : > { %4394 = vmatpush3.bf16.msra.mxu1 %v4999_v39  ;;  %3409 = vmatprep.mubr.bf16.mxu1 %v5792_v14  ;;  %v5016_v14 = vld [vmem:[%s6631_s1 + $0x5f0] ss:$12 sps:$4 sm:$0xff]  }
  0xe8   : > { %3021 = vmatpush1.bf16.msra.mxu0 %v4995_v38  ;;  %4395 = vmatprep.subr.bf16.mxu1 %v5003_v3  ;;  %v5084_v38 = vld [vmem:[%s6631_s1 + $0x7b8] ss:$12 sps:$4 sm:$0xff]   ;;  %v5088_v3 = vld [vmem:[%s6631_s1 + $0x890] ss:$12 sps:$4 sm:$0xff]  }
  0xe9   : > { %3022 = vmatprep.subr.bf16.mxu0 %v5002_v41  ;;  %v5087_v41 = vld [vmem:[%s6631_s1 + $0x82c] ss:$12 sps:$4 sm:$0xff]  }
  0xeb   : > { %4396 = vmatpush3.bf16.msra.mxu1 %v5004_v43 }
  0xec   : > { %3023 = vmatpush1.bf16.msra.mxu0 %v5000_v42  ;;  %4397 = vmatprep.subr.bf16.mxu1 %v5010_v45  ;;  %v5085_v45 = vld [vmem:[%s6631_s1 + $0x828] ss:$12 sps:$4 sm:$0xff]  }
  0xed   : > { %3024 = vmatprep.subr.bf16.mxu0 %v5009_v44  ;;  %v5108_v44 = vld [vmem:[%s5346_s12 + $0x170] ss:$56 sps:$4 sm:$0xff]  }
  0xee   : > { %3410 = vmatmul.mubr.bf16.gmra.mrb[76].mxu1 %v5806_v17  ;;  %v5020_v17 = vld [vmem:[%s6631_s1 + $0x720] ss:$12 sps:$4 sm:$0xff]  }
  0xef   : > { %4398 = vmatpush3.bf16.msra.mxu1 %v5012_v46  ;;  %3450 = vmatprep.mubr.bf16.mxu1 %v5829_v26  ;;  %v5029_v26 = vld [vmem:[%s6631_s1 + $0x6e0] ss:$12 sps:$4 sm:$0xff]   ;;  %v5094_v46 = vld [vmem:[%s6631_s1 + $0x844] ss:$12 sps:$4 sm:$0xff]  }
  0xf0   : > { %3025 = vmatpush1.bf16.msra.mxu0 %v5007_v4  ;;  %4399 = vmatprep.subr.bf16.mxu1 %v5016_v14  ;;  %v5089_v4 = vld [vmem:[%s6631_s1 + $0x7d0] ss:$12 sps:$4 sm:$0xff]   ;;  %v5096_v14 = vld [vmem:[%s6631_s1 + $0x8a8] ss:$12 sps:$4 sm:$0xff]  }
  0xf1   : > { %3026 = vmatprep.subr.bf16.mxu0 %v5015_v47  ;;  %v5118_v47 = vld [vmem:[%s5346_s12 + $0x2c] ss:$56 sps:$4 sm:$0xff]  }
  0xf3   : > { %4400 = vmatpush3.bf16.msra.mxu1 %v5017_v5  ;;  %v5097_v5 = vld [vmem:[%s6631_s1 + $0x7e8] ss:$12 sps:$4 sm:$0xff]  }
  0xf4   : > { %3027 = vmatpush1.bf16.msra.mxu0 %v5013_v48  ;;  %4425 = vmatprep.subr.bf16.mxu1 %v5023_v52  ;;  %v5092_v48 = vld [vmem:[%s6631_s1 + $0x840] ss:$12 sps:$4 sm:$0xff]   ;;  %v5100_v52 = vld [vmem:[%s6631_s1 + $0x85c] ss:$12 sps:$4 sm:$0xff]  }
  0xf5   : > { %3028 = vmatprep.subr.bf16.mxu0 %v5022_v51 }
  0xf6   : > { %3451 = vmatmul.mubr.bf16.vlgmr.msra.gmra.mrb[80].mxu1 %v5918_v59  ;;  %v5033_v59 = vld [vmem:[%s6631_s1 + $0x750] ss:$12 sps:$4 sm:$0xff]  }
  0xf7   : > { %4426 = vmatpush3.bf16.msra.mxu1 %v5025_v53  ;;  %3458 = vmatprep.mubr.bf16.mxu1 %v5948_v40  ;;  %v5047_v40 = vld [vmem:[%s6631_s1 + $0x780] ss:$12 sps:$4 sm:$0xff]  }
  0xf8   : > { %3029 = vmatpush1.bf16.msra.mxu0 %v5020_v17  ;;  %4427 = vmatprep.subr.bf16.mxu1 %v5029_v26 }
  0xf9   : > { %3030 = vmatprep.subr.bf16.mxu0 %v5028_v24  ;;  %v5101_v24 = vld [vmem:[%s6631_s1 + $0x8c0] ss:$12 sps:$4 sm:$0xff]  }
  0xfb   : > { %4428 = vmatpush3.bf16.msra.mxu1 %v5030_v56  ;;  %v5102_v56 = vld [vmem:[%s6631_s1 + $0x800] ss:$12 sps:$4 sm:$0xff]  }
  0xfc   : > { %3031 = vmatpush1.bf16.msra.mxu0 %v5026_v55  ;;  %4429 = vmatprep.subr.bf16.mxu1 %v5036_v29  ;;  %v5098_v55 = vld [vmem:[%s6631_s1 + $0x858] ss:$12 sps:$4 sm:$0xff]  }
  0xfd   : > { %3032 = vmatprep.subr.bf16.mxu0 %v5035_v58  ;;  %v5107_v58 = vld [vmem:[%s6631_s1 + $0x874] ss:$12 sps:$4 sm:$0xff]   ;;  %v5109_v29 = vld [vmem:[%s6631_s1 + $0x8d8] ss:$12 sps:$4 sm:$0xff]  }
  0xfe   : > { %3459 = vmatmul.mubr.bf16.gmra.mrb[84].mxu1 %v5960_v11  ;;  %v5052_v11 = vld [vmem:[%s6631_s1 + $0x798] ss:$12 sps:$4 sm:$0xff]  }
  0xff   : > { %4430 = vmatpush3.bf16.msra.mxu1 %v5038_v60  ;;  %3466 = vmatprep.mubr.bf16.mxu1 %v5982_v54  ;;  %v5061_v54 = vld [vmem:[%s6631_s1 + $0x698] ss:$12 sps:$4 sm:$0xff]  }
 0x100   : > { %3033 = vmatpush1.bf16.msra.mxu0 %v5033_v59  ;;  %4431 = vmatprep.subr.bf16.mxu1 %v5042_v0  ;;  %v5110_v0 = vld [vmem:[%s6631_s1 + $0x818] ss:$12 sps:$4 sm:$0xff]  }
 0x101   : > { %3034 = vmatprep.subr.bf16.mxu0 %v5041_v63  ;;  %v5105_v63 = vld [vmem:[%s6631_s1 + $0x870] ss:$12 sps:$4 sm:$0xff]  }
 0x103   : > { %4432 = vmatpush3.bf16.msra.mxu1 %v5043_v1  ;;  %v5113_v1 = vld [vmem:[%s6631_s1 + $0x88c] ss:$12 sps:$4 sm:$0xff]  }
 0x104   : > { %3035 = vmatpush1.bf16.msra.mxu0 %v5039_v36  ;;  %4433 = vmatprep.subr.bf16.mxu1 %v5050_v2 }
 0x105   : > { %3077 = vmatprep.subr.bf16.mxu0 %v5049_v49  ;;  %v5114_v49 = vld [vmem:[%s6631_s1 + $0x8f0] ss:$12 sps:$4 sm:$0xff]  }
 0x106   : > { %3467 = vmatmul.mubr.bf16.gmra.mrb[88].mxu1 %v5994_v20  ;;  %v5062_v20 = vld [vmem:[%s6631_s1 + $0x7c8] ss:$12 sps:$4 sm:$0xff]  }
 0x107   : > { %3037 = vmatmul.mubr.bf16.vlgmr.msra.gmra.mrb[0].mxu0 %v5044_v6  ;;  %4434 = vmatpush3.bf16.msra.mxu1 %v5051_v7  ;;  %v5121_v7 = vld [vmem:[%s6631_s1 + $0x8a4] ss:$12 sps:$4 sm:$0xff]  }
 0x108   : > { %3078 = vmatpush1.bf16.msra.mxu0 %v5047_v40  ;;  %4435 = vmatprep.subr.bf16.mxu1 %v5055_v9  ;;  %v5115_v40 = vld [vmem:[%s6631_s1 + $0x830] ss:$12 sps:$4 sm:$0xff]   ;;  %v5116_v9 = vld [vmem:[%s5346_s12 + $0x28] ss:$56 sps:$4 sm:$0xff]  }
 0x109   : > { %3079 = vmatprep.subr.bf16.mxu0 %v5054_v8  ;;  %3474 = vmatprep.mubr.bf16.mxu1 %v6016_v34  ;;  %v5071_v34 = vld [vmem:[%s6631_s1 + $0x788] ss:$12 sps:$4 sm:$0xff]  }
 0x10a   : > { %3046 = vmatprep.mubr.bf16.mxu0 %v5077_v10 }
 0x10b   : > { %4436 = vmatpush3.bf16.msra.mxu1 %v5056_v50  ;;  %v5119_v50 = vld [vmem:[%s6631_s1 + $0x8a0] ss:$12 sps:$4 sm:$0xff]  }
 0x10c   : > { %3080 = vmatpush1.bf16.msra.mxu0 %v5052_v11  ;;  %4437 = vmatprep.subr.bf16.mxu1 %v5060_v13  ;;  %v5169_v13 = vmov 0  }
 0x10d   : > { %3081 = vmatprep.subr.bf16.mxu0 %v5059_v12  ;;  %v5122_v12 = vld [vmem:[%s6631_s1 + $0x908] ss:$12 sps:$4 sm:$0xff]  }
 0x10e   : > { %3475 = vmatmul.mubr.bf16.gmra.mrb[92].mxu1 %v6028_v31  ;;  %v5072_v31 = vld [vmem:[%s6631_s1 + $0x7f8] ss:$12 sps:$4 sm:$0xff]  }
 0x10f   : > { %3047 = vmatmul.mubr.bf16.gmra.mrb[4].mxu0 %v5082_v19  ;;  %4438 = vmatpush3.bf16.msra.mxu1 %v5061_v54 }
 0x110   : > { %3082 = vmatpush1.bf16.msra.mxu0 %v5057_v15  ;;  %4439 = vmatprep.subr.bf16.mxu1 %v5065_v18  ;;  %v5125_v15 = vld [vmem:[%s6631_s1 + $0x8bc] ss:$12 sps:$4 sm:$0xff]   ;;  %v5123_v18 = vld [vmem:[%s6631_s1 + $0x8b8] ss:$12 sps:$4 sm:$0xff]  }
 0x111   : > { %3083 = vmatprep.subr.bf16.mxu0 %v5064_v16  ;;  %3515 = vmatprep.mubr.bf16.mxu1 %v6050_v62  ;;  %v5079_v62 = vld [vmem:[%s6631_s1 + $0x810] ss:$12 sps:$4 sm:$0xff]  }
 0x112   : > { %3056 = vmatprep.mubr.bf16.mxu0 %v5090_v21  ;;  %v5127_v16 = vld [vmem:[%s5346_s12 + $0x9c] ss:$56 sps:$4 sm:$0xff]  }
 0x113   : > { %4440 = vmatpush3.bf16.msra.mxu1 %v5066_v61  ;;  %v5132_v61 = vld [vmem:[%s5346_s12 + $0x98] ss:$56 sps:$4 sm:$0xff]  }
 0x114   : > { %3084 = vmatpush1.bf16.msra.mxu0 %v5062_v20  ;;  %4465 = vmatprep.subr.bf16.mxu1 %v5070_v23  ;;  %v5131_v20 = vld [vmem:[%s6631_s1 + $0x8d4] ss:$12 sps:$4 sm:$0xff]   ;;  %v5136_v23 = vld [vmem:[%s6631_s1 + $0x8ec] ss:$12 sps:$4 sm:$0xff]  }
 0x115   : > { %3085 = vmatprep.subr.bf16.mxu0 %v5069_v22  ;;  %v5129_v22 = vld [vmem:[%s6631_s1 + $0x8d0] ss:$12 sps:$4 sm:$0xff]  }
 0x116   : > { %3516 = vmatmul.mubr.bf16.vlgmr.msra.gmra.mrb[96].mxu1 %v5044_v6  ;;  %v5111_v6 = vld [vmem:[%s6631_s1 + $0x888] ss:$12 sps:$4 sm:$0xff]  }
 0x117   : > { %3057 = vmatmul.mubr.bf16.gmra.mrb[8].mxu0 %v5095_v28  ;;  %4466 = vmatpush3.bf16.msra.mxu1 %v5071_v34  ;;  %v5134_v34 = vld [vmem:[%s6631_s1 + $0x8e8] ss:$12 sps:$4 sm:$0xff]  }
 0x118   : > { %3086 = vmatpush1.bf16.msra.mxu0 %v5067_v25  ;;  %4467 = vmatprep.subr.bf16.mxu1 %v5075_v30  ;;  %v5138_v25 = vld [vmem:[%s5346_s12 + $0x10c] ss:$56 sps:$4 sm:$0xff]   ;;  %v5140_v30 = vld [vmem:[%s5346_s12 + $0x108] ss:$56 sps:$4 sm:$0xff]  }
 0x119   : > { %3087 = vmatprep.subr.bf16.mxu0 %v5074_v27  ;;  %v6239_v37 = vpop.f32.mrb[0].mxu1  ;;  %3523 = vmatprep.mubr.bf16.mxu1 %v5077_v10  ;;  %v5137_v27 = vld [vmem:[%s6631_s1 + $0x950] ss:$12 sps:$4 sm:$0xff]  }
 0x11a   : > { %3066 = vmatprep.mubr.bf16.mxu0 %v5103_v32  ;;  %v6247_v39 = vpop.f32.mrb[1].mxu1 }
 0x11b   : > { %v6255_v42 = vpop.f32.mrb[2].mxu1  ;;  %4468 = vmatpush3.bf16.msra.mxu1 %v5076_v57  ;;  %v5142_v57 = vld [vmem:[%s6631_s1 + $0x980] ss:$12 sps:$4 sm:$0xff]  }
 0x11c   : > { %3088 = vmatpush1.bf16.msra.mxu0 %v5072_v31  ;;  %v6257_v43 = vpop.f32.mrb[3].mxu1  ;;  %4469 = vmatprep.subr.bf16.mxu1 %v5083_v35  ;;  %v5143_v31 = vld [vmem:[%s5346_s12 + $0x17c] ss:$56 sps:$4 sm:$0xff]   ;;  %v5145_v35 = vld [vmem:[%s5346_s12 + $0x178] ss:$56 sps:$4 sm:$0xff]  }
 0x11d   : > { %3089 = vmatprep.subr.bf16.mxu0 %v5081_v33 }
 0x11e   : > { %3524 = vmatmul.mubr.bf16.gmra.mrb[100].mxu1 %v5082_v19  ;;  %v5126_v19 = vld [vmem:[%s6631_s1 + $0x920] ss:$12 sps:$4 sm:$0xff]  }
 0x11f   : > { %3067 = vmatmul.mubr.bf16.gmra.mrb[12].mxu0 %v5108_v44  ;;  %4470 = vmatpush3.bf16.msra.mxu1 %v5084_v38  ;;  %v5146_v38 = vld [vmem:[%s6631_s1 + $0x998] ss:$12 sps:$4 sm:$0xff]  }
 0x120   : > { %3090 = vmatpush1.bf16.msra.mxu0 %v5079_v62  ;;  %4471 = vmatprep.subr.bf16.mxu1 %v5088_v3  ;;  %v5147_v3 = vld [vmem:[%s6631_s1 + $0x9b0] ss:$12 sps:$4 sm:$0xff]  }
 0x121   : > { %3091 = vmatprep.subr.bf16.mxu0 %v5087_v41  ;;  %3531 = vmatprep.mubr.bf16.mxu1 %v5090_v21  ;;  %v6279_v51 = vpop.f32.mrb[4].mxu1  ;;  %v5133_v21 = vld [vmem:[%s6631_s1 + $0x938] ss:$12 sps:$4 sm:$0xff]  }
 0x122   : > { %3109 = vmatprep.mubr.bf16.mxu0 %v5118_v47  ;;  %v6284_v17 = vpop.f32.mrb[5].mxu1 }
 0x123   : > { %4472 = vmatpush3.bf16.msra.mxu1 %v5089_v4  ;;  %v6286_v53 = vpop.f32.mrb[6].mxu1 }
 0x124   : > { %3092 = vmatpush1.bf16.msra.mxu0 %v5085_v45  ;;  %4473 = vmatprep.subr.bf16.mxu1 %v5096_v14  ;;  %v6291_v26 = vpop.f32.mrb[7].mxu1  ;;  %v5153_v45 = vld [vmem:[%s5346_s12 + $0xa4] ss:$56 sps:$4 sm:$0xff]  }
 0x125   : > { %3093 = vmatprep.subr.bf16.mxu0 %v5094_v46 }
 0x126   : > { %3532 = vmatmul.mubr.bf16.gmra.mrb[104].mxu1 %v5095_v28  ;;  %v5141_v28 = vld [vmem:[%s6631_s1 + $0x968] ss:$12 sps:$4 sm:$0xff]  }
 0x127   : > { %4474 = vmatpush3.bf16.msra.mxu1 %v5097_v5  ;;  %3539 = vmatprep.mubr.bf16.mxu1 %v5103_v32 }
 0x128   : > { %3094 = vmatpush1.bf16.msra.mxu0 %v5092_v48  ;;  %4475 = vmatprep.subr.bf16.mxu1 %v5101_v24  ;;  %v5149_v48 = vld [vmem:[%s6631_s1 + $0x9e0] ss:$12 sps:$4 sm:$0xff]  }
 0x129   : > { %3095 = vmatprep.subr.bf16.mxu0 %v5100_v52  ;;  %v6305_v59 = vpop.f32.mrb[8].mxu1 }
 0x12a   : > { %v6307_v60 = vpop.f32.mrb[9].mxu1 }
 0x12b   : > { %4476 = vmatpush3.bf16.msra.mxu1 %v5102_v56  ;;  %v6315_v36 = vpop.f32.mrb[10].mxu1 }
 0x12c   : > { %3096 = vmatpush1.bf16.msra.mxu0 %v5098_v55  ;;  %4477 = vmatprep.subr.bf16.mxu1 %v5109_v29  ;;  %v6323_v2 = vpop.f32.mrb[11].mxu1  ;;  %v5150_v55 = vld [vmem:[%s6631_s1 + $0x9f8] ss:$12 sps:$4 sm:$0xff]  }
 0x12d   : > { %3097 = vmatprep.subr.bf16.mxu0 %v5107_v58  ;;  %v5151_v58 = vld [vmem:[%s6631_s1 + $0xa10] ss:$12 sps:$4 sm:$0xff]  }
 0x12e   : > { %3540 = vmatmul.mubr.bf16.gmra.mrb[108].mxu1 %v5108_v44 }
 0x12f   : > { %4478 = vmatpush3.bf16.msra.mxu1 %v5110_v0  ;;  %3580 = vmatprep.mubr.bf16.mxu1 %v5118_v47  ;;  %v5148_v47 = vld [vmem:[%s6631_s1 + $0x9c8] ss:$12 sps:$4 sm:$0xff]  }
 0x130   : > { %3098 = vmatpush1.bf16.msra.mxu0 %v5105_v63  ;;  %4479 = vmatprep.subr.bf16.mxu1 %v5114_v49  ;;  %v5154_v63 = vld [vmem:[%s5346_s12 + $0x34] ss:$56 sps:$4 sm:$0xff]  }
 0x131   : > { %3099 = vmatprep.subr.bf16.mxu0 %v5113_v1  ;;  %v6334_v8 = vpop.f32.mrb[12].mxu1 }
 0x132   : > { %v6337_v11 = vpop.f32.mrb[13].mxu1 }
 0x133   : > { %4480 = vmatpush3.bf16.msra.mxu1 %v5115_v40  ;;  %v6345_v10 = vpop.f32.mrb[14].mxu1  ;;  %v5156_v40 = vld [vmem:[%s5346_s12 + $0x114] ss:$56 sps:$4 sm:$0xff]  }
 0x134   : > { %3100 = vmatpush1.bf16.msra.mxu0 %v5111_v6  ;;  %4505 = vmatprep.subr.bf16.mxu1 %v5169_v13  ;;  %v6351_v54 = vpop.f32.mrb[15].mxu1  ;;  %v5155_v6 = vld [vmem:[%s5346_s12 + $0xa0] ss:$56 sps:$4 sm:$0xff]  }
 0x135   : > { %3101 = vmatprep.subr.bf16.mxu0 %v5121_v7 }
 0x136   : > { %3581 = vmatmul.mubr.bf16.vlgmr.msra.gmra.mrb[112].mxu1 %v5116_v9 }
 0x137   : > { %4517 = vmatpush1.bf16.msra.mxu1 %v5122_v12  ;;  %3588 = vmatprep.mubr.bf16.mxu1 %v5127_v16 }
 0x138   : > { %3102 = vmatpush1.bf16.msra.mxu0 %v5119_v50  ;;  %4506 = vmatprep.subr.bf16.mxu1 %v5169_v13 }
 0x139   : > { %3103 = vmatprep.subr.bf16.mxu0 %v5125_v15 }
 0x13b   : > { %4518 = vmatpush1.bf16.msra.mxu1 %v5126_v19 }
 0x13c   : > { %3104 = vmatpush1.bf16.msra.mxu0 %v5123_v18  ;;  %4507 = vmatprep.subr.bf16.mxu1 %v5169_v13  ;;  %v5157_v18 = vld [vmem:[%s5346_s12 + $0x110] ss:$56 sps:$4 sm:$0xff]  }
 0x13d   : > { %3105 = vmatprep.subr.bf16.mxu0 %v5131_v20 }
 0x13e   : > { %3589 = vmatmul.mubr.bf16.gmra.mrb[116].mxu1 %v5132_v61 }
 0x13f   : > { %4519 = vmatpush1.bf16.msra.mxu1 %v5133_v21  ;;  %3596 = vmatprep.mubr.bf16.mxu1 %v5138_v25 }
 0x140   : > { %3106 = vmatpush1.bf16.msra.mxu0 %v5129_v22  ;;  %4508 = vmatprep.subr.bf16.mxu1 %v5169_v13 }
 0x141   : > { %3107 = vmatprep.subr.bf16.mxu0 %v5136_v23 }
 0x143   : > { %4520 = vmatpush1.bf16.msra.mxu1 %v5137_v27 }
 0x144   : > { %3108 = vmatpush1.bf16.msra.mxu0 %v5134_v34  ;;  %4509 = vmatprep.subr.bf16.mxu1 %v5169_v13  ;;  %v5159_v34 = vld [vmem:[%s5346_s12 + $0x30] ss:$56 sps:$4 sm:$0xff]  }
 0x145   : > { %3613 = vmatprep.subr.bf16.mxu0 %v5169_v13 }
 0x146   : > { %3597 = vmatmul.mubr.bf16.gmra.mrb[120].mxu1 %v5140_v30 }
 0x147   : > { %3110 = vmatmul.mubr.bf16.vlgmr.msra.gmra.mrb[0].mxu0 %v5116_v9  ;;  %4521 = vmatpush1.bf16.msra.mxu1 %v5141_v28 }
 0x148   : > { %3614 = vmatpush1.bf16.msra.mxu0 %v5122_v12  ;;  %4510 = vmatprep.subr.bf16.mxu1 %v5169_v13 }
 0x149   : > { %3615 = vmatprep.subr.bf16.mxu0 %v5169_v13  ;;  %v6395_v32 = vpop.f32.mrb[16].mxu1  ;;  %3119 = vmatprep.mubr.bf16.mxu0 %v5127_v16 }
 0x14a   : > { %3604 = vmatprep.mubr.bf16.mxu1 %v5143_v31  ;;  %v6397_v33 = vpop.f32.mrb[17].mxu1 }
 0x14b   : > { %v6400_v62 = vpop.f32.mrb[18].mxu1  ;;  %4522 = vmatpush1.bf16.msra.mxu1 %v5142_v57 }
 0x14c   : > { %3616 = vmatpush1.bf16.msra.mxu0 %v5126_v19  ;;  %v6405_v41 = vpop.f32.mrb[19].mxu1  ;;  %4511 = vmatprep.subr.bf16.mxu1 %v5169_v13  ;;  %v5158_v19 = vld [vmem:[%s5346_s12 + $0x184] ss:$56 sps:$4 sm:$0xff]  }
 0x14d   : > { %3617 = vmatprep.subr.bf16.mxu0 %v5169_v13 }
 0x14e   : > { %3605 = vmatmul.mubr.bf16.gmra.mrb[124].mxu1 %v5145_v35 }
 0x14f   : > { %3120 = vmatmul.mubr.bf16.gmra.mrb[4].mxu0 %v5132_v61  ;;  %4523 = vmatpush1.bf16.msra.mxu1 %v5146_v38 }
 0x150   : > { %3618 = vmatpush1.bf16.msra.mxu0 %v5133_v21  ;;  %4512 = vmatprep.subr.bf16.mxu1 %v5169_v13 }
 0x151   : > { %3619 = vmatprep.subr.bf16.mxu0 %v5169_v13  ;;  %v6414_v44 = vpop.f32.mrb[20].mxu1  ;;  %3129 = vmatprep.mubr.bf16.mxu0 %v5138_v25 }
 0x152   : > { %4260 = vmatprep.mubr.msk.bf16.mxu1 %vm2699_vm0, %v5153_v45  ;;  %v6418_v4 = vpop.f32.mrb[21].mxu1 }
 0x153   : > { %v6420_v46 = vpop.f32.mrb[22].mxu1  ;;  %4524 = vmatpush1.bf16.msra.mxu1 %v5147_v3 }
 0x154   : > { %3620 = vmatpush1.bf16.msra.mxu0 %v5137_v27  ;;  %v6425_v14 = vpop.f32.mrb[23].mxu1  ;;  %4513 = vmatprep.subr.bf16.mxu1 %v5169_v13  ;;  %v5160_v27 = vld [vmem:[%s5346_s12 + $0x180] ss:$56 sps:$4 sm:$0xff]  }
 0x155   : > { %3621 = vmatprep.subr.bf16.mxu0 %v5169_v13 }
 0x157   : > { %3130 = vmatmul.mubr.bf16.gmra.mrb[8].mxu0 %v5140_v30  ;;  %4525 = vmatpush1.bf16.msra.mxu1 %v5148_v47 }
 0x158   : > { %3622 = vmatpush1.bf16.msra.mxu0 %v5141_v28  ;;  %4514 = vmatprep.subr.bf16.mxu1 %v5169_v13 }
 0x159   : > { %3623 = vmatprep.subr.bf16.mxu0 %v5169_v13  ;;  %v6434_v5 = vpop.f32.mrb[24].mxu1  ;;  %3139 = vmatprep.mubr.bf16.mxu0 %v5143_v31 }
 0x15a   : > { %v6436_v52 = vpop.f32.mrb[25].mxu1 }
 0x15b   : > { %v6438_v24 = vpop.f32.mrb[26].mxu1  ;;  %4526 = vmatpush1.bf16.msra.mxu1 %v5149_v48 }
 0x15c   : > { %3624 = vmatpush1.bf16.msra.mxu0 %v5142_v57  ;;  %v6443_v56 = vpop.f32.mrb[27].mxu1  ;;  %4515 = vmatprep.subr.bf16.mxu1 %v5169_v13 }
 0x15d   : > { %3625 = vmatprep.subr.bf16.mxu0 %v5169_v13 }
 0x15f   : > { %3140 = vmatmul.mubr.bf16.gmra.mrb[12].mxu0 %v5145_v35  ;;  %4527 = vmatpush1.bf16.msra.mxu1 %v5150_v55 }
 0x160   : > { %3626 = vmatpush1.bf16.msra.mxu0 %v5146_v38  ;;  %4516 = vmatprep.subr.bf16.mxu1 %v5169_v13 }
 0x161   : > { %3627 = vmatprep.subr.bf16.mxu0 %v5169_v13  ;;  %v6452_v29 = vpop.f32.mrb[28].mxu1  ;;  %4259 = vmatprep.mubr.msk.bf16.mxu0 %vm2699_vm0, %v5154_v63 }
 0x162   : > { %v6456_v0 = vpop.f32.mrb[29].mxu1 }
 0x163   : > { %v6458_v1 = vpop.f32.mrb[30].mxu1  ;;  %4528 = vmatpush1.bf16.msra.mxu1 %v5151_v58 }
 0x164   : > { %3628 = vmatpush1.bf16.msra.mxu0 %v5147_v3  ;;  %v6460_v49 = vpop.f32.mrb[31].mxu1 }
 0x165   : > { %3629 = vmatprep.subr.bf16.mxu0 %v5169_v13 }
 0x166   : > { %3654 = vmatmul.mubr.bf16.vlgmr.msra.gmra.mrb[128].mxu1 %v5155_v6 }
 0x167   : > { %4261 = vmatprep.mubr.msk.bf16.mxu1 %vm2699_vm0, %v5156_v40 }
 0x168   : > { %3630 = vmatpush1.bf16.msra.mxu0 %v5148_v47 }
 0x169   : > { %3631 = vmatprep.subr.bf16.mxu0 %v5169_v13  ;;  %v4281_v7 = vpop.f32.mrb[32].mxu1 }
 0x16a   : > { %v4282_v9 = vpop.f32.mrb[33].mxu1 }
 0x16b   : > { %v4283_v50 = vadd.f32 %v4282_v9, %v4281_v7  ;;  %v4284_v12 = vpop.f32.mrb[34].mxu1 }
 0x16c   : > { %3632 = vmatpush1.bf16.msra.mxu0 %v5149_v48  ;;  %v4285_v15 = vpop.f32.mrb[35].mxu1 }
 0x16d   : > { %3633 = vmatprep.subr.bf16.mxu0 %v5169_v13  ;;  %v4286_v16 = vadd.f32 %v4285_v15, %v4284_v12 }
 0x16e   : > { %3662 = vmatmul.mubr.bf16.gmra.mrb[132].mxu1 %v5157_v18 }
 0x16f   : > { %4262 = vmatprep.mubr.msk.bf16.mxu1 %vm2699_vm0, %v5158_v19 }
 0x170   : > { %3634 = vmatpush1.bf16.msra.mxu0 %v5150_v55 }
 0x171   : > { %3635 = vmatprep.subr.bf16.mxu0 %v5169_v13  ;;  %v4287_v20 = vpop.f32.mrb[36].mxu1 }
 0x172   : > { %v4288_v61 = vpop.f32.mrb[37].mxu1 }
 0x173   : > { %v4289_v22 = vadd.f32 %v4288_v61, %v4287_v20  ;;  %v4290_v21 = vpop.f32.mrb[38].mxu1 }
 0x174   : > { %3636 = vmatpush1.bf16.msra.mxu0 %v5151_v58  ;;  %v4291_v23 = vpop.f32.mrb[39].mxu1 }
 0x175   : > { %v4292_v25 = vadd.f32 %v4291_v23, %v4290_v21 }
 0x176   : > { %3670 = vmatmul.mubr.bf16.gmra.mrb[136].mxu1 %v5160_v27 }
 0x177   : > { %3646 = vmatmul.mubr.bf16.vlgmr.msra.gmra.mrb[16].mxu0 %v5159_v34 }
 0x179   : > { %v4293_v30 = vpop.f32.mrb[40].mxu1 }
 0x17a   : > { %v4294_v28 = vpop.f32.mrb[41].mxu1 }
 0x17b   : > { %v4295_v31 = vadd.f32 %v4294_v28, %v4293_v30  ;;  %v4296_v57 = vpop.f32.mrb[42].mxu1 }
 0x17c   : > { %v4297_v35 = vpop.f32.mrb[43].mxu1 }
 0x17d   : > { %v4298_v38 = vadd.f32 %v4297_v35, %v4296_v57 }
 0x181   : > { %v4299_v3 = vpop.f32.mrb[44].mxu1 }
 0x182   : > { %v4300_v45 = vpop.f32.mrb[45].mxu1 }
 0x183   : > { %v4301_v13 = vadd.f32 %v4300_v45, %v4299_v3  ;;  %v4302_v47 = vpop.f32.mrb[46].mxu1 }
 0x184   : > { %v4303_v48 = vpop.f32.mrb[47].mxu1 }
 0x185   : > { %v4304_v55 = vadd.f32 %v4303_v48, %v4302_v47 }
 0x189   : > { %v4321_v63 = vpop.f32.mrb[48].mxu1 }
 0x18a   : > { %v4322_v58 = vpop.f32.mrb[49].mxu1 }
 0x18b   : > { %v4323_v6 = vadd.f32 %v4322_v58, %v4321_v63  ;;  %v4324_v40 = vpop.f32.mrb[50].mxu1 }
 0x18c   : > { %v4325_v7 = vpop.f32.mrb[51].mxu1 }
 0x18d   : > { %v3323_v9 = vadd.f32 %v4323_v6, %v4283_v50  ;;  %v4326_v12 = vadd.f32 %v4325_v7, %v4324_v40 }
 0x18f   : > { %v3326_v15 = vadd.f32 %v4326_v12, %v4286_v16 }
 0x191   : > { %v4327_v18 = vpop.f32.mrb[52].mxu1 }
 0x192   : > { %v4328_v19 = vpop.f32.mrb[53].mxu1 }
 0x193   : > { %v4329_v20 = vadd.f32 %v4328_v19, %v4327_v18  ;;  %v4330_v61 = vpop.f32.mrb[54].mxu1 }
 0x194   : > { %v4331_v21 = vpop.f32.mrb[55].mxu1 }
 0x195   : > { %v3331_v23 = vadd.f32 %v4329_v20, %v4289_v22  ;;  %v4332_v34 = vadd.f32 %v4331_v21, %v4330_v61 }
 0x197   : > { %v3334_v27 = vadd.f32 %v4332_v34, %v4292_v25 }
 0x199   : > { %v4333_v30 = vpop.f32.mrb[56].mxu1 }
 0x19a   : > { %v4334_v28 = vpop.f32.mrb[57].mxu1 }
 0x19b   : > { %v4335_v57 = vadd.f32 %v4334_v28, %v4333_v30  ;;  %v4336_v35 = vpop.f32.mrb[58].mxu1 }
 0x19c   : > { %v4337_v3 = vpop.f32.mrb[59].mxu1 }
 0x19d   : > { %v3339_v45 = vadd.f32 %v4335_v57, %v4295_v31  ;;  %v4338_v47 = vadd.f32 %v4337_v3, %v4336_v35 }
 0x19f   : > { %v3342_v48 = vadd.f32 %v4338_v47, %v4298_v38 }
 0x1a1   : > { %v4339_v63 = vpop.f32.mrb[60].mxu1 }
 0x1a2   : > { %v4340_v50 = vpop.f32.mrb[61].mxu1 }
 0x1a3   : > { %v4341_v58 = vadd.f32 %v4340_v50, %v4339_v63  ;;  %v4342_v16 = vpop.f32.mrb[62].mxu1 }
 0x1a4   : > { %v4343_v6 = vpop.f32.mrb[63].mxu1 }
 0x1a5   : > { %v3347_v40 = vadd.f32 %v4341_v58, %v4301_v13  ;;  %v4344_v7 = vadd.f32 %v4343_v6, %v4342_v16 }
 0x1a7   : > { %v3350_v12 = vadd.f32 %v4344_v7, %v4304_v55 }
 0x1a9   : > { %v4361_v18 = vpop.f32.mrb[64].mxu1 }
 0x1aa   : > { %v4362_v22 = vpop.f32.mrb[65].mxu1 }
 0x1ab   : > { %v4363_v19 = vadd.f32 %v4362_v22, %v4361_v18  ;;  %v4364_v25 = vpop.f32.mrb[66].mxu1 }
 0x1ac   : > { %v4365_v20 = vpop.f32.mrb[67].mxu1 }
 0x1ad   : > { %v3388_v61 = vadd.f32 %v4363_v19, %v3323_v9  ;;  %v4366_v21 = vadd.f32 %v4365_v20, %v4364_v25 }
 0x1af   : > { %v3391_v34 = vadd.f32 %v4366_v21, %v3326_v15 }
 0x1b1   : > { %v4367_v30 = vpop.f32.mrb[68].mxu1 }
 0x1b2   : > { %v4368_v31 = vpop.f32.mrb[69].mxu1 }
 0x1b3   : > { %v4369_v28 = vadd.f32 %v4368_v31, %v4367_v30  ;;  %v4370_v38 = vpop.f32.mrb[70].mxu1 }
 0x1b4   : > { %v4371_v57 = vpop.f32.mrb[71].mxu1 }
 0x1b5   : > { %v3396_v35 = vadd.f32 %v4369_v28, %v3331_v23  ;;  %v4372_v3 = vadd.f32 %v4371_v57, %v4370_v38 }
 0x1b7   : > { %v3399_v47 = vadd.f32 %v4372_v3, %v3334_v27 }
 0x1b9   : > { %v4373_v63 = vpop.f32.mrb[72].mxu1 }
 0x1ba   : > { %v4374_v13 = vpop.f32.mrb[73].mxu1 }
 0x1bb   : > { %v4375_v50 = vadd.f32 %v4374_v13, %v4373_v63  ;;  %v4376_v55 = vpop.f32.mrb[74].mxu1 }
 0x1bc   : > { %v4377_v58 = vpop.f32.mrb[75].mxu1 }
 0x1bd   : > { %v3404_v16 = vadd.f32 %v4375_v50, %v3339_v45  ;;  %v4378_v6 = vadd.f32 %v4377_v58, %v4376_v55 }
 0x1bf   : > { %v3407_v7 = vadd.f32 %v4378_v6, %v3342_v48 }
 0x1c1   : > { %v4379_v18 = vpop.f32.mrb[76].mxu1 }
 0x1c2   : > { %v4380_v9 = vpop.f32.mrb[77].mxu1 }
 0x1c3   : > { %v4381_v22 = vadd.f32 %v4380_v9, %v4379_v18  ;;  %v4382_v15 = vpop.f32.mrb[78].mxu1 }
 0x1c4   : > { %v4383_v19 = vpop.f32.mrb[79].mxu1 }
 0x1c5   : > { %v3412_v25 = vadd.f32 %v4381_v22, %v3347_v40  ;;  %v4384_v20 = vadd.f32 %v4383_v19, %v4382_v15 }
 0x1c7   : > { %v3415_v21 = vadd.f32 %v4384_v20, %v3350_v12 }
 0x1c9   : > { %v4401_v30 = vpop.f32.mrb[80].mxu1 }
 0x1ca   : > { %v4402_v23 = vpop.f32.mrb[81].mxu1 }
 0x1cb   : > { %v4403_v31 = vadd.f32 %v4402_v23, %v4401_v30  ;;  %v4404_v27 = vpop.f32.mrb[82].mxu1 }
 0x1cc   : > { %v4405_v28 = vpop.f32.mrb[83].mxu1 }
 0x1cd   : > { %v3453_v38 = vadd.f32 %v4403_v31, %v3388_v61  ;;  %v4406_v57 = vadd.f32 %v4405_v28, %v4404_v27 }
 0x1cf   : > { %v3456_v3 = vadd.f32 %v4406_v57, %v3391_v34 }
 0x1d1   : > { %v4407_v63 = vpop.f32.mrb[84].mxu1 }
 0x1d2   : > { %v4408_v45 = vpop.f32.mrb[85].mxu1 }
 0x1d3   : > { %v4409_v13 = vadd.f32 %v4408_v45, %v4407_v63  ;;  %v4410_v48 = vpop.f32.mrb[86].mxu1 }
 0x1d4   : > { %v4411_v50 = vpop.f32.mrb[87].mxu1 }
 0x1d5   : > { %v3461_v55 = vadd.f32 %v4409_v13, %v3396_v35  ;;  %v4412_v58 = vadd.f32 %v4411_v50, %v4410_v48 }
 0x1d7   : > { %v3464_v6 = vadd.f32 %v4412_v58, %v3399_v47 }
 0x1d9   : > { %v4413_v18 = vpop.f32.mrb[88].mxu1 }
 0x1da   : > { %v4414_v40 = vpop.f32.mrb[89].mxu1 }
 0x1db   : > { %v4415_v9 = vadd.f32 %v4414_v40, %v4413_v18  ;;  %v4416_v12 = vpop.f32.mrb[90].mxu1 }
 0x1dc   : > { %v4417_v22 = vpop.f32.mrb[91].mxu1 }
 0x1dd   : > { %v3469_v15 = vadd.f32 %v4415_v9, %v3404_v16  ;;  %v4418_v19 = vadd.f32 %v4417_v22, %v4416_v12 }
 0x1df   : > { %v3472_v20 = vadd.f32 %v4418_v19, %v3407_v7 }
 0x1e1   : > { %v4419_v30 = vpop.f32.mrb[92].mxu1 }
 0x1e2   : > { %v4420_v61 = vpop.f32.mrb[93].mxu1 }
 0x1e3   : > { %v4421_v23 = vadd.f32 %v4420_v61, %v4419_v30  ;;  %v4422_v34 = vpop.f32.mrb[94].mxu1 }
 0x1e4   : > { %v4423_v31 = vpop.f32.mrb[95].mxu1 }
 0x1e5   : > { %v3477_v27 = vadd.f32 %v4421_v23, %v3412_v25  ;;  %v4424_v28 = vadd.f32 %v4423_v31, %v4422_v34 }
 0x1e7   : > { %v3480_v57 = vadd.f32 %v4424_v28, %v3415_v21 }
 0x1e9   : > { %v4441_v63 = vpop.f32.mrb[96].mxu1 }
 0x1ea   : > { %v4442_v35 = vpop.f32.mrb[97].mxu1 }
 0x1eb   : > { %v4443_v45 = vadd.f32 %v4442_v35, %v4441_v63  ;;  %v4444_v47 = vpop.f32.mrb[98].mxu1 }
 0x1ec   : > { %v4445_v13 = vpop.f32.mrb[99].mxu1 }
 0x1ed   : > { %v3518_v48 = vadd.f32 %v4443_v45, %v3453_v38  ;;  %v4446_v50 = vadd.f32 %v4445_v13, %v4444_v47 }
 0x1ef   : > { %v3521_v58 = vadd.f32 %v4446_v50, %v3456_v3 }
 0x1f1   : > { %v4447_v18 = vpop.f32.mrb[100].mxu1 }
 0x1f2   : > { %v4448_v16 = vpop.f32.mrb[101].mxu1 }
 0x1f3   : > { %v4449_v40 = vadd.f32 %v4448_v16, %v4447_v18  ;;  %v4450_v7 = vpop.f32.mrb[102].mxu1 }
 0x1f4   : > { %v4451_v9 = vpop.f32.mrb[103].mxu1 }
 0x1f5   : > { %v3526_v12 = vadd.f32 %v4449_v40, %v3461_v55  ;;  %v4452_v22 = vadd.f32 %v4451_v9, %v4450_v7 }
 0x1f7   : > { %v3529_v19 = vadd.f32 %v4452_v22, %v3464_v6 }
 0x1f9   : > { %v4453_v30 = vpop.f32.mrb[104].mxu1 }
 0x1fa   : > { %v4454_v25 = vpop.f32.mrb[105].mxu1 }
 0x1fb   : > { %v4455_v61 = vadd.f32 %v4454_v25, %v4453_v30  ;;  %v4456_v21 = vpop.f32.mrb[106].mxu1 }
 0x1fc   : > { %v4457_v23 = vpop.f32.mrb[107].mxu1 }
 0x1fd   : > { %v3534_v34 = vadd.f32 %v4455_v61, %v3469_v15  ;;  %v4458_v31 = vadd.f32 %v4457_v23, %v4456_v21  ;;  %v3680_v15 = vlaneseq }
 0x1ff   : > { %v3537_v28 = vadd.f32 %v4458_v31, %v3472_v20  ;;  %v6482_v25 = vshrl.u32 %v3680_v15, 7 }
 0x201   : > { %v4459_v63 = vpop.f32.mrb[108].mxu1  ;;  %v3682_v31 = vsub.s32 0, %v6482_v25 }
 0x202   : > { %v4460_v38 = vpop.f32.mrb[109].mxu1 }
 0x203   : > { %v4461_v35 = vadd.f32 %v4460_v38, %v4459_v63  ;;  %v4462_v3 = vpop.f32.mrb[110].mxu1 }
 0x204   : > { %v4463_v45 = vpop.f32.mrb[111].mxu1 }
 0x205   : > { %v6474_v47 = vadd.f32 %v4461_v35, %v3477_v27  ;;  %v4464_v13 = vadd.f32 %v4463_v45, %v4462_v3  ;;  %v6498_v35 = vld [vmem:[%s6633_s3] sm:$0x7] }
 0x206   : > { %v6510_v15 = vrot.slane %v6498_v35, %v3682_v31 }
 0x207   : > { %v6476_v50 = vadd.f32 %v4464_v13, %v3480_v57 }
 0x209   : > { %v4481_v55 = vpop.f32.mrb[112].mxu1 }
 0x20a   : > { %v4482_v6 = vpop.f32.mrb[113].mxu1 }
 0x20b   : > { %v4483_v18 = vadd.f32 %v4482_v6, %v4481_v55  ;;  %v4484_v16 = vpop.f32.mrb[114].mxu1 }
 0x20c   : > { %v4485_v40 = vpop.f32.mrb[115].mxu1 }
 0x20d   : > { %v4486_v7 = vadd.f32 %v4485_v40, %v4484_v16  ;;  %v6478_v9 = vadd.f32 %v4483_v18, %v3518_v48  ;;  %v6490_v48 = vld [vmem:[%s6632_s2] sm:$0x7] }
 0x20e   : > { %v6502_v45 = vrot.slane %v6490_v48, %v3682_v31 }
 0x20f   : > { %v6480_v20 = vadd.f32 %v4486_v7, %v3521_v58  ;;  %v3686_v58 = vsub.s32 1, %v6482_v25 }
 0x211   : > { %v4487_v22 = vpop.f32.mrb[116].mxu1 }
 0x212   : > { %v4488_v30 = vpop.f32.mrb[117].mxu1 }
 0x213   : > { %v4489_v27 = vadd.f32 %v4488_v30, %v4487_v22  ;;  %v4490_v61 = vpop.f32.mrb[118].mxu1 }
 0x214   : > { %v4491_v21 = vpop.f32.mrb[119].mxu1 }
 0x215   : > { %v4492_v57 = vadd.f32 %v4491_v21, %v4490_v61  ;;  %v6484_v23 = vadd.f32 %v4489_v27, %v3526_v12 }
 0x217   : > { %v6493_v63 = vadd.f32 %v4492_v57, %v3529_v19  ;;  %v6506_v19 = vrot.slane %v6490_v48, %v3686_v58 }
 0x219   : > { %v4493_v3 = vpop.f32.mrb[120].mxu1 }
 0x21a   : > { %v3111_v38 = vpop.f32.mrb[0].mxu0  ;;  %v4494_v55 = vpop.f32.mrb[121].mxu1 }
 0x21b   : > { %v4529_v12 = vadd.f32 %v3111_v38, %v6239_v37  ;;  %v3113_v13 = vpop.f32.mrb[1].mxu0  ;;  %v4495_v18 = vadd.f32 %v4494_v55, %v4493_v3  ;;  %v4496_v40 = vpop.f32.mrb[122].mxu1  ;;  %v6513_v37 = vrot.slane %v6498_v35, %v3686_v58 }
 0x21c   : > { %v4531_v6 = vadd.f32 %v3113_v13, %v6247_v39  ;;  %v3115_v16 = vpop.f32.mrb[2].mxu0  ;;  %v4497_v27 = vpop.f32.mrb[123].mxu1 }
 0x21d   : > { %v4530_v7 = vadd.f32 %v4529_v12, %v6395_v32  ;;  %v4533_v22 = vadd.f32 %v3115_v16, %v6255_v42  ;;  %v3117_v30 = vpop.f32.mrb[3].mxu0  ;;  %v4498_v21 = vadd.f32 %v4497_v27, %v4496_v40  ;;  %v6519_v57 = vadd.f32 %v4495_v18, %v3534_v34 }
 0x21e   : > { %v4532_v39 = vadd.f32 %v4531_v6, %v6397_v33  ;;  %v4535_v61 = vadd.f32 %v3117_v30, %v6257_v43 }
 0x21f   : > { %v3695_v32 = vmul.f32 %v4530_v7, %v6502_v45  ;;  %v4534_v31 = vadd.f32 %v4533_v22, %v6400_v62  ;;  %v6525_v3 = vadd.f32 %v4498_v21, %v3537_v28 }
 0x220   : > { %v3696_v38 = vmul.f32 %v4532_v39, %v6506_v19  ;;  %v4536_v58 = vadd.f32 %v4535_v61, %v6405_v41 }
 0x221   : > { %v3736_v42 = vadd.f32 %v6510_v15, %v3695_v32  ;;  %v3698_v12 = vmul.f32 %v4534_v31, %v6502_v45  ;;  %v4499_v34 = vpop.f32.mrb[124].mxu1 }
 0x222   : > { %v3737_v43 = vadd.f32 %v6513_v37, %v3696_v38  ;;  %v3699_v33 = vmul.f32 %v4536_v58, %v6506_v19  ;;  %v3121_v62 = vpop.f32.mrb[4].mxu0  ;;  %v4500_v6 = vpop.f32.mrb[125].mxu1 }
 0x223   : > { %v3760_v13 = vmax.f32 %v3736_v42, 0.0  ;;  %v3739_v41 = vadd.f32 %v6510_v15, %v3698_v12  ;;  %v4537_v28 = vadd.f32 %v3121_v62, %v6279_v51  ;;  %v3123_v55 = vpop.f32.mrb[5].mxu0  ;;  %v4501_v7 = vadd.f32 %v4500_v6, %v4499_v34  ;;  %v4502_v30 = vpop.f32.mrb[126].mxu1 }
 0x224   : > { %v3761_v18 = vmax.f32 %v3737_v43, 0.0  ;;  %v3740_v16 = vadd.f32 %v6513_v37, %v3699_v33  ;;  %v4539_v40 = vadd.f32 %v3123_v55, %v6284_v17  ;;  %v3125_v22 = vpop.f32.mrb[6].mxu0  ;;  %v4503_v51 = vpop.f32.mrb[127].mxu1 }
 0x225   : > { %3784 = vst [vmem:[%s6532_s26] sm:$0xff] %v3760_v13  ;;  %v3763_v27 = vmax.f32 %v3739_v41, 0.0  ;;  %v4538_v39 = vadd.f32 %v4537_v28, %v6414_v44  ;;  %v4541_v61 = vadd.f32 %v3125_v22, %v6286_v53  ;;  %v3127_v21 = vpop.f32.mrb[7].mxu0  ;;  %v4504_v58 = vadd.f32 %v4503_v51, %v4502_v30 }
 0x226   : > { %3785 = vst [vmem:[%s6532_s26 + $0x8] sm:$0xff] %v3761_v18  ;;  %v3764_v32 = vmax.f32 %v3740_v16, 0.0  ;;  %v4540_v31 = vadd.f32 %v4539_v40, %v6418_v4  ;;  %v4543_v38 = vadd.f32 %v3127_v21, %v6291_v26  ;;  %v6550_v12 = vadd.f32 %v4501_v7, %v6474_v47 }
 0x227   : > { %3787 = vst [vmem:[%s6532_s26 + $0x18] sm:$0xff] %v3763_v27  ;;  %v3701_v17 = vmul.f32 %v4538_v39, %v6502_v45  ;;  %v4542_v42 = vadd.f32 %v4541_v61, %v6420_v46  ;;  %v6556_v43 = vadd.f32 %v4504_v58, %v6476_v50 }
 0x228   : > { %3788 = vst [vmem:[%s6532_s26 + $0x20] sm:$0xff] %v3764_v32  ;;  %v3702_v53 = vmul.f32 %v4540_v31, %v6506_v19  ;;  %v4544_v44 = vadd.f32 %v4543_v38, %v6425_v14 }
 0x229   : > { %v3742_v26 = vadd.f32 %v6510_v15, %v3701_v17  ;;  %v3704_v4 = vmul.f32 %v4542_v42, %v6502_v45 }
 0x22a   : > { %v3743_v33 = vadd.f32 %v6513_v37, %v3702_v53  ;;  %v3705_v46 = vmul.f32 %v4544_v44, %v6506_v19  ;;  %v3131_v47 = vpop.f32.mrb[8].mxu0 }
 0x22b   : > { %v3766_v62 = vmax.f32 %v3742_v26, 0.0  ;;  %v3745_v34 = vadd.f32 %v6510_v15, %v3704_v4  ;;  %v4545_v13 = vadd.f32 %v3131_v47, %v6305_v59  ;;  %v3133_v14 = vpop.f32.mrb[9].mxu0  ;;  %v3690_v26 = vsub.s32 2, %v6482_v25 }
 0x22c   : > { %v3767_v41 = vmax.f32 %v3743_v33, 0.0  ;;  %v3746_v50 = vadd.f32 %v6513_v37, %v3705_v46  ;;  %v4547_v28 = vadd.f32 %v3133_v14, %v6307_v60  ;;  %v3135_v55 = vpop.f32.mrb[10].mxu0 }
 0x22d   : > { %3790 = vst [vmem:[%s6532_s26 + $0x30] sm:$0xff] %v3766_v62  ;;  %v3769_v6 = vmax.f32 %v3745_v34, 0.0  ;;  %v4546_v18 = vadd.f32 %v4545_v13, %v6434_v5  ;;  %v4549_v16 = vadd.f32 %v3135_v55, %v6315_v36  ;;  %v3137_v40 = vpop.f32.mrb[11].mxu0  ;;  %v3691_v62 = vrot.slane %v6490_v48, %v3690_v26 }
 0x22e   : > { %3791 = vst [vmem:[%s6532_s26 + $0x38] sm:$0xff] %v3767_v41  ;;  %v3770_v7 = vmax.f32 %v3746_v50, 0.0  ;;  %v4548_v22 = vadd.f32 %v4547_v28, %v6436_v52  ;;  %v4551_v59 = vadd.f32 %v3137_v40, %v6323_v2 }
 0x22f   : > { %3793 = vst [vmem:[%s6532_s26 + $0x48] sm:$0xff] %v3769_v6  ;;  %v3707_v30 = vmul.f32 %v4546_v18, %v6502_v45  ;;  %v4550_v27 = vadd.f32 %v4549_v16, %v6438_v24 }
 0x230   : > { %3794 = vst [vmem:[%s6532_s26 + $0x50] sm:$0xff] %v3770_v7  ;;  %v3708_v60 = vmul.f32 %v4548_v22, %v6506_v19  ;;  %v4552_v5 = vadd.f32 %v4551_v59, %v6443_v56 }
 0x231   : > { %v3748_v36 = vadd.f32 %v6510_v15, %v3707_v30  ;;  %v3710_v39 = vmul.f32 %v4550_v27, %v6502_v45 }
 0x232   : > { %v3749_v61 = vadd.f32 %v6513_v37, %v3708_v60  ;;  %v3711_v52 = vmul.f32 %v4552_v5, %v6506_v19  ;;  %v3141_v2 = vpop.f32.mrb[12].mxu0 }
 0x233   : > { %v3772_v21 = vmax.f32 %v3748_v36, 0.0  ;;  %v3751_v51 = vadd.f32 %v6510_v15, %v3710_v39  ;;  %v4553_v24 = vadd.f32 %v3141_v2, %v6334_v8  ;;  %v3143_v32 = vpop.f32.mrb[13].mxu0 }
 0x234   : > { %v3773_v31 = vmax.f32 %v3749_v61, 0.0  ;;  %v3752_v56 = vadd.f32 %v6513_v37, %v3711_v52  ;;  %v4555_v38 = vadd.f32 %v3143_v32, %v6337_v11  ;;  %v3145_v58 = vpop.f32.mrb[14].mxu0 }
 0x235   : > { %3796 = vst [vmem:[%s6532_s26 + $0x60] sm:$0xff] %v3772_v21  ;;  %v3775_v17 = vmax.f32 %v3751_v51, 0.0  ;;  %v4554_v42 = vadd.f32 %v4553_v24, %v6452_v29  ;;  %v4557_v53 = vadd.f32 %v3145_v58, %v6345_v10  ;;  %v3147_v44 = vpop.f32.mrb[15].mxu0 }
 0x236   : > { %3797 = vst [vmem:[%s6532_s26 + $0x68] sm:$0xff] %v3773_v31  ;;  %v3776_v8 = vmax.f32 %v3752_v56, 0.0  ;;  %v4556_v4 = vadd.f32 %v4555_v38, %v6456_v0  ;;  %v4559_v33 = vadd.f32 %v3147_v44, %v6351_v54 }
 0x237   : > { %3799 = vst [vmem:[%s6532_s26 + $0x78] sm:$0xff] %v3775_v17  ;;  %v3713_v46 = vmul.f32 %v4554_v42, %v6502_v45  ;;  %v4558_v11 = vadd.f32 %v4557_v53, %v6458_v1 }
 0x238   : > { %3800 = vst [vmem:[%s6532_s26 + $0x80] sm:$0xff] %v3776_v8  ;;  %v3714_v47 = vmul.f32 %v4556_v4, %v6506_v19  ;;  %v4560_v10 = vadd.f32 %v4559_v33, %v6460_v49  ;;  %v3732_v49 = vrot.slane %v6498_v35, %v3690_v26 }
 0x239   : > { %v3754_v29 = vadd.f32 %v6510_v15, %v3713_v46  ;;  %v3716_v25 = vmul.f32 %v4558_v11, %v6502_v45  ;;  %v3655_v34 = vpop.f32.mrb[128].mxu1 }
 0x23a   : > { %v3755_v0 = vadd.f32 %v6513_v37, %v3714_v47  ;;  %v3717_v54 = vmul.f32 %v4560_v10, %v6506_v19  ;;  %v3656_v14 = vadd.f32 %v3655_v34, %v6484_v23  ;;  %v3657_v41 = vpop.f32.mrb[129].mxu1 }
 0x23b   : > { %v3778_v1 = vmax.f32 %v3754_v29, 0.0  ;;  %v3757_v13 = vadd.f32 %v6510_v15, %v3716_v25  ;;  %v3658_v48 = vpop.f32.mrb[130].mxu1 }
 0x23c   : > { %v3779_v50 = vmax.f32 %v3755_v0, 0.0  ;;  %v3758_v45 = vadd.f32 %v6513_v37, %v3717_v54  ;;  %v3703_v55 = vmul.f32 %v3691_v62, %v3656_v14  ;;  %v3659_v19 = vadd.f32 %v3658_v48, %v6493_v63  ;;  %v3660_v6 = vpop.f32.mrb[131].mxu1 }
 0x23d   : > { %3802 = vst [vmem:[%s6532_s26 + $0x90] sm:$0xff] %v3778_v1  ;;  %v3781_v28 = vmax.f32 %v3757_v13, 0.0 }
 0x23e   : > { %3803 = vst [vmem:[%s6532_s26 + $0x98] sm:$0xff] %v3779_v50  ;;  %v3782_v15 = vmax.f32 %v3758_v45, 0.0  ;;  %v3744_v23 = vadd.f32 %v3732_v49, %v3703_v55  ;;  %v3706_v18 = vmul.f32 %v3691_v62, %v3659_v19 }
 0x23f   : > { %3805 = vst [vmem:[%s6532_s26 + $0xa8] sm:$0xff] %v3781_v28 }
 0x240   : > { %3806 = vst [vmem:[%s6532_s26 + $0xb0] sm:$0xff] %v3782_v15  ;;  %v3768_v35 = vmax.f32 %v3744_v23, 0.0  ;;  %v3747_v16 = vadd.f32 %v3732_v49, %v3706_v18 }
 0x241   : > { %v3663_v40 = vpop.f32.mrb[132].mxu1 }
 0x242   : > { %3792 = vst [vmem:[%s6532_s26 + $0x40] sm:$0xff] %v3768_v35  ;;  %v3771_v37 = vmax.f32 %v3747_v16, 0.0  ;;  %v3664_v7 = vadd.f32 %v3663_v40, %v6519_v57  ;;  %v3665_v22 = vpop.f32.mrb[133].mxu1 }
 0x243   : > { %v3666_v59 = vpop.f32.mrb[134].mxu1 }
 0x244   : > { %3795 = vst [vmem:[%s6532_s26 + $0x58] sm:$0xff] %v3771_v37  ;;  %v3709_v63 = vmul.f32 %v3691_v62, %v3664_v7  ;;  %v3667_v30 = vadd.f32 %v3666_v59, %v6525_v3  ;;  %v3668_v27 = vpop.f32.mrb[135].mxu1 }
 0x246   : > { %v3750_v60 = vadd.f32 %v3732_v49, %v3709_v63  ;;  %v3712_v5 = vmul.f32 %v3691_v62, %v3667_v30 }
 0x248   : > { %v3774_v36 = vmax.f32 %v3750_v60, 0.0  ;;  %v3753_v39 = vadd.f32 %v3732_v49, %v3712_v5 }
 0x249   : > { %v3671_v52 = vpop.f32.mrb[136].mxu1 }
 0x24a   : > { %v3647_v61 = vpop.f32.mrb[16].mxu0  ;;  %3798 = vst [vmem:[%s6532_s26 + $0x70] sm:$0xff] %v3774_v36  ;;  %v3777_v2 = vmax.f32 %v3753_v39, 0.0  ;;  %v3672_v57 = vadd.f32 %v3671_v52, %v6550_v12  ;;  %v3673_v24 = vpop.f32.mrb[137].mxu1 }
 0x24b   : > { %v3648_v21 = vadd.f32 %v3647_v61, %v6478_v9  ;;  %v3649_v51 = vpop.f32.mrb[17].mxu0  ;;  %v3674_v31 = vpop.f32.mrb[138].mxu1 }
 0x24c   : > { %v3650_v32 = vpop.f32.mrb[18].mxu0  ;;  %3801 = vst [vmem:[%s6532_s26 + $0x88] sm:$0xff] %v3777_v2  ;;  %v3715_v56 = vmul.f32 %v3691_v62, %v3672_v57  ;;  %v3675_v58 = vadd.f32 %v3674_v31, %v6556_v43  ;;  %v3676_v42 = vpop.f32.mrb[139].mxu1 }
 0x24d   : > { %v3697_v3 = vmul.f32 %v3691_v62, %v3648_v21  ;;  %v3651_v38 = vadd.f32 %v3650_v32, %v6480_v20  ;;  %v3652_v17 = vpop.f32.mrb[19].mxu0 }
 0x24e   : > { %v3756_v53 = vadd.f32 %v3732_v49, %v3715_v56  ;;  %v3718_v44 = vmul.f32 %v3691_v62, %v3675_v58 }
 0x24f   : > { %v3738_v9 = vadd.f32 %v3732_v49, %v3697_v3  ;;  %v3700_v12 = vmul.f32 %v3691_v62, %v3651_v38 }
 0x250   : > { %v3780_v8 = vmax.f32 %v3756_v53, 0.0  ;;  %v3759_v33 = vadd.f32 %v3732_v49, %v3718_v44 }
 0x251   : > { %v3762_v26 = vmax.f32 %v3738_v9, 0.0  ;;  %v3741_v4 = vadd.f32 %v3732_v49, %v3700_v12 }
 0x252   : > { %3804 = vst [vmem:[%s6532_s26 + $0xa0] sm:$0xff] %v3780_v8  ;;  %v3783_v11 = vmax.f32 %v3759_v33, 0.0 }
 0x253   : > { %3786 = vst [vmem:[%s6532_s26 + $0x10] sm:$0xff] %v3762_v26  ;;  %v3765_v46 = vmax.f32 %v3741_v4, 0.0 }
 0x254   : > { %3807 = vst [vmem:[%s6532_s26 + $0xb8] sm:$0xff] %v3783_v11 }
 0x255   : > { %3789 = vst [vmem:[%s6532_s26 + $0x28] sm:$0xff] %v3765_v46 }
 0x256 PF: > { %s14_s15 = sadd.s32 1, %s5167_s15  }
 0x257   : > { %p11_p4 = scmp.ge.s32.totalorder %s14_s15, 4  }
 0x259   :  { %13 = sbr.rel (!%p11_p4) target bundleno = 1 (0x1), region = 66 }

</bundles_post_ra>
